<compile_context>
chip_gen: v6e
topology: v6e:2x2x1
jax: 0.10.0
libtpu: 0.0.40
codegen_flags: <defaults>
</compile_context>

<pallas_src>
import numpy as np
import jax
import jax.numpy as jnp
from jax import lax
from jax.experimental import pallas as pl
from jax.experimental.pallas import tpu as pltpu

BN_EPS = 1e-5
LANE = 128


def _round_up(x, m):
    return ((x + m - 1) // m) * m


# -----------------------------------------------------------------------------
# Pass A: convolution (kw-only im2col, K accumulating dots over kh) + per-image
#         partial BN statistics.
# -----------------------------------------------------------------------------
def _make_conv_stats_kernel(K, H, W):
    p = (K - 1) // 2

    def kernel(x_ref, w_ref, y_ref, psum_ref, col_ref):
        # x_ref:    (1, H, W, Cip)     bf16 activation (channels lane-padded)
        # w_ref:    (K, K*Cip, Cop)    bf16 weights, depth ordered (kw, cin)
        # y_ref:    (1, H, W, Cop)     f32 pre-BN conv output
        # psum_ref: (1, 2, Cop)        f32 per-image [sum, sum-of-squares]
        # col_ref:  (H, W, K*Cip)      bf16 scratch, kw-expanded patch rows
        Cip = x_ref.shape[3]
        Cop = y_ref.shape[3]
        KC = K * Cip

        y_ref[...] = jnp.zeros_like(y_ref)

        # Zero only the kw halo column strips, once.  They are never written
        # afterwards, so they stay zero across the whole kh loop (no full
        # 3x-activation zero-init store pass).
        for kw in range(K):
            dw = kw - p
            w0, w1 = max(0, -dw), W - max(0, dw)
            if w0 > 0:
                col_ref[:, :w0, kw * Cip:(kw + 1) * Cip] = jnp.zeros(
                    (H, w0, Cip), jnp.bfloat16)
            if w1 < W:
                col_ref[:, w1:, kw * Cip:(kw + 1) * Cip] = jnp.zeros(
                    (H, W - w1, Cip), jnp.bfloat16)

        # K accumulating MXU contractions of depth K*Cip (bf16 in, f32 acc).
        for kh in range(K):
            dh = kh - p
            h0, h1 = max(0, -dh), H - max(0, dh)
            rows = h1 - h0
            for kw in range(K):
                dw = kw - p
                w0, w1 = max(0, -dw), W - max(0, dw)
                # Slice the ref per tap (keeps live vreg pressure low).
                col_ref[h0:h1, w0:w1, kw * Cip:(kw + 1) * Cip] = (
                    x_ref[0, h0 + dh:h1 + dh, w0 + dw:w1 + dw, :])
            pm = col_ref[h0:h1, :, :].reshape(rows * W, KC)
            y_ref[0, h0:h1, :, :] += jnp.dot(
                pm, w_ref[kh], preferred_element_type=jnp.float32
            ).reshape(rows, W, Cop)

        # Per-image partial BN statistics; reduced across the batch grid axis
        # in the wrapper, so the pre-BN activation never needs an extra HBM
        # read just to compute mean/var.
        flat = y_ref[0].reshape(H * W, Cop)
        psum_ref[0, 0:1, :] = jnp.sum(flat, axis=0, keepdims=True)
        psum_ref[0, 1:2, :] = jnp.sum(flat * flat, axis=0, keepdims=True)

    return kernel


# -----------------------------------------------------------------------------
# Pass B: folded BatchNorm (scale/shift) + ReLU + optional fused MaxPool2d(2,2)
# -----------------------------------------------------------------------------
def _make_bn_relu_pool_kernel(do_pool):
    def kernel(y_ref, scale_ref, shift_ref, out_ref):
        # y_ref: (1, H, W, Cop) f32   scale/shift: (1, Cop) f32
        _, H, W, Cop = y_ref.shape
        scale = scale_ref[...].reshape(1, 1, 1, Cop)
        shift = shift_ref[...].reshape(1, 1, 1, Cop)
        y = jnp.maximum(y_ref[...] * scale + shift, 0.0)
        if do_pool:
            # Pool H first (major-dim reshape, layout-free), then pool W by
            # pairing adjacent columns on the lane axis (lane-aligned slices).
            y = jnp.max(y.reshape(1, H // 2, 2, W, Cop), axis=2)
            y = y.reshape(1, H // 2, W // 2, 2 * Cop)
            y = jnp.maximum(y[..., :Cop], y[..., Cop:])
        out_ref[...] = y.astype(out_ref.dtype)

    return kernel


def _maxpool_kernel(x_ref, out_ref):
    """Standalone MaxPool2d(2,2); only used when kernel_list is empty."""
    _, H, W, C = x_ref.shape
    x = x_ref[...]
    x = jnp.max(x.reshape(1, H // 2, 2, W, C), axis=2)
    x = x.reshape(1, H // 2, W // 2, 2 * C)
    out_ref[...] = jnp.maximum(x[..., :C], x[..., C:]).astype(out_ref.dtype)


def _maxpool2x2(x_nhwc):
    N, H, W, C = x_nhwc.shape
    assert H % 2 == 0 and W % 2 == 0, "MaxPool2d(2,2) needs even H, W"
    return pl.pallas_call(
        _maxpool_kernel,
        out_shape=jax.ShapeDtypeStruct((N, H // 2, W // 2, C), x_nhwc.dtype),
        grid_spec=pltpu.PrefetchScalarGridSpec(
            num_scalar_prefetch=0, grid=(N,),
            in_specs=[pl.BlockSpec((1, H, W, C), lambda n: (n, 0, 0, 0))],
            out_specs=pl.BlockSpec((1, H // 2, W // 2, C),
                                   lambda n: (n, 0, 0, 0))),
        compiler_params=pltpu.CompilerParams(
            dimension_semantics=("parallel",)),
    )(x_nhwc)


# -----------------------------------------------------------------------------
# One conv + BN + ReLU (+ optional pool) layer.
# -----------------------------------------------------------------------------
def _conv_bn_relu(x, w_oihw, gamma, beta, do_pool, out_dtype):
    # x: (N, H, W, Cip) bf16, channels already padded to a lane multiple.
    N, H, W, Cip = x.shape
    Cout, Cin, K, _ = w_oihw.shape
    Cop = _round_up(Cout, LANE)
    assert Cin <= Cip

    # (O,I,Kh,Kw) -> (Kh,Kw,I,O), lane-pad channels, fold (kw, cin) into the
    # MXU contraction depth, cast operands to bf16 (f32 accumulation inside).
    w = jnp.transpose(w_oihw, (2, 3, 1, 0))
    w = jnp.pad(w, ((0, 0), (0, 0), (0, Cip - Cin), (0, Cop - Cout)))
    w = w.reshape(K, K * Cip, Cop).astype(jnp.bfloat16)

    bytes_a = int(x.size * 2 + w.size * 2 + N * H * W * Cop * 4
                  + N * 2 * Cop * 4)
    vmem_need = int(4 * H * W * (Cip * 2 + Cop * 4)      # dbl-buffered x / y
                    + K * K * Cip * Cop * 2               # resident weights
                    + H * W * K * Cip * 2)                # im2col scratch
    params_a = pltpu.CompilerParams(
        dimension_semantics=("parallel",),
        vmem_limit_bytes=int(min(max(vmem_need * 2, 32 << 20), 64 << 20)))

    y, psum = pl.pallas_call(
        _make_conv_stats_kernel(K, H, W),
        out_shape=(jax.ShapeDtypeStruct((N, H, W, Cop), jnp.float32),
                   jax.ShapeDtypeStruct((N, 2, Cop), jnp.float32)),
        grid_spec=pltpu.PrefetchScalarGridSpec(
            num_scalar_prefetch=0,
            grid=(N,),
            in_specs=[
                pl.BlockSpec((1, H, W, Cip), lambda n: (n, 0, 0, 0)),
                # Same block every grid step -> weights stay VMEM-resident.
                pl.BlockSpec((K, K * Cip, Cop), lambda n: (0, 0, 0)),
            ],
            out_specs=[
                pl.BlockSpec((1, H, W, Cop), lambda n: (n, 0, 0, 0)),
                pl.BlockSpec((1, 2, Cop), lambda n: (n, 0, 0)),
            ],
            scratch_shapes=[pltpu.VMEM((H, W, K * Cip), jnp.bfloat16)]),
        compiler_params=params_a,
        cost_estimate=pl.CostEstimate(
            flops=2 * N * H * W * K * K * Cip * Cop,
            transcendentals=0,
            bytes_accessed=bytes_a),
    )(x, w)

    # Fold global (training-mode, biased-variance) BN stats into scale/shift.
    cnt = float(N * H * W)
    tot = jnp.sum(psum, axis=0)                              # (2, Cop)
    mean = tot[0] / cnt
    var = jnp.maximum(tot[1] / cnt - mean * mean, 0.0)
    gamma_p = jnp.pad(gamma.astype(jnp.float32), (0, Cop - Cout))
    beta_p = jnp.pad(beta.astype(jnp.float32), (0, Cop - Cout))
    scale = gamma_p * lax.rsqrt(var + BN_EPS)
    shift = beta_p - mean * scale

    if do_pool:
        assert H % 2 == 0 and W % 2 == 0, "MaxPool2d(2,2) needs even H, W"
    Ho, Wo = (H // 2, W // 2) if do_pool else (H, W)

    out = pl.pallas_call(
        _make_bn_relu_pool_kernel(do_pool),
        out_shape=jax.ShapeDtypeStruct((N, Ho, Wo, Cop), out_dtype),
        grid_spec=pltpu.PrefetchScalarGridSpec(
            num_scalar_prefetch=0,
            grid=(N,),
            in_specs=[
                pl.BlockSpec((1, H, W, Cop), lambda n: (n, 0, 0, 0)),
                pl.BlockSpec((1, Cop), lambda n: (0, 0)),
                pl.BlockSpec((1, Cop), lambda n: (0, 0)),
            ],
            out_specs=pl.BlockSpec((1, Ho, Wo, Cop), lambda n: (n, 0, 0, 0))),
        compiler_params=pltpu.CompilerParams(
            dimension_semantics=("parallel",)),
    )(y, scale.reshape(1, Cop), shift.reshape(1, Cop))
    return out


# -----------------------------------------------------------------------------
# Parameters & block forward
# -----------------------------------------------------------------------------
def init_vgg_block_params(key, C_in, C_out, kernel_list):
    """Deterministic parameter init mirroring VGGBlock.__init__ shapes (bn=True)."""
    params = []
    c_in = C_in
    for ks in kernel_list:
        key, kw, kg, kb = jax.random.split(key, 4)
        fan_in = c_in * ks * ks
        bound = 1.0 / np.sqrt(fan_in)
        w_oihw = jax.random.uniform(kw, (C_out, c_in, ks, ks), jnp.float32,
                                    -bound, bound)           # Conv2d weight (OIHW)
        gamma = 1.0 + 0.1 * jax.random.normal(kg, (C_out,), jnp.float32)
        beta = 0.1 * jax.random.normal(kb, (C_out,), jnp.float32)
        params.append({"w": w_oihw, "gamma": gamma, "beta": beta})
        c_in = C_out
    return params


def vgg_block_forward(x_nchw, params, stride):
    x = jnp.transpose(x_nchw, (0, 2, 3, 1)).astype(jnp.float32)  # NCHW -> NHWC
    n_layers = len(params)
    if n_layers == 0:
        if stride == 2:
            x = _maxpool2x2(x)
        return jnp.transpose(x, (0, 3, 1, 2))

    C_in = x.shape[-1]
    C_out = params[-1]["w"].shape[0]
    Cip = _round_up(C_in, LANE)
    # One-time lane padding + bf16 cast of the block input; every intermediate
    # activation comes out of pass B already lane-padded (padded gamma/beta
    # are zero, so padded channels stay exactly zero through the chain).
    x = jnp.pad(x, ((0, 0), (0, 0), (0, 0), (0, Cip - C_in))).astype(jnp.bfloat16)

    for i, layer in enumerate(params):
        is_last = i == n_layers - 1
        do_pool = (stride == 2) and is_last
        out_dtype = jnp.float32 if is_last else jnp.bfloat16
        x = _conv_bn_relu(x, layer["w"], layer["gamma"], layer["beta"],
                          do_pool, out_dtype)

    x = x[..., :C_out]
    return jnp.transpose(x, (0, 3, 1, 2)).astype(jnp.float32)


def vgg_block_reference(x_nchw, params, stride):
    """Pure-JAX reference mirroring the PyTorch forward (training-mode BN)."""
    x = x_nchw.astype(jnp.float32)
    for layer in params:
        w = layer["w"]
        p = (w.shape[-1] - 1) // 2
        y = lax.conv_general_dilated(x, w, (1, 1), ((p, p), (p, p)),
                                     dimension_numbers=("NCHW", "OIHW", "NCHW"))
        mean = jnp.mean(y, axis=(0, 2, 3), keepdims=True)
        var = jnp.mean((y - mean) ** 2, axis=(0, 2, 3), keepdims=True)
        y = (y - mean) * lax.rsqrt(var + BN_EPS)
        y = y * layer["gamma"].reshape(1, -1, 1, 1) + layer["beta"].reshape(1, -1, 1, 1)
        x = jnp.maximum(y, 0.0)
    if stride == 2:
        x = lax.reduce_window(x, -jnp.inf, lax.max,
                              (1, 1, 2, 2), (1, 1, 2, 2), "VALID")
    return x


if __name__ == "__main__":
    key = jax.random.PRNGKey(0)
    kx, kp = jax.random.split(key)

    # VGGBlock(C_in=4, C_out=8, kernel_list=[3, 3], stride=2, bn=True)
    N, C_in, H, W = 2, 4, 16, 16
    C_out = 8
    kernel_list = [3, 3]
    stride = 2

    x = jax.random.normal(kx, (N, C_in, H, W), jnp.float32)
    params = init_vgg_block_params(kp, C_in, C_out, kernel_list)

    out = jax.block_until_ready(vgg_block_forward(x, params, stride))
    ref = jax.block_until_ready(vgg_block_reference(x, params, stride))

    assert out.shape == (N, C_out, H // 2, W // 2), out.shape
    # Tolerance accounts for bf16 MXU operands / bf16 inter-layer activations
    # (accumulation and BN statistics stay in f32).
    np.testing.assert_allclose(np.asarray(out), np.asarray(ref),
                               atol=3e-2, rtol=3e-2)
    print("KERNEL_OK")
</pallas_src>

<mosaic_0001>
module attributes {stable_mosaic.version = 11 : i64} {
  func.func @kernel(%arg0: i32, %arg1: memref<1x16x16x128xbf16, #tpu.memory_space<vmem>>, %arg2: memref<3x384x128xbf16, #tpu.memory_space<vmem>>, %arg3: memref<1x16x16x128xf32, #tpu.memory_space<vmem>>, %arg4: memref<1x2x128xf32, #tpu.memory_space<vmem>>, %arg5: memref<16x16x384xbf16, #tpu.memory_space<vmem>>) attributes {dimension_semantics = [#tpu.dimension_semantics<parallel>], iteration_bounds = array<i64: 2>, scalar_prefetch = 0 : i64, scratch_operands = 1 : i64, tpu.core_type = #tpu.core_type<tc>, window_params = [{transform_indices = @transform_0, window_bounds = array<i64: 1, 16, 16, 128>}, {pipeline_mode = #tpu.pipeline_mode<synchronous>, transform_indices = @transform_1, window_bounds = array<i64: 3, 384, 128>}, {transform_indices = @transform_2, window_bounds = array<i64: 1, 16, 16, 128>}, {transform_indices = @transform_3, window_bounds = array<i64: 1, 2, 128>}]} {
    %cst = arith.constant 0.000000e+00 : f32
    %0 = vector.broadcast %cst : f32 to vector<1x16x16x128xf32>
    %c0 = arith.constant 0 : index
    %c0_0 = arith.constant 0 : index
    %c0_1 = arith.constant 0 : index
    %c0_2 = arith.constant 0 : index
    %1 = vector.load %arg3[%c0, %c0_0, %c0_1, %c0_2] : memref<1x16x16x128xf32, #tpu.memory_space<vmem>>, vector<1x16x16x128xf32>
    tpu.vector_store %arg3[%c0, %c0_0, %c0_1, %c0_2], %0 {strides = array<i32>} : memref<1x16x16x128xf32, #tpu.memory_space<vmem>>, vector<1x16x16x128xf32>,
    %cst_3 = arith.constant 0.000000e+00 : bf16
    %2 = vector.broadcast %cst_3 : bf16 to vector<16x1x128xbf16>
    %c0_4 = arith.constant 0 : index
    %c0_5 = arith.constant 0 : index
    %c0_6 = arith.constant 0 : index
    %3 = vector.load %arg5[%c0_4, %c0_5, %c0_6] : memref<16x16x384xbf16, #tpu.memory_space<vmem>>, vector<16x1x128xbf16>
    tpu.vector_store %arg5[%c0_4, %c0_5, %c0_6], %2 {strides = array<i32>} : memref<16x16x384xbf16, #tpu.memory_space<vmem>>, vector<16x1x128xbf16>,
    %cst_7 = arith.constant 0.000000e+00 : bf16
    %4 = vector.broadcast %cst_7 : bf16 to vector<16x1x128xbf16>
    %c0_8 = arith.constant 0 : index
    %c15 = arith.constant 15 : index
    %c256 = arith.constant 256 : index
    %5 = vector.load %arg5[%c0_8, %c15, %c256] : memref<16x16x384xbf16, #tpu.memory_space<vmem>>, vector<16x1x128xbf16>
    tpu.vector_store %arg5[%c0_8, %c15, %c256], %4 {strides = array<i32>} : memref<16x16x384xbf16, #tpu.memory_space<vmem>>, vector<16x1x128xbf16>,
    %c0_9 = arith.constant 0 : index
    %c0_10 = arith.constant 0 : index
    %c0_11 = arith.constant 0 : index
    %c0_12 = arith.constant 0 : index
    %6 = vector.load %arg1[%c0_9, %c0_10, %c0_11, %c0_12] : memref<1x16x16x128xbf16, #tpu.memory_space<vmem>>, vector<1x15x15x128xbf16>
    %7 = vector.shape_cast %6 : vector<1x15x15x128xbf16> to vector<15x15x128xbf16>
    %c1 = arith.constant 1 : index
    %c1_13 = arith.constant 1 : index
    %c0_14 = arith.constant 0 : index
    %8 = vector.load %arg5[%c1, %c1_13, %c0_14] : memref<16x16x384xbf16, #tpu.memory_space<vmem>>, vector<15x15x128xbf16>
    tpu.vector_store %arg5[%c1, %c1_13, %c0_14], %7 {strides = array<i32>} : memref<16x16x384xbf16, #tpu.memory_space<vmem>>, vector<15x15x128xbf16>,
    %c0_15 = arith.constant 0 : index
    %c0_16 = arith.constant 0 : index
    %c0_17 = arith.constant 0 : index
    %c0_18 = arith.constant 0 : index
    %9 = vector.load %arg1[%c0_15, %c0_16, %c0_17, %c0_18] : memref<1x16x16x128xbf16, #tpu.memory_space<vmem>>, vector<1x15x16x128xbf16>
    %10 = vector.shape_cast %9 : vector<1x15x16x128xbf16> to vector<15x16x128xbf16>
    %c1_19 = arith.constant 1 : index
    %c0_20 = arith.constant 0 : index
    %c128 = arith.constant 128 : index
    %11 = vector.load %arg5[%c1_19, %c0_20, %c128] : memref<16x16x384xbf16, #tpu.memory_space<vmem>>, vector<15x16x128xbf16>
    tpu.vector_store %arg5[%c1_19, %c0_20, %c128], %10 {strides = array<i32>} : memref<16x16x384xbf16, #tpu.memory_space<vmem>>, vector<15x16x128xbf16>,
    %c0_21 = arith.constant 0 : index
    %c0_22 = arith.constant 0 : index
    %c1_23 = arith.constant 1 : index
    %c0_24 = arith.constant 0 : index
    %12 = vector.load %arg1[%c0_21, %c0_22, %c1_23, %c0_24] : memref<1x16x16x128xbf16, #tpu.memory_space<vmem>>, vector<1x15x15x128xbf16>
    %13 = vector.shape_cast %12 : vector<1x15x15x128xbf16> to vector<15x15x128xbf16>
    %c1_25 = arith.constant 1 : index
    %c0_26 = arith.constant 0 : index
    %c256_27 = arith.constant 256 : index
    %14 = vector.load %arg5[%c1_25, %c0_26, %c256_27] : memref<16x16x384xbf16, #tpu.memory_space<vmem>>, vector<15x15x128xbf16>
    tpu.vector_store %arg5[%c1_25, %c0_26, %c256_27], %13 {strides = array<i32>} : memref<16x16x384xbf16, #tpu.memory_space<vmem>>, vector<15x15x128xbf16>,
    %c1_28 = arith.constant 1 : index
    %c0_29 = arith.constant 0 : index
    %c0_30 = arith.constant 0 : index
    %15 = vector.load %arg5[%c1_28, %c0_29, %c0_30] : memref<16x16x384xbf16, #tpu.memory_space<vmem>>, vector<15x16x384xbf16>
    %16 = vector.shape_cast %15 : vector<15x16x384xbf16> to vector<240x384xbf16>
    %c0_31 = arith.constant 0 : index
    %c1_32 = arith.constant 1 : index
    %c0_33 = arith.constant 0 : index
    %c0_34 = arith.constant 0 : index
    %17 = vector.load %arg3[%c0_31, %c1_32, %c0_33, %c0_34] : memref<1x16x16x128xf32, #tpu.memory_space<vmem>>, vector<1x15x16x128xf32>
    %18 = vector.shape_cast %17 : vector<1x15x16x128xf32> to vector<15x16x128xf32>
    %c0_35 = arith.constant 0 : index
    %c0_36 = arith.constant 0 : index
    %c0_37 = arith.constant 0 : index
    %19 = vector.load %arg2[%c0_35, %c0_36, %c0_37] : memref<3x384x128xbf16, #tpu.memory_space<vmem>>, vector<1x384x128xbf16>
    %20 = vector.shape_cast %19 : vector<1x384x128xbf16> to vector<384x128xbf16>
    %cst_38 = arith.constant dense<0.000000e+00> : vector<240x128xf32>
    %21 = tpu.matmul %16, %20, %cst_38 {dimension_numbers = #tpu.dot_dimension_numbers<[1], [0], [0], [1], [0, 0, 1, 1], [], []>} : vector<240x384xbf16>, vector<384x128xbf16>, vector<240x128xf32> -> vector<240x128xf32>
    %22 = vector.shape_cast %21 : vector<240x128xf32> to vector<15x16x128xf32>
    %23 = arith.addf %18, %22 : vector<15x16x128xf32>
    %c0_39 = arith.constant 0 : index
    %c1_40 = arith.constant 1 : index
    %c0_41 = arith.constant 0 : index
    %c0_42 = arith.constant 0 : index
    %24 = vector.load %arg3[%c0_39, %c1_40, %c0_41, %c0_42] : memref<1x16x16x128xf32, #tpu.memory_space<vmem>>, vector<1x15x16x128xf32>
    %25 = vector.shape_cast %24 : vector<1x15x16x128xf32> to vector<15x16x128xf32>
    %26 = vector.shape_cast %23 : vector<15x16x128xf32> to vector<1x15x16x128xf32>
    tpu.vector_store %arg3[%c0_39, %c1_40, %c0_41, %c0_42], %26 {strides = array<i32>} : memref<1x16x16x128xf32, #tpu.memory_space<vmem>>, vector<1x15x16x128xf32>,
    %c0_43 = arith.constant 0 : index
    %c0_44 = arith.constant 0 : index
    %c0_45 = arith.constant 0 : index
    %c0_46 = arith.constant 0 : index
    %27 = vector.load %arg1[%c0_43, %c0_44, %c0_45, %c0_46] : memref<1x16x16x128xbf16, #tpu.memory_space<vmem>>, vector<1x16x15x128xbf16>
    %28 = vector.shape_cast %27 : vector<1x16x15x128xbf16> to vector<16x15x128xbf16>
    %c0_47 = arith.constant 0 : index
    %c1_48 = arith.constant 1 : index
    %c0_49 = arith.constant 0 : index
    %29 = vector.load %arg5[%c0_47, %c1_48, %c0_49] : memref<16x16x384xbf16, #tpu.memory_space<vmem>>, vector<16x15x128xbf16>
    tpu.vector_store %arg5[%c0_47, %c1_48, %c0_49], %28 {strides = array<i32>} : memref<16x16x384xbf16, #tpu.memory_space<vmem>>, vector<16x15x128xbf16>,
    %c0_50 = arith.constant 0 : index
    %c0_51 = arith.constant 0 : index
    %c0_52 = arith.constant 0 : index
    %c0_53 = arith.constant 0 : index
    %30 = vector.load %arg1[%c0_50, %c0_51, %c0_52, %c0_53] : memref<1x16x16x128xbf16, #tpu.memory_space<vmem>>, vector<1x16x16x128xbf16>
    %31 = vector.shape_cast %30 : vector<1x16x16x128xbf16> to vector<16x16x128xbf16>
    %c0_54 = arith.constant 0 : index
    %c0_55 = arith.constant 0 : index
    %c128_56 = arith.constant 128 : index
    %32 = vector.load %arg5[%c0_54, %c0_55, %c128_56] : memref<16x16x384xbf16, #tpu.memory_space<vmem>>, vector<16x16x128xbf16>
    tpu.vector_store %arg5[%c0_54, %c0_55, %c128_56], %31 {strides = array<i32>} : memref<16x16x384xbf16, #tpu.memory_space<vmem>>, vector<16x16x128xbf16>,
    %c0_57 = arith.constant 0 : index
    %c0_58 = arith.constant 0 : index
    %c1_59 = arith.constant 1 : index
    %c0_60 = arith.constant 0 : index
    %33 = vector.load %arg1[%c0_57, %c0_58, %c1_59, %c0_60] : memref<1x16x16x128xbf16, #tpu.memory_space<vmem>>, vector<1x16x15x128xbf16>
    %34 = vector.shape_cast %33 : vector<1x16x15x128xbf16> to vector<16x15x128xbf16>
    %c0_61 = arith.constant 0 : index
    %c0_62 = arith.constant 0 : index
    %c256_63 = arith.constant 256 : index
    %35 = vector.load %arg5[%c0_61, %c0_62, %c256_63] : memref<16x16x384xbf16, #tpu.memory_space<vmem>>, vector<16x15x128xbf16>
    tpu.vector_store %arg5[%c0_61, %c0_62, %c256_63], %34 {strides = array<i32>} : memref<16x16x384xbf16, #tpu.memory_space<vmem>>, vector<16x15x128xbf16>,
    %c0_64 = arith.constant 0 : index
    %c0_65 = arith.constant 0 : index
    %c0_66 = arith.constant 0 : index
    %36 = vector.load %arg5[%c0_64, %c0_65, %c0_66] : memref<16x16x384xbf16, #tpu.memory_space<vmem>>, vector<16x16x384xbf16>
    %37 = vector.shape_cast %36 : vector<16x16x384xbf16> to vector<256x384xbf16>
    %c0_67 = arith.constant 0 : index
    %c0_68 = arith.constant 0 : index
    %c0_69 = arith.constant 0 : index
    %c0_70 = arith.constant 0 : index
    %38 = vector.load %arg3[%c0_67, %c0_68, %c0_69, %c0_70] : memref<1x16x16x128xf32, #tpu.memory_space<vmem>>, vector<1x16x16x128xf32>
    %39 = vector.shape_cast %38 : vector<1x16x16x128xf32> to vector<16x16x128xf32>
    %c1_71 = arith.constant 1 : index
    %c0_72 = arith.constant 0 : index
    %c0_73 = arith.constant 0 : index
    %40 = vector.load %arg2[%c1_71, %c0_72, %c0_73] : memref<3x384x128xbf16, #tpu.memory_space<vmem>>, vector<1x384x128xbf16>
    %41 = vector.shape_cast %40 : vector<1x384x128xbf16> to vector<384x128xbf16>
    %cst_74 = arith.constant dense<0.000000e+00> : vector<256x128xf32>
    %42 = tpu.matmul %37, %41, %cst_74 {dimension_numbers = #tpu.dot_dimension_numbers<[1], [0], [0], [1], [0, 0, 1, 1], [], []>} : vector<256x384xbf16>, vector<384x128xbf16>, vector<256x128xf32> -> vector<256x128xf32>
    %43 = vector.shape_cast %42 : vector<256x128xf32> to vector<16x16x128xf32>
    %44 = arith.addf %39, %43 : vector<16x16x128xf32>
    %c0_75 = arith.constant 0 : index
    %c0_76 = arith.constant 0 : index
    %c0_77 = arith.constant 0 : index
    %c0_78 = arith.constant 0 : index
    %45 = vector.load %arg3[%c0_75, %c0_76, %c0_77, %c0_78] : memref<1x16x16x128xf32, #tpu.memory_space<vmem>>, vector<1x16x16x128xf32>
    %46 = vector.shape_cast %45 : vector<1x16x16x128xf32> to vector<16x16x128xf32>
    %47 = vector.shape_cast %44 : vector<16x16x128xf32> to vector<1x16x16x128xf32>
    tpu.vector_store %arg3[%c0_75, %c0_76, %c0_77, %c0_78], %47 {strides = array<i32>} : memref<1x16x16x128xf32, #tpu.memory_space<vmem>>, vector<1x16x16x128xf32>,
    %c0_79 = arith.constant 0 : index
    %c1_80 = arith.constant 1 : index
    %c0_81 = arith.constant 0 : index
    %c0_82 = arith.constant 0 : index
    %48 = vector.load %arg1[%c0_79, %c1_80, %c0_81, %c0_82] : memref<1x16x16x128xbf16, #tpu.memory_space<vmem>>, vector<1x15x15x128xbf16>
    %49 = vector.shape_cast %48 : vector<1x15x15x128xbf16> to vector<15x15x128xbf16>
    %c0_83 = arith.constant 0 : index
    %c1_84 = arith.constant 1 : index
    %c0_85 = arith.constant 0 : index
    %50 = vector.load %arg5[%c0_83, %c1_84, %c0_85] : memref<16x16x384xbf16, #tpu.memory_space<vmem>>, vector<15x15x128xbf16>
    tpu.vector_store %arg5[%c0_83, %c1_84, %c0_85], %49 {strides = array<i32>} : memref<16x16x384xbf16, #tpu.memory_space<vmem>>, vector<15x15x128xbf16>,
    %c0_86 = arith.constant 0 : index
    %c1_87 = arith.constant 1 : index
    %c0_88 = arith.constant 0 : index
    %c0_89 = arith.constant 0 : index
    %51 = vector.load %arg1[%c0_86, %c1_87, %c0_88, %c0_89] : memref<1x16x16x128xbf16, #tpu.memory_space<vmem>>, vector<1x15x16x128xbf16>
    %52 = vector.shape_cast %51 : vector<1x15x16x128xbf16> to vector<15x16x128xbf16>
    %c0_90 = arith.constant 0 : index
    %c0_91 = arith.constant 0 : index
    %c128_92 = arith.constant 128 : index
    %53 = vector.load %arg5[%c0_90, %c0_91, %c128_92] : memref<16x16x384xbf16, #tpu.memory_space<vmem>>, vector<15x16x128xbf16>
    tpu.vector_store %arg5[%c0_90, %c0_91, %c128_92], %52 {strides = array<i32>} : memref<16x16x384xbf16, #tpu.memory_space<vmem>>, vector<15x16x128xbf16>,
    %c0_93 = arith.constant 0 : index
    %c1_94 = arith.constant 1 : index
    %c1_95 = arith.constant 1 : index
    %c0_96 = arith.constant 0 : index
    %54 = vector.load %arg1[%c0_93, %c1_94, %c1_95, %c0_96] : memref<1x16x16x128xbf16, #tpu.memory_space<vmem>>, vector<1x15x15x128xbf16>
    %55 = vector.shape_cast %54 : vector<1x15x15x128xbf16> to vector<15x15x128xbf16>
    %c0_97 = arith.constant 0 : index
    %c0_98 = arith.constant 0 : index
    %c256_99 = arith.constant 256 : index
    %56 = vector.load %arg5[%c0_97, %c0_98, %c256_99] : memref<16x16x384xbf16, #tpu.memory_space<vmem>>, vector<15x15x128xbf16>
    tpu.vector_store %arg5[%c0_97, %c0_98, %c256_99], %55 {strides = array<i32>} : memref<16x16x384xbf16, #tpu.memory_space<vmem>>, vector<15x15x128xbf16>,
    %c0_100 = arith.constant 0 : index
    %c0_101 = arith.constant 0 : index
    %c0_102 = arith.constant 0 : index
    %57 = vector.load %arg5[%c0_100, %c0_101, %c0_102] : memref<16x16x384xbf16, #tpu.memory_space<vmem>>, vector<15x16x384xbf16>
    %58 = vector.shape_cast %57 : vector<15x16x384xbf16> to vector<240x384xbf16>
    %c0_103 = arith.constant 0 : index
    %c0_104 = arith.constant 0 : index
    %c0_105 = arith.constant 0 : index
    %c0_106 = arith.constant 0 : index
    %59 = vector.load %arg3[%c0_103, %c0_104, %c0_105, %c0_106] : memref<1x16x16x128xf32, #tpu.memory_space<vmem>>, vector<1x15x16x128xf32>
    %60 = vector.shape_cast %59 : vector<1x15x16x128xf32> to vector<15x16x128xf32>
    %c2 = arith.constant 2 : index
    %c0_107 = arith.constant 0 : index
    %c0_108 = arith.constant 0 : index
    %61 = vector.load %arg2[%c2, %c0_107, %c0_108] : memref<3x384x128xbf16, #tpu.memory_space<vmem>>, vector<1x384x128xbf16>
    %62 = vector.shape_cast %61 : vector<1x384x128xbf16> to vector<384x128xbf16>
    %cst_109 = arith.constant dense<0.000000e+00> : vector<240x128xf32>
    %63 = tpu.matmul %58, %62, %cst_109 {dimension_numbers = #tpu.dot_dimension_numbers<[1], [0], [0], [1], [0, 0, 1, 1], [], []>} : vector<240x384xbf16>, vector<384x128xbf16>, vector<240x128xf32> -> vector<240x128xf32>
    %64 = vector.shape_cast %63 : vector<240x128xf32> to vector<15x16x128xf32>
    %65 = arith.addf %60, %64 : vector<15x16x128xf32>
    %c0_110 = arith.constant 0 : index
    %c0_111 = arith.constant 0 : index
    %c0_112 = arith.constant 0 : index
    %c0_113 = arith.constant 0 : index
    %66 = vector.load %arg3[%c0_110, %c0_111, %c0_112, %c0_113] : memref<1x16x16x128xf32, #tpu.memory_space<vmem>>, vector<1x15x16x128xf32>
    %67 = vector.shape_cast %66 : vector<1x15x16x128xf32> to vector<15x16x128xf32>
    %68 = vector.shape_cast %65 : vector<15x16x128xf32> to vector<1x15x16x128xf32>
    tpu.vector_store %arg3[%c0_110, %c0_111, %c0_112, %c0_113], %68 {strides = array<i32>} : memref<1x16x16x128xf32, #tpu.memory_space<vmem>>, vector<1x15x16x128xf32>,
    %c0_114 = arith.constant 0 : index
    %c0_115 = arith.constant 0 : index
    %c0_116 = arith.constant 0 : index
    %c0_117 = arith.constant 0 : index
    %69 = vector.load %arg3[%c0_114, %c0_115, %c0_116, %c0_117] : memref<1x16x16x128xf32, #tpu.memory_space<vmem>>, vector<1x16x16x128xf32>
    %70 = vector.shape_cast %69 : vector<1x16x16x128xf32> to vector<16x16x128xf32>
    %71 = vector.shape_cast %70 : vector<16x16x128xf32> to vector<256x128xf32>
    %cst_118 = arith.constant dense<0.000000e+00> : vector<128xf32>
    %72 = vector.multi_reduction <add>, %71, %cst_118 [0] : vector<256x128xf32> to vector<128xf32>
    %73 = vector.shape_cast %72 : vector<128xf32> to vector<1x128xf32>
    %c0_119 = arith.constant 0 : index
    %c0_120 = arith.constant 0 : index
    %c0_121 = arith.constant 0 : index
    %74 = vector.load %arg4[%c0_119, %c0_120, %c0_121] : memref<1x2x128xf32, #tpu.memory_space<vmem>>, vector<1x1x128xf32>
    %75 = vector.shape_cast %74 : vector<1x1x128xf32> to vector<1x128xf32>
    %76 = vector.shape_cast %73 : vector<1x128xf32> to vector<1x1x128xf32>
    tpu.vector_store %arg4[%c0_119, %c0_120, %c0_121], %76 {strides = array<i32>} : memref<1x2x128xf32, #tpu.memory_space<vmem>>, vector<1x1x128xf32>,
    %77 = arith.mulf %71, %71 : vector<256x128xf32>
    %cst_122 = arith.constant dense<0.000000e+00> : vector<128xf32>
    %78 = vector.multi_reduction <add>, %77, %cst_122 [0] : vector<256x128xf32> to vector<128xf32>
    %79 = vector.shape_cast %78 : vector<128xf32> to vector<1x128xf32>
    %c0_123 = arith.constant 0 : index
    %c1_124 = arith.constant 1 : index
    %c0_125 = arith.constant 0 : index
    %80 = vector.load %arg4[%c0_123, %c1_124, %c0_125] : memref<1x2x128xf32, #tpu.memory_space<vmem>>, vector<1x1x128xf32>
    %81 = vector.shape_cast %80 : vector<1x1x128xf32> to vector<1x128xf32>
    %82 = vector.shape_cast %79 : vector<1x128xf32> to vector<1x1x128xf32>
    tpu.vector_store %arg4[%c0_123, %c1_124, %c0_125], %82 {strides = array<i32>} : memref<1x2x128xf32, #tpu.memory_space<vmem>>, vector<1x1x128xf32>,
    return
  }
  func.func @transform_0(%arg0: i32) -> (i32, i32, i32, i32) {
    %c0_i32 = arith.constant 0 : i32
    %c0_i32_0 = arith.constant 0 : i32
    %c0_i32_1 = arith.constant 0 : i32
    %c0_i32_2 = arith.constant 0 : i32
    return %arg0, %c0_i32, %c0_i32_0, %c0_i32_1 : i32, i32, i32, i32
  }
  func.func @transform_1(%arg0: i32) -> (i32, i32, i32) {
    %c0_i32 = arith.constant 0 : i32
    %c0_i32_0 = arith.constant 0 : i32
    %c0_i32_1 = arith.constant 0 : i32
    %c0_i32_2 = arith.constant 0 : i32
    return %c0_i32, %c0_i32_0, %c0_i32_1 : i32, i32, i32
  }
  func.func @transform_2(%arg0: i32) -> (i32, i32, i32, i32) {
    %c0_i32 = arith.constant 0 : i32
    %c0_i32_0 = arith.constant 0 : i32
    %c0_i32_1 = arith.constant 0 : i32
    %c0_i32_2 = arith.constant 0 : i32
    return %arg0, %c0_i32, %c0_i32_0, %c0_i32_1 : i32, i32, i32, i32
  }
  func.func @transform_3(%arg0: i32) -> (i32, i32, i32) {
    %c0_i32 = arith.constant 0 : i32
    %c0_i32_0 = arith.constant 0 : i32
    %c0_i32_1 = arith.constant 0 : i32
    return %arg0, %c0_i32, %c0_i32_0 : i32, i32, i32
  }
}

</mosaic_0001>

<bundles_post_ra>
// kernel: tpu_custom_call.1
= control target key start
LH: loop header
LB: loop body
LE: loop exit
PB: predicated region body
PF: predicated region fallthrough
CT: control target
= control target key end

     0   :  { %9 = vsyncpa [#allocation4], 0  ;;  %s9002_s0 = inlined_call_operand.hbm [shape: bf16[2,16,16,128], index: 0, kind: input, shape index: {}]   ;;  %s9003_s1 = inlined_call_operand.hbm [shape: bf16[3,384,128], index: 1, kind: input, shape index: {}]   ;;  %s9004_s2 = inlined_call_operand.hbm [shape: f32[2,16,16,128], index: 2, kind: output, shape index: {0}]   ;;  %s9005_s3 = inlined_call_operand.hbm [shape: f32[2,2,128], index: 3, kind: output, shape index: {1}]  }
   0x1   :  { %11 = vsyncpa [#allocation4 + $0x1], 0 }
   0x2   :  { %12 = vsyncpa [#allocation7], 0 }
   0x3   :  { %13 = vsyncpa [#allocation5], 0 }
   0x4   :  { %15 = vsyncpa [#allocation5 + $0x1], 0 }
   0x5   :  { %16 = vsyncpa [#allocation10], 0 }
   0x6   :  { %18 = vsyncpa [#allocation10 + $0x1], 0  ;;  %s7356_s12 = smov 0   ;;  %s7358_s13 = smov 0  }
   0x7   :  { %s7360_s14 = smov 0   ;;  %s7362_s15 = smov 0  }
   0x8 LB: > { %s7377_s16 = sadd.s32 4294967295, %s7324_s15   ;;  %s5887_s17 = sadd.s32 4294967294, %s7324_s15   ;;  %s7324_s15 = sphi %s7362_s15, %s9059_s15   ;;  %s7320_s14 = sphi %s7360_s14, %s9058_s14   ;;  %s7316_s13 = sphi %s7358_s13, %s9057_s13   ;;  %s7312_s12 = sphi %s7356_s12, %s9056_s12  }
   0x9   : > { %p44_p0 = scmp.ne.s32.totalorder %s7316_s13, %s7312_s12  ;;  %p9006_p1 = scmp.eq.s32.totalorder %s7377_s16, 0 }
   0xa   : > { %p95_p3 = scmp.eq.s32.totalorder %s5887_s17, 1  ;;  %p5888_p5 = scmp.ge.s32.totalorder %s7324_s15, 1 }
   0xb   : > { %p7386_p4 = por %p9006_p1, %p44_p0  ;;  %p128_p7 = scmp.lt.s32.totalorder %s7324_s15, 3 }
   0xc   : > { %p7391_p6 = por %p95_p3, %p44_p0  ;;  %s7326_s21 = smov [#allocation6]  }
   0xd   : > { %s9012_s18 = scalar_select %p7386_p4, 1, 0 }
   0xe   : > { %s9013_s19 = scalar_select %p7391_p6, 1, 0 }
   0xf   : > { %p7396_p8 = pnand %p5888_p5, %p128_p7  ;;  %s140_s22 = sshll.u32 %s7326_s21, 4  ;;  %s141_s22 = int_to_ptr.vmem [resolvable:$true] %s140_s22 }
  0x10   : > { %s7410_s24 = sadd.s32 1, %s7324_s15   ;;  %s31_s25 = sadd.s32 1, %s7320_s14 }
  0x11   : > { %s9014_s20 = scalar_select %p7396_p8, 1, 0 }
  0x12   : > { %p6888_p9 = pneg %p7396_p8  ;;  %s28_s26 = ssub.s32 %s7324_s15, %s7410_s24 }
  0x13   : > { %s7183_s27 = scalar_lea.vmem %s141_s22, 9216  ;;  %p7191_p5 = scmp.lt.s32.totalorder %s141_s22, %s141_s22 }
  0x14   : > { %p7405_p11 = pnand %p6888_p9, %p9006_p1  ;;  %p7184_p13 = scmp.ne.s32.totalorder %s141_s22, %s7183_s27 }
  0x15   : > { %p7192_p7 = scmp.lt.s32.totalorder %s7183_s27, %s7183_s27 }
  0x16   : > { %p7174_p12 = pneg %p7405_p11 }
  0x17   : > { %p7193_p10 = por %p7192_p7, %p7191_p5 }
  0x18   : > { %p7186_p0 = pnand %p7184_p13, %p7174_p12 }
  0x1a   : > { %p7187_p3 = pneg %p7186_p0 }
  0x1c   : > { %p7194_p2 = pnand %p7193_p10, %p7187_p3 }
  0x1e   : > { %7197 = shalt.err (!%p7194_p2)
}
  0x1f   : > { %s7327_s28 = smov 64   ;;  %s7328_s29 = smov 4  }
  0x20   : > { %6891 = dma.hbm_to_vmem [thread:$0]  (!%p7405_p11), %s9003_s1, 9216, %s141_s22, [#allocation7], %s7327_s28, %s7327_s28, %s7328_s29  }
  0x21   : > { %p29_p2 = scmp.eq.s32.totalorder %s28_s26, 0  ;;  %p38_p9 = scmp.ne.s32.totalorder %s7320_s14, %s7316_s13 }
  0x22   : > { %p39_p10 = scmp.eq.s32.totalorder %s7324_s15, 0  ;;  %p6904_p12 = scmp.lt.s32.totalorder %s7324_s15, 2 }
  0x23   : > { %s7430_s5 = scalar_select %p29_p2, %s7320_s14, %s31_s25  }
  0x24   : > { %p40_p13 = por %p39_p10, %p38_p9  ;;  %p9016_p0 = scmp.eq.s32.totalorder %s7377_s16, 1 }
  0x25   : > { %s154_s7 = sand.u32 1, %s7320_s14   ;;  %s6266_s8 = sshll.u32 %s7324_s15, 11 }
  0x26   : > { %p7434_p3 = por %p9016_p0, %p38_p9  ;;  %s5891_s9 = sshll.u32 %s154_s7, 7 }
  0x27   : > { %s7443_s17 = scalar_lea.hbm %s9002_s0, %s6266_s8  ;;  %s158_s21 = scalar_lea.vmem [#allocation3], %s5891_s9 }
  0x28   : > { %s9017_s6 = scalar_select %p7434_p3, 1, 0 }
  0x29   : > { %s165_s22 = sshll.u32 %s158_s21, 4  ;;  %p7445_p11 = pnand %p6904_p12, %p40_p13  ;;  %s7449_s22 = int_to_ptr.vmem [resolvable:$true] %s165_s22 }
  0x2a   : > { %s7451_s25 = scalar_lea.sflag [#allocation4], %s154_s7  ;;  %s7198_s26 = scalar_lea.hbm %s7443_s17, 2048 }
  0x2b   : > { %p7199_p5 = scmp.ne.s32.totalorder %s7443_s17, %s7198_s26  ;;  %p7200_p7 = pneg %p7445_p11 }
  0x2c   : > { %s7203_s4 = scalar_lea.hbm %s9002_s0, 4096  ;;  %p7204_p10 = scmp.lt.s32.totalorder %s7443_s17, %s9002_s0 }
  0x2d   : > { %p7201_p2 = pnand %p7200_p7, %p7199_p5  ;;  %p7205_p12 = scmp.lt.s32.totalorder %s7203_s4, %s7198_s26 }
  0x2f   : > { %p7202_p9 = pneg %p7201_p2  ;;  %p7206_p13 = por %p7205_p12, %p7204_p10 }
  0x31   : > { %p7207_p0 = pnand %p7206_p13, %p7202_p9 }
  0x33   : > { %7210 = shalt.err (!%p7207_p0)
}
  0x34   : > { %s7211_s7 = scalar_lea.vmem %s7449_s22, 2048  ;;  %s7329_s10 = smov [#allocation3]  }
  0x35   : > { %p7212_p1 = scmp.ne.s32.totalorder %s7449_s22, %s7211_s7  ;;  %s7216_s11 = sshll.u32 %s7329_s10, 4  ;;  %s7217_s11 = int_to_ptr.vmem [resolvable:$false] %s7216_s11 }
  0x36   : > { %s7218_s21 = scalar_lea.vmem %s7217_s11, 4096  ;;  %p7219_p2 = scmp.lt.s32.totalorder %s7449_s22, %s7217_s11 }
  0x37   : > { %p7214_p6 = pnand %p7212_p1, %p7200_p7  ;;  %p7220_p3 = scmp.lt.s32.totalorder %s7218_s21, %s7211_s7 }
  0x39   : > { %p7215_p5 = pneg %p7214_p6  ;;  %p7221_p4 = por %p7220_p3, %p7219_p2 }
  0x3b   : > { %p7222_p8 = pnand %p7221_p4, %p7215_p5 }
  0x3d   : > { %7225 = shalt.err (!%p7222_p8)
}
  0x3e   : > { %6895 = dma.hbm_to_vmem [thread:$0]  (!%p7445_p11), %s7443_s17, 2048, %s7449_s22, %s7451_s25, %s7327_s28, %s7327_s28, %s7328_s29  }
  0x3f   : > { %p9019_p1 = scmp.ne.s32.totalorder %s9014_s20, 0 }
  0x41   : > { %177 = sbr.rel (%p9019_p1) target bundleno = 883 (0x373), region = 28 }
  0x46   : > { %s7478_s26 = sand.u32 1, %s7316_s13   ;;  %p9020_p4 = scmp.ne.s32.totalorder %s9012_s18, 0 }
  0x47   : > { %s5895_s27 = sshll.u32 %s7478_s26, 7  ;;  %s180_s30 = scalar_lea.sflag [#allocation4], %s7478_s26 }
  0x48   : > { %s7482_s4 = scalar_lea.vmem [#allocation3], %s5895_s27 }
  0x49   : > { %7295 = dma.done.wait (%p9020_p4), %s180_s30, 2048  }
  0x4a   : > { %7297 = vsyncadd (%p9020_p4), %s180_s30, 4294965248  ;;  %p9021_p6 = scmp.eq.s32.totalorder %s7377_s16, 0 }
  0x4c   : > { %7299 = dma.done.wait (%p9021_p6), [#allocation7], 9216   ;;  %p9022_p8 = pmov %p9021_p6 }
  0x4d   : > { %v6946_v0 = vld [vmem:[#allocation6 + $0x78] sm:$0xff]   ;;  %v6948_v2 = vld [vmem:[#allocation6 + $0x70] sm:$0xff]   ;;  %v6950_v4 = vld [vmem:[#allocation6 + $0x68] sm:$0xff]   ;;  %vm248_vm0 = vcmask 1040384   ;;  %vm249_vm1 = vsmask.f32 256 }
  0x4e   : > { %7301 = vsyncadd (%p9022_p8), [#allocation7], 4294958080  ;;  %v6947_v1 = vld [vmem:[#allocation6 + $0x38] sm:$0xff]   ;;  %6268 = vmatprep.subr.bf16.mxu0 %v6946_v0  ;;  %6862 = vmatprep.subr.bf16.mxu1 %v6946_v0  ;;  %v6949_v3 = vld [vmem:[#allocation6 + $0x30] sm:$0xff]   ;;  %vm380_vm3 = vsmask.f32 4368 }
  0x4f   : > { %6269 = vmatpush3.bf16.msra.mxu0 %v6947_v1  ;;  %6870 = vmatpush3.bf16.msra.mxu1 %v6947_v1  ;;  %v6951_v5 = vld [vmem:[#allocation6 + $0x28] sm:$0xff]   ;;  %v6952_v6 = vld [vmem:[#allocation6 + $0x60] sm:$0xff]   ;;  %v6954_v8 = vld [vmem:[#allocation6 + $0x58] sm:$0xff]   ;;  %vm653_vm5 = vcmask 1043456   ;;  %vm654_vm6 = vsmask.f32 7938 }
  0x50   : > { %6270 = vmatprep.subr.bf16.mxu0 %v6948_v2  ;;  %6863 = vmatprep.subr.bf16.mxu1 %v6948_v2  ;;  %v6953_v7 = vld [vmem:[#allocation6 + $0x20] sm:$0xff]   ;;  %vm7493_vm2 = vmand %vm248_vm0, %vm249_vm1  ;;  %v6955_v10 = vld [vmem:[#allocation6 + $0x18] sm:$0xff]   ;;  %vm299_vm8 = vcmask 1043459   ;;  %vm300_vm9 = vsmask.f32 7950  ;;  %vm7331_vm13 = vmmov 0  }
  0x51   : > { %v6956_v11 = vld [vmem:[#allocation6 + $0x50] sm:$0xff]   ;;  %v254_v12 = vld [vmem:[#allocation2 + $0x18] sm:$0x1]  ;;  %v350_v13 = vld [vmem:[%s7482_s4] sm:$0xf]  ;;  %s5897_s18 = sshll.u32 %s7478_s26, 8 }
  0x52   : > { %v351_v14 = vld [vmem:[%s7482_s4 + $0x4] sm:$0xf]  ;;  %v255_v15 = vsel %vm7493_vm2, 0, %v254_v12  ;;  %v383_v16 = vshrl.u32 %v350_v13, 16  ;;  %v386_v17 = vshll.u32 %v350_v13, 16  ;;  %v6957_v23 = vld [vmem:[#allocation6 + $0x10] sm:$0xff]   ;;  %vm7510_vm4 = vmor %vm249_vm1, %vm380_vm3 }
  0x53   : > { %6271 = vmatpush3.bf16.msra.mxu0 %v6949_v3  ;;  %6871 = vmatpush3.bf16.msra.mxu1 %v6949_v3  ;;  %v391_v18 = vshrl.u32 %v351_v14, 16  ;;  %v716_v19 = vld [vmem:[%s7482_s4] sm:$0xf]  ;;  %256 = vst [vmem:[#allocation2 + $0x18] sm:$0x1] %v255_v15  ;;  %v394_v20 = vshll.u32 %v351_v14, 16  ;;  %vm7522_vm7 = vmand %vm653_vm5, %vm654_vm6 }
  0x54   : > { %6272 = vmatprep.subr.bf16.mxu0 %v6950_v4  ;;  %6864 = vmatprep.subr.bf16.mxu1 %v6950_v4  ;;  %v717_v21 = vld [vmem:[%s7482_s4 + $0x4] sm:$0xf]  ;;  %746 = vst [vmem:[#allocation2 + $0x1c] sm:$0xf] %v716_v19  ;;  %v7504_v22 = vld [vmem:[%s7482_s4 + $0x8] sm:$0xf]  ;;  %vm7664_vm10 = vmand %vm299_vm8, %vm300_vm9 }
  0x55   : > { %v385_v24 = vrot.slane %v383_v16, 7  ;;  %v393_v25 = vrot.slane %v391_v18, 7  ;;  %747 = vst [vmem:[#allocation2 + $0x28] sm:$0xf] %v717_v21  ;;  %v2077_v26 = vld [vmem:[%s7482_s4 + $0xc] sm:$0xf] }
  0x56   : > { %v2123_v27 = vshrl.u32 %v7504_v22, 16  ;;  %v6958_v28 = vld [vmem:[#allocation6 + $0x48] sm:$0xff]   ;;  %v2131_v30 = vshrl.u32 %v2077_v26, 16  ;;  %v2134_v31 = vshll.u32 %v2077_v26, 16  ;;  %v287_v37 = vld [vmem:[#allocation2 + $0x120] sm:$0x1] }
  0x57   : > { %6273 = vmatpush3.bf16.msra.mxu0 %v6951_v5  ;;  %6872 = vmatpush3.bf16.msra.mxu1 %v6951_v5  ;;  %v6959_v32 = vld [vmem:[#allocation6 + $0x8] sm:$0xff]   ;;  %v388_v33 = vor.u32 %v386_v17, %v385_v24  ;;  %v389_v34 = vrot.slane %v385_v24, 4  ;;  %v396_v35 = vor.u32 %v394_v20, %v393_v25  ;;  %v372_v38 = vld [vmem:[%s7482_s4 + $0x58] sm:$0xf]  ;;  %v6960_v39 = vld [vmem:[#allocation6 + $0x40] sm:$0xff]   ;;  %v288_v41 = vsel %vm7493_vm2, 0, %v287_v37 }
  0x58   : > { %6274 = vmatprep.subr.bf16.mxu0 %v6952_v6  ;;  %6865 = vmatprep.subr.bf16.mxu1 %v6952_v6  ;;  %v2125_v36 = vrot.slane %v2123_v27, 7  ;;  %v2133_v40 = vrot.slane %v2131_v30, 7  ;;  %v373_v42 = vld [vmem:[%s7482_s4 + $0x5c] sm:$0xf]  ;;  %v559_v43 = vshrl.u32 %v372_v38, 16  ;;  %v562_v44 = vshll.u32 %v372_v38, 16 }
  0x59   : > { %v397_v45 = vsel %vm7510_vm4, %v389_v34, %v396_v35  ;;  %v2126_v47 = vshll.u32 %v7504_v22, 16  ;;  %289 = vst [vmem:[#allocation2 + $0x120] sm:$0x1] %v288_v41  ;;  %v567_v48 = vshrl.u32 %v373_v42, 16  ;;  %v738_v49 = vld [vmem:[%s7482_s4 + $0x58] sm:$0xf] }
  0x5a   : > { %v739_v50 = vld [vmem:[%s7482_s4 + $0x5c] sm:$0xf]  ;;  %659 = vst [vmem:[#allocation2 + $0x24] sm:$0xf] %v397_v45  ;;  %v561_v51 = vrot.slane %v559_v43, 7  ;;  %v570_v52 = vshll.u32 %v373_v42, 16  ;;  %v2136_v62 = vor.u32 %v2134_v31, %v2133_v40 }
  0x5b   : > { %6275 = vmatpush3.bf16.msra.mxu0 %v6953_v7  ;;  %6873 = vmatpush3.bf16.msra.mxu1 %v6953_v7  ;;  %768 = vst [vmem:[#allocation2 + $0x124] sm:$0xf] %v738_v49  ;;  %769 = vst [vmem:[#allocation2 + $0x130] sm:$0xf] %v739_v50  ;;  %v7530_v53 = vld [vmem:[%s7482_s4 + $0x60] sm:$0xf]  ;;  %v2128_v7 = vor.u32 %v2126_v47, %v2125_v36 }
  0x5c   : > { %6276 = vmatprep.subr.bf16.mxu0 %v6954_v8  ;;  %6866 = vmatprep.subr.bf16.mxu1 %v6954_v8  ;;  %v2099_v54 = vld [vmem:[%s7482_s4 + $0x64] sm:$0xf]  ;;  %v656_v55 = vld [vmem:[#allocation2 + $0x18] sm:$0xf]  ;;  %v2129_v56 = vrot.slane %v2125_v36, 4  ;;  %v569_v57 = vrot.slane %v567_v48, 7  ;;  %v564_v63 = vor.u32 %v562_v44, %v561_v51 }
  0x5d   : > { %v2299_v58 = vshrl.u32 %v7530_v53, 16  ;;  %v2307_v59 = vshrl.u32 %v2099_v54, 16  ;;  %v6961_v60 = vld [vmem:[#allocation6] sm:$0xff]   ;;  %v657_v61 = vsel %vm7522_vm7, %v388_v33, %v656_v55  ;;  %v565_v0 = vrot.slane %v561_v51, 4  ;;  %v6967_v5 = vld [vmem:[#allocation6 + $0x138] sm:$0xff]   ;;  %v6980_v48 = vld [vmem:[#allocation6 + $0x130] sm:$0xff]  }
  0x5e   : > { %658 = vst [vmem:[#allocation2 + $0x18] sm:$0xf] %v657_v61  ;;  %v572_v1 = vor.u32 %v570_v52, %v569_v57  ;;  %v2310_v4 = vshll.u32 %v2099_v54, 16  ;;  %v2460_v8 = vld [vmem:[%s7482_s4 + $0x8] sm:$0xf]  ;;  %v2137_v12 = vsel %vm7510_vm4, %v2129_v56, %v2136_v62  ;;  %v2302_v14 = vshll.u32 %v7530_v53, 16 }
  0x5f   : > { %6277 = vmatpush3.bf16.msra.mxu0 %v6955_v10  ;;  %6874 = vmatpush3.bf16.msra.mxu1 %v6955_v10  ;;  %v2301_v2 = vrot.slane %v2299_v58, 7  ;;  %v2309_v3 = vrot.slane %v2307_v59, 7  ;;  %v2461_v10 = vld [vmem:[%s7482_s4 + $0xc] sm:$0xf]  ;;  %v257_v16 = vld [vmem:[#allocation2 + $0x30] sm:$0x1] }
  0x60   : > { %6278 = vmatprep.subr.bf16.mxu0 %v6956_v11  ;;  %6867 = vmatprep.subr.bf16.mxu1 %v6956_v11  ;;  %v573_v6 = vsel %vm7510_vm4, %v565_v0, %v572_v1  ;;  %v700_v11 = vld [vmem:[#allocation2 + $0x120] sm:$0xf]  ;;  %v352_v17 = vld [vmem:[%s7482_s4 + $0x8] sm:$0xf]  ;;  %v9010_v20 = vmov 0.0   ;;  %v6969_v21 = vld [vmem:[#allocation6 + $0xf8] sm:$0xff]  }
  0x61   : > { %703 = vst [vmem:[#allocation2 + $0x12c] sm:$0xf] %v573_v6  ;;  %v701_v13 = vsel %vm7522_vm7, %v564_v63, %v700_v11  ;;  %v2305_v15 = vrot.slane %v2301_v2, 4  ;;  %v1187_v18 = vld [vmem:[#allocation2 + $0x24] sm:$0xff]  ;;  %v2312_v19 = vor.u32 %v2310_v4, %v2309_v3  ;;  %v258_v22 = vsel %vm7493_vm2, 0, %v257_v16  ;;  %v6966_v50 = vld [vmem:[#allocation6 + $0xb8] sm:$0xff]  }
  0x62   : > { %702 = vst [vmem:[#allocation2 + $0x120] sm:$0xf] %v701_v13  ;;  %v399_v24 = vshrl.u32 %v352_v17, 16  ;;  %v402_v25 = vshll.u32 %v352_v17, 16  ;;  %259 = vst [vmem:[#allocation2 + $0x30] sm:$0x1] %v258_v22  ;;  %v2304_v41 = vor.u32 %v2302_v14, %v2301_v2 }
  0x63   : > { %6279 = vmatpush3.bf16.msra.mxu0 %v6957_v23  ;;  %6875 = vmatpush3.bf16.msra.mxu1 %v6957_v23  ;;  %v353_v23 = vld [vmem:[%s7482_s4 + $0xc] sm:$0xf]  ;;  %2401 = vst [vmem:[#allocation2 + $0x24] sm:$0xf] %v2137_v12  ;;  %v2482_v36 = vld [vmem:[%s7482_s4 + $0x60] sm:$0xf]  ;;  %v2313_v42 = vsel %vm7510_vm4, %v2305_v15, %v2312_v19 }
  0x64   : > { %6280 = vmatprep.subr.bf16.mxu0 %v6958_v28  ;;  %6868 = vmatprep.subr.bf16.mxu1 %v6958_v28  ;;  %v407_v26 = vshrl.u32 %v353_v23, 16  ;;  %v410_v27 = vshll.u32 %v353_v23, 16  ;;  %v718_v28 = vld [vmem:[%s7482_s4 + $0x8] sm:$0xf]  ;;  %v719_v30 = vld [vmem:[%s7482_s4 + $0xc] sm:$0xf] }
  0x65   : > { %v1185_v31 = vld [vmem:[#allocation2 + $0x18] sm:$0xff]  ;;  %v401_v34 = vrot.slane %v399_v24, 7  ;;  %748 = vst [vmem:[#allocation2 + $0x34] sm:$0xf] %v718_v28  ;;  %749 = vst [vmem:[#allocation2 + $0x40] sm:$0xf] %v719_v30 }
  0x66   : > { %v2398_v33 = vld [vmem:[#allocation2 + $0x18] sm:$0xf]  ;;  %v5929_v37 = vcombine.low %v1185_v31, %v1187_v18  ;;  %v409_v38 = vrot.slane %v407_v26, 7  ;;  %v2483_v43 = vld [vmem:[%s7482_s4 + $0x64] sm:$0xf]  ;;  %s8851_s20 = scalar_lea.vmem [#allocation8], %s5897_s18 }
  0x67   : > { %6281 = vmatpush3.bf16.msra.mxu0 %v6959_v32  ;;  %6876 = vmatpush3.bf16.msra.mxu1 %v6959_v32  ;;  %v6962_v32 = vld [vmem:[#allocation2 + $0x1c] ss:$12 sps:$4 sm:$0xff]   ;;  %v2399_v35 = vsel %vm7522_vm7, %v2128_v7, %v2398_v33  ;;  %v290_v40 = vld [vmem:[#allocation2 + $0x138] sm:$0x1]  ;;  %v404_v44 = vor.u32 %v402_v25, %v401_v34  ;;  %v405_v45 = vrot.slane %v401_v34, 4  ;;  %s6267_s28 = sshll.u32 %s7377_s16, 12 }
  0x68   : > { %6282 = vmatprep.subr.bf16.mxu0 %v6960_v39  ;;  %6869 = vmatprep.subr.bf16.mxu1 %v6960_v39  ;;  %2492 = vst [vmem:[#allocation2 + $0x1c] sm:$0xf] %v2460_v8  ;;  %2493 = vst [vmem:[#allocation2 + $0x28] sm:$0xf] %v2461_v10  ;;  %v7556_v39 = vld [vmem:[%s7482_s4 + $0x10] sm:$0xf]  ;;  %v412_v51 = vor.u32 %v410_v27, %v409_v38  ;;  %s8931_s23 = scalar_lea.hbm %s9004_s2, %s6267_s28 }
  0x69   : > { %1740 = vmatprep.mubr.bf16.mxu0 %v6962_v32  ;;  %2400 = vst [vmem:[#allocation2 + $0x18] sm:$0xf] %v2399_v35  ;;  %v374_v47 = vld [vmem:[%s7482_s4 + $0x60] sm:$0xf]  ;;  %v1231_v49 = vld [vmem:[#allocation2 + $0x12c] sm:$0xff]  ;;  %v2139_v52 = vshrl.u32 %v7556_v39, 16 }
  0x6a   : > { %v291_v53 = vsel %vm7493_vm2, 0, %v290_v40  ;;  %v375_v54 = vld [vmem:[%s7482_s4 + $0x64] sm:$0xf]  ;;  %v575_v55 = vshrl.u32 %v374_v47, 16  ;;  %v578_v56 = vshll.u32 %v374_v47, 16  ;;  %v413_v0 = vsel %vm7510_vm4, %v405_v45, %v412_v51  ;;  %v6968_v8 = vld [vmem:[#allocation6 + $0xb0] sm:$0xff]  }
  0x6b   : > { %6283 = vmatpush3.bf16.msra.mxu0 %v6961_v60  ;;  %6877 = vmatpush3.bf16.msra.mxu1 %v6961_v60  ;;  %292 = vst [vmem:[#allocation2 + $0x138] sm:$0x1] %v291_v53  ;;  %v583_v57 = vshrl.u32 %v375_v54, 16  ;;  %v586_v58 = vshll.u32 %v375_v54, 16  ;;  %v740_v59 = vld [vmem:[%s7482_s4 + $0x60] sm:$0xf] }
  0x6c   : > { %6662 = vmatprep.subr.bf16.mxu1 %v9010_v20  ;;  %6397 = vmatprep.subr.bf16.mxu0 %v6967_v5  ;;  %v6981_v60 = vld [vmem:[#allocation6 + $0xf0] sm:$0xff]   ;;  %v1229_v61 = vld [vmem:[#allocation2 + $0x120] sm:$0xff]  ;;  %v577_v1 = vrot.slane %v575_v55, 7  ;;  %770 = vst [vmem:[#allocation2 + $0x13c] sm:$0xf] %v740_v59  ;;  %v2142_v5 = vshll.u32 %v7556_v39, 16 }
  0x6d   : > { %v6964_v62 = vld [vmem:[#allocation2 + $0x124] ss:$12 sps:$4 sm:$0xff]   ;;  %v2442_v63 = vld [vmem:[#allocation2 + $0x120] sm:$0xf]  ;;  %2445 = vst [vmem:[#allocation2 + $0x12c] sm:$0xf] %v2313_v42  ;;  %v5962_v3 = vcombine.low %v1229_v61, %v1231_v49 }
  0x6e   : > { %1741 = vmatmul.mubr.bf16.vlgmr.msra.gmra.mxu0 %v5929_v37  ;;  %v2443_v2 = vsel %vm7522_vm7, %v2304_v41, %v2442_v63  ;;  %2514 = vst [vmem:[#allocation2 + $0x124] sm:$0xf] %v2482_v36  ;;  %2515 = vst [vmem:[#allocation2 + $0x130] sm:$0xf] %v2483_v43  ;;  %v660_v4 = vld [vmem:[#allocation2 + $0x30] sm:$0xf]  ;;  %1828 = vmatprep.mubr.bf16.mxu1 %v6964_v62  ;;  %v580_v14 = vor.u32 %v578_v56, %v577_v1 }
  0x6f   : > { %6398 = vmatpush3.bf16.msra.mxu0 %v6969_v21  ;;  %663 = vst [vmem:[#allocation2 + $0x3c] sm:$0xf] %v413_v0  ;;  %v585_v6 = vrot.slane %v583_v57, 7  ;;  %v741_v7 = vld [vmem:[%s7482_s4 + $0x64] sm:$0xf]  ;;  %v661_v10 = vsel %vm7522_vm7, %v404_v44, %v660_v4  ;;  %v7575_v11 = vrot.slane %v2139_v52, 7  ;;  %1829 = vmatmul.mubr.bf16.vlgmr.msra.gmra.mxu1 %v5962_v3 }
  0x70   : > { %6399 = vmatprep.subr.bf16.mxu0 %v6980_v48  ;;  %2444 = vst [vmem:[#allocation2 + $0x120] sm:$0xf] %v2443_v2  ;;  %v581_v12 = vrot.slane %v577_v1, 4  ;;  %771 = vst [vmem:[#allocation2 + $0x148] sm:$0xf] %v741_v7  ;;  %6663 = vmatpush3.bf16.msra.mxu1 %v6966_v50  ;;  %v6974_v27 = vld [vmem:[#allocation6 + $0xa8] sm:$0xff]  }
  0x71   : > { %v2100_v13 = vld [vmem:[%s7482_s4 + $0x68] sm:$0xf]  ;;  %662 = vst [vmem:[#allocation2 + $0x30] sm:$0xf] %v661_v10  ;;  %v588_v15 = vor.u32 %v586_v58, %v585_v6  ;;  %v354_v19 = vld [vmem:[%s7482_s4 + $0x10] sm:$0xf]  ;;  %6664 = vmatprep.subr.bf16.mxu1 %v9010_v20  ;;  %v2144_v33 = vor.u32 %v2142_v5, %v7575_v11 }
  0x72   : > { %v2315_v16 = vshrl.u32 %v2100_v13, 16  ;;  %v2318_v17 = vshll.u32 %v2100_v13, 16  ;;  %v260_v18 = vld [vmem:[#allocation2 + $0x48] sm:$0x1]  ;;  %v355_v24 = vld [vmem:[%s7482_s4 + $0x14] sm:$0xf] }
  0x73   : > { %6400 = vmatpush3.bf16.msra.mxu0 %v6981_v60  ;;  %v589_v21 = vsel %vm7510_vm4, %v581_v12, %v588_v15  ;;  %v261_v23 = vsel %vm7493_vm2, 0, %v260_v18  ;;  %v415_v25 = vshrl.u32 %v354_v19, 16  ;;  %v704_v26 = vld [vmem:[#allocation2 + $0x138] sm:$0xf]  ;;  %v418_v28 = vshll.u32 %v354_v19, 16  ;;  %v6989_v32 = vld [vmem:[#allocation6 + $0x128] sm:$0xff]  }
  0x74   : > { %v7582_v22 = vrot.slane %v2315_v16, 7  ;;  %707 = vst [vmem:[#allocation2 + $0x144] sm:$0xf] %v589_v21  ;;  %262 = vst [vmem:[#allocation2 + $0x48] sm:$0x1] %v261_v23  ;;  %v423_v30 = vshrl.u32 %v355_v24, 16  ;;  %v705_v34 = vsel %vm7522_vm7, %v580_v14, %v704_v26  ;;  %6665 = vmatpush3.bf16.msra.mxu1 %v6968_v8  ;;  %6401 = vmatprep.subr.bf16.mxu0 %v6989_v32 }
  0x75   : > { %v426_v31 = vshll.u32 %v355_v24, 16  ;;  %v417_v35 = vrot.slane %v415_v25, 7  ;;  %v720_v36 = vld [vmem:[%s7482_s4 + $0x10] sm:$0xf]  ;;  %v721_v37 = vld [vmem:[%s7482_s4 + $0x14] sm:$0xf]  ;;  %6666 = vmatprep.subr.bf16.mxu1 %v9010_v20 }
  0x76   : > { %v6990_v38 = vld [vmem:[#allocation6 + $0xe8] sm:$0xff]   ;;  %v1191_v39 = vld [vmem:[#allocation2 + $0x3c] sm:$0xff]  ;;  %706 = vst [vmem:[#allocation2 + $0x138] sm:$0xf] %v705_v34  ;;  %v425_v40 = vrot.slane %v423_v30, 7  ;;  %v2320_v51 = vor.u32 %v2318_v17, %v7582_v22  ;;  %s5759_s29 = sshll.u32 %s8851_s20, 4  ;;  %s8933_s29 = int_to_ptr.vmem [resolvable:$true] %s5759_s29 }
  0x77   : > { %750 = vst [vmem:[#allocation2 + $0x4c] sm:$0xf] %v720_v36  ;;  %751 = vst [vmem:[#allocation2 + $0x58] sm:$0xf] %v721_v37  ;;  %v7593_v41 = vld [vmem:[%s7482_s4 + $0x18] sm:$0xf]  ;;  %6402 = vmatpush3.bf16.msra.mxu0 %v6990_v38  ;;  %v420_v52 = vor.u32 %v418_v28, %v417_v35 }
  0x78   : > { %v293_v42 = vld [vmem:[#allocation2 + $0x150] sm:$0x1]  ;;  %v421_v43 = vrot.slane %v417_v35, 4  ;;  %v2155_v44 = vshrl.u32 %v7593_v41, 16  ;;  %v2158_v45 = vshll.u32 %v7593_v41, 16  ;;  %v428_v53 = vor.u32 %v426_v31, %v425_v40  ;;  %6667 = vmatpush3.bf16.msra.mxu1 %v6974_v27  ;;  %v6975_v61 = vld [vmem:[#allocation6 + $0xa0] sm:$0xff]  }
  0x79   : > { %v376_v47 = vld [vmem:[%s7482_s4 + $0x68] sm:$0xf]  ;;  %v1189_v48 = vld [vmem:[#allocation2 + $0x30] sm:$0xff]  ;;  %v294_v54 = vsel %vm7493_vm2, 0, %v293_v42  ;;  %v377_v58 = vld [vmem:[%s7482_s4 + $0x6c] sm:$0xf]  ;;  %6668 = vmatprep.subr.bf16.mxu1 %v9010_v20 }
  0x7a   : > { %v6970_v49 = vld [vmem:[#allocation2 + $0x34] ss:$12 sps:$4 sm:$0xff]   ;;  %v2402_v50 = vld [vmem:[#allocation2 + $0x30] sm:$0xf]  ;;  %v5932_v56 = vcombine.low %v1189_v48, %v1191_v39  ;;  %v7604_v57 = vrot.slane %v2155_v44, 7  ;;  %v591_v59 = vshrl.u32 %v376_v47, 16  ;;  %v429_v62 = vsel %vm7510_vm4, %v421_v43, %v428_v53 }
  0x7b   : > { %v2403_v55 = vsel %vm7522_vm7, %v2144_v33, %v2402_v50  ;;  %295 = vst [vmem:[#allocation2 + $0x150] sm:$0x1] %v294_v54  ;;  %v742_v60 = vld [vmem:[%s7482_s4 + $0x68] sm:$0xf]  ;;  %1748 = vmatprep.mubr.bf16.mxu0 %v6970_v49  ;;  %v594_v63 = vshll.u32 %v376_v47, 16  ;;  %v599_v0 = vshrl.u32 %v377_v58, 16 }
  0x7c   : > { %2404 = vst [vmem:[#allocation2 + $0x30] sm:$0xf] %v2403_v55  ;;  %v602_v1 = vshll.u32 %v377_v58, 16  ;;  %v743_v2 = vld [vmem:[%s7482_s4 + $0x6c] sm:$0xf]  ;;  %v1235_v3 = vld [vmem:[#allocation2 + $0x144] sm:$0xff]  ;;  %1749 = vmatmul.mubr.bf16.gmra.mxu0 %v5932_v56  ;;  %6669 = vmatpush3.bf16.msra.mxu1 %v6975_v61  ;;  %v2160_v30 = vor.u32 %v2158_v45, %v7604_v57 }
  0x7d   : > { %772 = vst [vmem:[#allocation2 + $0x154] sm:$0xf] %v742_v60  ;;  %v664_v4 = vld [vmem:[#allocation2 + $0x48] sm:$0xf]  ;;  %667 = vst [vmem:[#allocation2 + $0x54] sm:$0xf] %v429_v62  ;;  %6670 = vmatprep.subr.bf16.mxu1 %v9010_v20 }
  0x7e   : > { %v593_v5 = vrot.slane %v591_v59, 7  ;;  %773 = vst [vmem:[#allocation2 + $0x160] sm:$0xf] %v743_v2  ;;  %v2102_v6 = vld [vmem:[%s7482_s4 + $0x70] sm:$0xf]  ;;  %v665_v7 = vsel %vm7522_vm7, %v420_v52, %v664_v4  ;;  %v601_v8 = vrot.slane %v599_v0, 7 }
  0x7f   : > { %v2331_v10 = vshrl.u32 %v2102_v6, 16  ;;  %v2334_v12 = vshll.u32 %v2102_v6, 16  ;;  %v6982_v13 = vld [vmem:[#allocation6 + $0x98] sm:$0xff]   ;;  %v6996_v14 = vld [vmem:[#allocation6 + $0x120] sm:$0xff]   ;;  %666 = vst [vmem:[#allocation2 + $0x48] sm:$0xf] %v665_v7 }
  0x80   : > { %v1233_v15 = vld [vmem:[#allocation2 + $0x138] sm:$0xff]  ;;  %v596_v18 = vor.u32 %v594_v63, %v593_v5  ;;  %v597_v19 = vrot.slane %v593_v5, 4  ;;  %v604_v24 = vor.u32 %v602_v1, %v601_v8  ;;  %6403 = vmatprep.subr.bf16.mxu0 %v6996_v14  ;;  %v6997_v26 = vld [vmem:[#allocation6 + $0xe0] sm:$0xff]   ;;  %6671 = vmatpush3.bf16.msra.mxu1 %v6982_v13  ;;  %v6983_v36 = vld [vmem:[#allocation6 + $0x90] sm:$0xff]   ;;  %vm806_vm11 = vsmask.f32 3328 }
  0x81   : > { %v6972_v16 = vld [vmem:[#allocation2 + $0x13c] ss:$12 sps:$4 sm:$0xff]   ;;  %v2446_v17 = vld [vmem:[#allocation2 + $0x138] sm:$0xf]  ;;  %v5965_v23 = vcombine.low %v1233_v15, %v1235_v3  ;;  %v7617_v25 = vrot.slane %v2331_v10, 7  ;;  %6404 = vmatpush3.bf16.msra.mxu0 %v6997_v26  ;;  %6672 = vmatprep.subr.bf16.mxu1 %v9010_v20  ;;  %v7010_v0 = vld [vmem:[#allocation6 + $0x110] sm:$0xff]  }
  0x82   : > { %v2447_v21 = vsel %vm7522_vm7, %v2320_v51, %v2446_v17  ;;  %1836 = vmatprep.mubr.bf16.mxu1 %v6972_v16  ;;  %v605_v27 = vsel %vm7510_vm4, %v597_v19, %v604_v24  ;;  %v708_v28 = vld [vmem:[#allocation2 + $0x150] sm:$0xf]  ;;  %v263_v32 = vld [vmem:[#allocation2 + $0x60] sm:$0x1]  ;;  %v356_v33 = vld [vmem:[%s7482_s4 + $0x18] sm:$0xf] }
  0x83   : > { %2448 = vst [vmem:[#allocation2 + $0x138] sm:$0xf] %v2447_v21  ;;  %1837 = vmatmul.mubr.bf16.gmra.mxu1 %v5965_v23  ;;  %v709_v31 = vsel %vm7522_vm7, %v596_v18, %v708_v28  ;;  %711 = vst [vmem:[#allocation2 + $0x15c] sm:$0xf] %v605_v27  ;;  %v357_v34 = vld [vmem:[%s7482_s4 + $0x1c] sm:$0xf]  ;;  %v2336_v52 = vor.u32 %v2334_v12, %v7617_v25 }
  0x84   : > { %v1195_v35 = vld [vmem:[#allocation2 + $0x54] sm:$0xff]  ;;  %710 = vst [vmem:[#allocation2 + $0x150] sm:$0xf] %v709_v31  ;;  %v264_v37 = vsel %vm7493_vm2, 0, %v263_v32  ;;  %v431_v38 = vshrl.u32 %v356_v33, 16  ;;  %v434_v39 = vshll.u32 %v356_v33, 16  ;;  %6673 = vmatpush3.bf16.msra.mxu1 %v6983_v36  ;;  %vm7713_vm15 = vmand %vm653_vm5, %vm806_vm11 }
  0x85   : > { %v439_v40 = vshrl.u32 %v357_v34, 16  ;;  %265 = vst [vmem:[#allocation2 + $0x60] sm:$0x1] %v264_v37  ;;  %v442_v41 = vshll.u32 %v357_v34, 16  ;;  %v722_v42 = vld [vmem:[%s7482_s4 + $0x18] sm:$0xf]  ;;  %6674 = vmatprep.subr.bf16.mxu1 %v9010_v20 }
  0x86   : > { %v723_v43 = vld [vmem:[%s7482_s4 + $0x1c] sm:$0xf]  ;;  %v1193_v45 = vld [vmem:[#allocation2 + $0x48] sm:$0xff]  ;;  %v433_v49 = vrot.slane %v431_v38, 7  ;;  %752 = vst [vmem:[#allocation2 + $0x64] sm:$0xf] %v722_v42 }
  0x87   : > { %v7005_v44 = vld [vmem:[#allocation6 + $0x118] sm:$0xff]   ;;  %v2406_v48 = vld [vmem:[#allocation2 + $0x48] sm:$0xf]  ;;  %753 = vst [vmem:[#allocation2 + $0x70] sm:$0xf] %v723_v43  ;;  %v5935_v53 = vcombine.low %v1193_v45, %v1195_v35  ;;  %v441_v54 = vrot.slane %v439_v40, 7 }
  0x88   : > { %v6976_v47 = vld [vmem:[#allocation2 + $0x4c] ss:$12 sps:$4 sm:$0xff]   ;;  %v2407_v51 = vsel %vm7522_vm7, %v2160_v30, %v2406_v48  ;;  %v7636_v55 = vld [vmem:[%s7482_s4 + $0x20] sm:$0xf]  ;;  %v296_v56 = vld [vmem:[#allocation2 + $0x168] sm:$0x1]  ;;  %6405 = vmatprep.subr.bf16.mxu0 %v7005_v44  ;;  %v436_v59 = vor.u32 %v434_v39, %v433_v49 }
  0x89   : > { %v6988_v50 = vld [vmem:[#allocation6 + $0x88] sm:$0xff]   ;;  %v7006_v58 = vld [vmem:[#allocation6 + $0xd8] sm:$0xff]   ;;  %1756 = vmatprep.mubr.bf16.mxu0 %v6976_v47  ;;  %2408 = vst [vmem:[#allocation2 + $0x48] sm:$0xf] %v2407_v51  ;;  %v437_v60 = vrot.slane %v433_v49, 4  ;;  %v2171_v61 = vshrl.u32 %v7636_v55, 16  ;;  %v444_v1 = vor.u32 %v442_v41, %v441_v54 }
  0x8a   : > { %v2174_v62 = vshll.u32 %v7636_v55, 16  ;;  %v378_v63 = vld [vmem:[%s7482_s4 + $0x70] sm:$0xf]  ;;  %1757 = vmatmul.mubr.bf16.gmra.mxu0 %v5935_v53  ;;  %v297_v2 = vsel %vm7493_vm2, 0, %v296_v56  ;;  %v379_v3 = vld [vmem:[%s7482_s4 + $0x74] sm:$0xf]  ;;  %6675 = vmatpush3.bf16.msra.mxu1 %v6988_v50 }
  0x8b   : > { %v607_v4 = vshrl.u32 %v378_v63, 16  ;;  %v610_v5 = vshll.u32 %v378_v63, 16  ;;  %v1239_v6 = vld [vmem:[#allocation2 + $0x15c] sm:$0xff]  ;;  %298 = vst [vmem:[#allocation2 + $0x168] sm:$0x1] %v297_v2  ;;  %v615_v7 = vshrl.u32 %v379_v3, 16  ;;  %6406 = vmatpush3.bf16.msra.mxu0 %v7006_v58  ;;  %v445_v17 = vsel %vm7510_vm4, %v437_v60, %v444_v1  ;;  %6676 = vmatprep.subr.bf16.mxu1 %v9010_v20 }
  0x8c   : > { %v618_v8 = vshll.u32 %v379_v3, 16  ;;  %v744_v10 = vld [vmem:[%s7482_s4 + $0x70] sm:$0xf]  ;;  %v6991_v12 = vld [vmem:[#allocation6 + $0x80] sm:$0xff]   ;;  %v7648_v19 = vld [vmem:[#allocation6 + $0x178] sm:$0xff]   ;;  %6407 = vmatprep.subr.bf16.mxu0 %v7010_v0  ;;  %v7652_v26 = vrot.slane %v2171_v61, 7 }
  0x8d   : > { %v7011_v13 = vld [vmem:[#allocation6 + $0xd0] sm:$0xff]   ;;  %v609_v18 = vrot.slane %v607_v4, 7  ;;  %774 = vst [vmem:[#allocation2 + $0x16c] sm:$0xf] %v744_v10  ;;  %v668_v24 = vld [vmem:[#allocation2 + $0x60] sm:$0xf] }
  0x8e   : > { %v1237_v14 = vld [vmem:[#allocation2 + $0x150] sm:$0xff]  ;;  %671 = vst [vmem:[#allocation2 + $0x6c] sm:$0xf] %v445_v17  ;;  %v617_v27 = vrot.slane %v615_v7, 7  ;;  %v669_v30 = vsel %vm7522_vm7, %v436_v59, %v668_v24  ;;  %v2104_v32 = vld [vmem:[%s7482_s4 + $0x78] sm:$0xf]  ;;  %6677 = vmatpush3.bf16.msra.mxu1 %v6991_v12  ;;  %v2176_v47 = vor.u32 %v2174_v62, %v7652_v26 }
  0x8f   : > { %v6978_v15 = vld [vmem:[#allocation2 + $0x154] ss:$12 sps:$4 sm:$0xff]   ;;  %v2450_v16 = vld [vmem:[#allocation2 + $0x150] sm:$0xf]  ;;  %v5968_v23 = vcombine.low %v1237_v14, %v1239_v6  ;;  %v613_v31 = vrot.slane %v609_v18, 4  ;;  %v7016_v34 = vld [vmem:[#allocation6 + $0x108] sm:$0xff]   ;;  %v612_v35 = vor.u32 %v610_v5, %v609_v18  ;;  %6408 = vmatpush3.bf16.msra.mxu0 %v7011_v13  ;;  %6738 = vmatprep.subr.bf16.mxu1 %v7648_v19 }
  0x90   : > { %v2451_v21 = vsel %vm7522_vm7, %v2336_v52, %v2450_v16  ;;  %v745_v28 = vld [vmem:[%s7482_s4 + $0x74] sm:$0xf]  ;;  %1844 = vmatprep.mubr.bf16.mxu1 %v6978_v15  ;;  %v2105_v33 = vld [vmem:[%s7482_s4 + $0x7c] sm:$0xf]  ;;  %670 = vst [vmem:[#allocation2 + $0x60] sm:$0xf] %v669_v30  ;;  %v620_v36 = vor.u32 %v618_v8, %v617_v27  ;;  %6409 = vmatprep.subr.bf16.mxu0 %v7016_v34 }
  0x91   : > { %2452 = vst [vmem:[#allocation2 + $0x150] sm:$0xf] %v2451_v21  ;;  %775 = vst [vmem:[#allocation2 + $0x178] sm:$0xf] %v745_v28  ;;  %1845 = vmatmul.mubr.bf16.gmra.mxu1 %v5968_v23  ;;  %v2347_v37 = vshrl.u32 %v2104_v32, 16  ;;  %v2355_v38 = vshrl.u32 %v2105_v33, 16 }
  0x92   : > { %v7019_v39 = vld [vmem:[#allocation6 + $0xc8] sm:$0xff]   ;;  %v2358_v40 = vshll.u32 %v2105_v33, 16  ;;  %v621_v41 = vsel %vm7510_vm4, %v613_v31, %v620_v36  ;;  %v2350_v49 = vshll.u32 %v2104_v32, 16  ;;  %v7025_v50 = vld [vmem:[#allocation6 + $0x100] sm:$0xff]   ;;  %v266_v53 = vld [vmem:[#allocation2 + $0x78] sm:$0x1] }
  0x93   : > { %v2349_v42 = vrot.slane %v2347_v37, 7  ;;  %v2357_v43 = vrot.slane %v2355_v38, 7  ;;  %v712_v45 = vld [vmem:[#allocation2 + $0x168] sm:$0xf]  ;;  %715 = vst [vmem:[#allocation2 + $0x174] sm:$0xf] %v621_v41  ;;  %6410 = vmatpush3.bf16.msra.mxu0 %v7019_v39 }
  0x94   : > { %v713_v48 = vsel %vm7522_vm7, %v612_v35, %v712_v45  ;;  %v267_v55 = vsel %vm7493_vm2, 0, %v266_v53  ;;  %v358_v56 = vld [vmem:[%s7482_s4 + $0x20] sm:$0xf]  ;;  %v359_v58 = vld [vmem:[%s7482_s4 + $0x24] sm:$0xf]  ;;  %6411 = vmatprep.subr.bf16.mxu0 %v7025_v50  ;;  %s5741_s25 = scalar_lea.sflag [#allocation5], %s7478_s26 }
  0x95   : > { %v1199_v51 = vld [vmem:[#allocation2 + $0x6c] sm:$0xff]  ;;  %714 = vst [vmem:[#allocation2 + $0x168] sm:$0xf] %v713_v48  ;;  %v2353_v52 = vrot.slane %v2349_v42, 4  ;;  %v2360_v54 = vor.u32 %v2358_v40, %v2357_v43  ;;  %v7026_v59 = vld [vmem:[#allocation6 + $0xc0] sm:$0xff]   ;;  %v447_v63 = vshrl.u32 %v358_v56, 16  ;;  %v2352_v7 = vor.u32 %v2350_v49, %v2349_v42 }
  0x96   : > { %v6984_v61 = vld [vmem:[#allocation2 + $0x64] ss:$12 sps:$4 sm:$0xff]   ;;  %268 = vst [vmem:[#allocation2 + $0x78] sm:$0x1] %v267_v55  ;;  %vm807_vm12 = vsmask.f32 7440 }
  0x97   : > { %v1197_v60 = vld [vmem:[#allocation2 + $0x60] sm:$0xff]  ;;  %v2488_v1 = vld [vmem:[%s7482_s4 + $0x78] sm:$0xf]  ;;  %v450_v3 = vshll.u32 %v358_v56, 16  ;;  %v455_v4 = vshrl.u32 %v359_v58, 16  ;;  %6412 = vmatpush3.bf16.msra.mxu0 %v7026_v59  ;;  %1764 = vmatprep.mubr.bf16.mxu0 %v6984_v61  ;;  %v449_v8 = vrot.slane %v447_v63, 7  ;;  %v2361_v15 = vsel %vm7510_vm4, %v2353_v52, %v2360_v54  ;;  %vm7704_vm14 = vmor %vm806_vm11, %vm807_vm12 }
  0x98   : > { %v2410_v62 = vld [vmem:[#allocation2 + $0x60] sm:$0xf]  ;;  %v5938_v2 = vcombine.low %v1197_v60, %v1199_v51  ;;  %v725_v6 = vld [vmem:[%s7482_s4 + $0x24] sm:$0xf]  ;;  %v458_v10 = vshll.u32 %v359_v58, 16  ;;  %6786 = vmatprep.subr.bf16.mxu0 %v9010_v20  ;;  %s7226_s8 = scalar_lea.vmem %s8933_s29, 4096 }
  0x99   : > { %v2411_v0 = vsel %vm7522_vm7, %v2176_v47, %v2410_v62  ;;  %v724_v5 = vld [vmem:[%s7482_s4 + $0x20] sm:$0xf]  ;;  %755 = vst [vmem:[#allocation2 + $0x88] sm:$0xf] %v725_v6  ;;  %v2084_v12 = vld [vmem:[%s7482_s4 + $0x28] sm:$0xf]  ;;  %v452_v23 = vor.u32 %v450_v3, %v449_v8  ;;  %p7227_p3 = scmp.ne.s32.totalorder %s8933_s29, %s7226_s8 }
  0x9a   : > { %2412 = vst [vmem:[#allocation2 + $0x60] sm:$0xf] %v2411_v0  ;;  %754 = vst [vmem:[#allocation2 + $0x7c] sm:$0xf] %v724_v5  ;;  %v305_v13 = vld [vmem:[#allocation2 + $0x2c] sm:$0x8]  ;;  %1765 = vmatmul.mubr.bf16.gmra.mxu0 %v5938_v2 }
  0x9b   : > { %v1243_v14 = vld [vmem:[#allocation2 + $0x174] sm:$0xff]  ;;  %v2489_v16 = vld [vmem:[%s7482_s4 + $0x7c] sm:$0xf]  ;;  %v457_v17 = vrot.slane %v455_v4, 7  ;;  %v2187_v18 = vshrl.u32 %v2084_v12, 16  ;;  %v306_v21 = vsel %vm7664_vm10, 0, %v305_v13 }
  0x9c   : > { %v453_v24 = vrot.slane %v449_v8, 4  ;;  %v2190_v27 = vshll.u32 %v2084_v12, 16  ;;  %307 = vst [vmem:[#allocation2 + $0x2c] sm:$0x8] %v306_v21  ;;  %v776_v28 = vld [vmem:[%s7482_s4] sm:$0xf] }
  0x9d   : > { %v777_v30 = vld [vmem:[%s7482_s4 + $0x4] sm:$0xf]  ;;  %v1241_v31 = vld [vmem:[#allocation2 + $0x168] sm:$0xff]  ;;  %v460_v34 = vor.u32 %v458_v10, %v457_v17  ;;  %v7690_v35 = vrot.slane %v2187_v18, 7  ;;  %2457 = vst [vmem:[#allocation2 + $0x174] sm:$0xf] %v2361_v15 }
  0x9e   : > { %v6986_v32 = vld [vmem:[#allocation2 + $0x16c] ss:$12 sps:$4 sm:$0xff]   ;;  %v2454_v33 = vld [vmem:[#allocation2 + $0x168] sm:$0xf]  ;;  %v5971_v37 = vcombine.low %v1241_v31, %v1243_v14  ;;  %v810_v38 = vshrl.u32 %v776_v28, 16  ;;  %v813_v39 = vshll.u32 %v776_v28, 16 }
  0x9f   : > { %v2455_v36 = vsel %vm7522_vm7, %v2352_v7, %v2454_v33  ;;  %2520 = vst [vmem:[#allocation2 + $0x16c] sm:$0xf] %v2488_v1  ;;  %2521 = vst [vmem:[#allocation2 + $0x178] sm:$0xf] %v2489_v16  ;;  %v2524_v40 = vld [vmem:[%s7482_s4 + $0x8] sm:$0xf]  ;;  %1852 = vmatprep.mubr.bf16.mxu1 %v6986_v32  ;;  %v461_v42 = vsel %vm7510_vm4, %v453_v24, %v460_v34  ;;  %v2192_v1 = vor.u32 %v2190_v27, %v7690_v35 }
  0xa0   : > { %v2525_v41 = vld [vmem:[%s7482_s4 + $0xc] sm:$0xf]  ;;  %2456 = vst [vmem:[#allocation2 + $0x168] sm:$0xf] %v2455_v36  ;;  %v672_v43 = vld [vmem:[#allocation2 + $0x78] sm:$0xf]  ;;  %1853 = vmatmul.mubr.bf16.gmra.mxu1 %v5971_v37 }
  0xa1   : > { %v819_v45 = vshll.u32 %v777_v30, 16  ;;  %v823_v47 = vshrl.u32 %v777_v30, 16  ;;  %v673_v48 = vsel %vm7522_vm7, %v452_v23, %v672_v43  ;;  %675 = vst [vmem:[#allocation2 + $0x84] sm:$0xf] %v461_v42  ;;  %v812_v49 = vrot.slane %v810_v38, 4  ;;  %6678 = vmatprep.mubr.msk.bf16.mxu1 %vm7331_vm13, %v9010_v20  ;;  %p9053_p11 = scmp.ne.s32.totalorder %s9017_s6, 0 }
  0xa2   : > { %v815_v50 = vrot.slane %v813_v39, 5  ;;  %v2574_v51 = vshrl.u32 %v2524_v40, 16  ;;  %674 = vst [vmem:[#allocation2 + $0x78] sm:$0xf] %v673_v48  ;;  %v2577_v54 = vshll.u32 %v2524_v40, 16  ;;  %v2583_v55 = vshll.u32 %v2525_v41, 16 }
  0xa3   : > { %v821_v52 = vrot.slane %v819_v45, 5  ;;  %v825_v53 = vrot.slane %v823_v47, 4  ;;  %v2587_v59 = vshrl.u32 %v2525_v41, 16  ;;  %v1126_v62 = vld [vmem:[#allocation2 + $0x2c] sm:$0xf]  ;;  %p7228_p7 = pnand %p7227_p3, %p9053_p11  ;;  %s7332_s9 = smov [#allocation8]  }
  0xa4   : > { %v816_v56 = vor.u32 %v815_v50, %v812_v49  ;;  %v2576_v58 = vrot.slane %v2574_v51, 4  ;;  %v2579_v63 = vrot.slane %v2577_v54, 5  ;;  %v7708_v0 = vrot.slane %v2583_v55, 5  ;;  %v269_v5 = vld [vmem:[#allocation2 + $0x90] sm:$0x1]  ;;  %s7230_s7 = sshll.u32 %s7332_s9, 4  ;;  %s7231_s7 = int_to_ptr.vmem [resolvable:$false] %s7230_s7 }
  0xa5   : > { %v826_v61 = vor.u32 %v825_v53, %v821_v52  ;;  %v2589_v4 = vrot.slane %v2587_v59, 4  ;;  %v360_v6 = vld [vmem:[%s7482_s4 + $0x28] sm:$0xf]  ;;  %v270_v10 = vsel %vm7493_vm2, 0, %v269_v5  ;;  %v361_v12 = vld [vmem:[%s7482_s4 + $0x2c] sm:$0xf]  ;;  %p7229_p9 = pneg %p7228_p7  ;;  %p7233_p10 = scmp.lt.s32.totalorder %s8933_s29, %s7231_s7 }
  0xa6   : > { %v817_v2 = vrot.slane %v816_v56, 4  ;;  %v2580_v8 = vor.u32 %v2579_v63, %v2576_v58  ;;  %v463_v13 = vshrl.u32 %v360_v6, 16  ;;  %271 = vst [vmem:[#allocation2 + $0x90] sm:$0x1] %v270_v10  ;;  %v466_v16 = vshll.u32 %v360_v6, 16  ;;  %v7003_v5 = vld [vmem:[#allocation6 + $0x170] sm:$0xff]  }
  0xa7   : > { %v827_v7 = vrot.slane %v826_v61, 4  ;;  %v2590_v15 = vor.u32 %v2589_v4, %v7708_v0  ;;  %v471_v17 = vshrl.u32 %v361_v12, 16  ;;  %v726_v18 = vld [vmem:[%s7482_s4 + $0x28] sm:$0xf]  ;;  %v727_v21 = vld [vmem:[%s7482_s4 + $0x2c] sm:$0xf] }
  0xa8   : > { %v822_v14 = vsel %vm7704_vm14, %v817_v2, %v821_v52  ;;  %v1203_v23 = vld [vmem:[#allocation2 + $0x84] sm:$0xff]  ;;  %v2581_v27 = vrot.slane %v2580_v8, 4  ;;  %v465_v28 = vrot.slane %v463_v13, 7  ;;  %v474_v30 = vshll.u32 %v361_v12, 16  ;;  %756 = vst [vmem:[#allocation2 + $0x94] sm:$0xf] %v726_v18 }
  0xa9   : > { %1124 = vst [vmem:[#allocation2 + $0x20] sm:$0xf] %v822_v14  ;;  %v1127_v24 = vsel %vm7713_vm15, %v827_v7, %v1126_v62  ;;  %757 = vst [vmem:[#allocation2 + $0xa0] sm:$0xf] %v727_v21  ;;  %v7729_v31 = vld [vmem:[%s7482_s4 + $0x30] sm:$0xf] }
  0xaa   : > { %v1201_v32 = vld [vmem:[#allocation2 + $0x78] sm:$0xff]  ;;  %1128 = vst [vmem:[#allocation2 + $0x2c] sm:$0xf] %v1127_v24  ;;  %v2591_v36 = vrot.slane %v2590_v15, 4  ;;  %v2586_v39 = vsel %vm7704_vm14, %v2581_v27, %v7708_v0  ;;  %v468_v40 = vor.u32 %v466_v16, %v465_v28  ;;  %v308_v41 = vld [vmem:[#allocation2 + $0x44] sm:$0x8] }
  0xab   : > { %v6992_v33 = vld [vmem:[#allocation2 + $0x7c] ss:$12 sps:$4 sm:$0xff]   ;;  %v2414_v34 = vld [vmem:[#allocation2 + $0x78] sm:$0xf]  ;;  %v5941_v38 = vcombine.low %v1201_v32, %v1203_v23  ;;  %v779_v43 = vld [vmem:[%s7482_s4 + $0xc] sm:$0xf] }
  0xac   : > { %v2415_v37 = vsel %vm7522_vm7, %v2192_v1, %v2414_v34  ;;  %v778_v42 = vld [vmem:[%s7482_s4 + $0x8] sm:$0xf]  ;;  %1772 = vmatprep.mubr.bf16.mxu0 %v6992_v33  ;;  %v469_v45 = vrot.slane %v465_v28, 4  ;;  %v473_v47 = vrot.slane %v471_v17, 7  ;;  %v2203_v48 = vshrl.u32 %v7729_v31, 16  ;;  %s7232_s10 = scalar_lea.vmem %s7231_s7, 8192 }
  0xad   : > { %2416 = vst [vmem:[#allocation2 + $0x78] sm:$0xf] %v2415_v37  ;;  %v2206_v49 = vshll.u32 %v7729_v31, 16  ;;  %v2526_v50 = vld [vmem:[%s7482_s4 + $0x10] sm:$0xf]  ;;  %1773 = vmatmul.mubr.bf16.gmra.mxu0 %v5941_v38  ;;  %v309_v51 = vsel %vm7664_vm10, 0, %v308_v41  ;;  %p7234_p12 = scmp.lt.s32.totalorder %s7232_s10, %s7226_s8 }
  0xae   : > { %v829_v52 = vshrl.u32 %v778_v42, 16  ;;  %v832_v53 = vshll.u32 %v778_v42, 16  ;;  %v838_v54 = vshll.u32 %v779_v43, 16  ;;  %v476_v55 = vor.u32 %v474_v30, %v473_v47  ;;  %310 = vst [vmem:[#allocation2 + $0x44] sm:$0x8] %v309_v51 }
  0xaf   : > { %v7743_v56 = vrot.slane %v2203_v48, 7  ;;  %v842_v58 = vshrl.u32 %v779_v43, 16  ;;  %v2527_v59 = vld [vmem:[%s7482_s4 + $0x14] sm:$0xf]  ;;  %v2593_v61 = vshrl.u32 %v2526_v50, 16  ;;  %v2596_v4 = vshll.u32 %v2526_v50, 16  ;;  %p7235_p13 = por %p7234_p12, %p7233_p10 }
  0xb0   : > { %v272_v62 = vld [vmem:[#allocation2 + $0xa8] sm:$0x1]  ;;  %v676_v63 = vld [vmem:[#allocation2 + $0x90] sm:$0xf]  ;;  %v831_v0 = vrot.slane %v829_v52, 4  ;;  %v834_v1 = vrot.slane %v832_v53, 5  ;;  %v477_v6 = vsel %vm7510_vm4, %v469_v45, %v476_v55 }
  0xb1   : > { %v840_v2 = vrot.slane %v838_v54, 5  ;;  %v677_v7 = vsel %vm7522_vm7, %v468_v40, %v676_v63  ;;  %v844_v8 = vrot.slane %v842_v58, 4  ;;  %v362_v10 = vld [vmem:[%s7482_s4 + $0x30] sm:$0xf]  ;;  %v6994_v12 = vld [vmem:[#allocation2 + $0x20] ss:$12 sps:$4 sm:$0xff]   ;;  %v2208_v43 = vor.u32 %v2206_v49, %v7743_v56  ;;  %p7236_p0 = pnand %p7235_p13, %p7229_p9 }
  0xb2   : > { %v2895_v13 = vld [vmem:[#allocation2 + $0x2c] sm:$0xf]  ;;  %678 = vst [vmem:[#allocation2 + $0x90] sm:$0xf] %v677_v7  ;;  %679 = vst [vmem:[#allocation2 + $0x9c] sm:$0xf] %v477_v6  ;;  %v835_v14 = vor.u32 %v834_v1, %v831_v0  ;;  %6679 = vmatmul.mubr.bf16.vlgmr.msra.gmra.mxu1 %v6994_v12 }
  0xb3   : > { %2894 = vst [vmem:[#allocation2 + $0x20] sm:$0xf] %v2586_v39  ;;  %v2896_v15 = vsel %vm7713_vm15, %v2591_v36, %v2895_v13  ;;  %v845_v16 = vor.u32 %v844_v8, %v840_v2  ;;  %v2595_v17 = vrot.slane %v2593_v61, 4  ;;  %v2598_v18 = vrot.slane %v2596_v4, 5  ;;  %v363_v21 = vld [vmem:[%s7482_s4 + $0x34] sm:$0xf]  ;;  %6739 = vmatpush3.bf16.msra.mxu1 %v7648_v19  ;;  %6682 = vmatprep.mubr.msk.bf16.mxu1 %vm7331_vm13, %v9010_v20 }
  0xb4   : > { %v728_v23 = vld [vmem:[%s7482_s4 + $0x30] sm:$0xf]  ;;  %2897 = vst [vmem:[#allocation2 + $0x2c] sm:$0xf] %v2896_v15  ;;  %v836_v24 = vrot.slane %v835_v14, 4  ;;  %v2602_v27 = vshll.u32 %v2527_v59, 16  ;;  %6740 = vmatprep.subr.bf16.mxu1 %v7003_v5 }
  0xb5   : > { %v2606_v28 = vshrl.u32 %v2527_v59, 16  ;;  %v273_v30 = vsel %vm7493_vm2, 0, %v272_v62  ;;  %v729_v31 = vld [vmem:[%s7482_s4 + $0x34] sm:$0xf]  ;;  %758 = vst [vmem:[#allocation2 + $0xac] sm:$0xf] %v728_v23  ;;  %v2599_v33 = vor.u32 %v2598_v18, %v2595_v17 }
  0xb6   : > { %v846_v32 = vrot.slane %v845_v16, 4  ;;  %274 = vst [vmem:[#allocation2 + $0xa8] sm:$0x1] %v273_v30  ;;  %v479_v34 = vshrl.u32 %v362_v10, 16  ;;  %v482_v36 = vshll.u32 %v362_v10, 16  ;;  %v841_v38 = vsel %vm7704_vm14, %v836_v24, %v840_v2  ;;  %v7012_v19 = vld [vmem:[#allocation6 + $0x168] sm:$0xff]  }
  0xb7   : > { %759 = vst [vmem:[#allocation2 + $0xb8] sm:$0xf] %v729_v31  ;;  %v7762_v37 = vld [vmem:[%s7482_s4 + $0x38] sm:$0xf]  ;;  %v1130_v39 = vld [vmem:[#allocation2 + $0x44] sm:$0xf]  ;;  %6741 = vmatpush3.bf16.msra.mxu1 %v7003_v5 }
  0xb8   : > { %v2604_v40 = vrot.slane %v2602_v27, 5  ;;  %v2608_v41 = vrot.slane %v2606_v28, 4  ;;  %v487_v42 = vshrl.u32 %v363_v21, 16  ;;  %1129 = vst [vmem:[#allocation2 + $0x38] sm:$0xf] %v841_v38  ;;  %v1131_v45 = vsel %vm7713_vm15, %v846_v32, %v1130_v39  ;;  %v7021_v54 = vld [vmem:[#allocation6 + $0x160] sm:$0xff]   ;;  %6742 = vmatprep.subr.bf16.mxu1 %v7012_v19 }
  0xb9   : > { %v481_v47 = vrot.slane %v479_v34, 7  ;;  %v490_v48 = vshll.u32 %v363_v21, 16  ;;  %1132 = vst [vmem:[#allocation2 + $0x44] sm:$0xf] %v1131_v45  ;;  %v2600_v50 = vrot.slane %v2599_v33, 4  ;;  %v2219_v53 = vshrl.u32 %v7762_v37, 16 }
  0xba   : > { %v2609_v51 = vor.u32 %v2608_v41, %v2604_v40  ;;  %v489_v52 = vrot.slane %v487_v42, 7  ;;  %v1205_v55 = vld [vmem:[#allocation2 + $0x90] sm:$0xff]  ;;  %v1207_v58 = vld [vmem:[#allocation2 + $0x9c] sm:$0xff]  ;;  %v2222_v2 = vshll.u32 %v7762_v37, 16  ;;  %v2528_v17 = vld [vmem:[%s7482_s4 + $0x18] sm:$0xf] }
  0xbb   : > { %v6998_v59 = vld [vmem:[#allocation2 + $0x94] ss:$12 sps:$4 sm:$0xff]   ;;  %v484_v61 = vor.u32 %v482_v36, %v481_v47  ;;  %v485_v49 = vrot.slane %v481_v47, 4  ;;  %v2418_v62 = vld [vmem:[#allocation2 + $0x90] sm:$0xf]  ;;  %v5944_v63 = vcombine.low %v1205_v55, %v1207_v58  ;;  %v7773_v7 = vrot.slane %v2219_v53, 7  ;;  %6743 = vmatpush3.bf16.msra.mxu1 %v7012_v19 }
  0xbc   : > { %v2610_v0 = vrot.slane %v2609_v51, 4  ;;  %v492_v1 = vor.u32 %v490_v48, %v489_v52  ;;  %v311_v4 = vld [vmem:[#allocation2 + $0x5c] sm:$0x8]  ;;  %1780 = vmatprep.mubr.bf16.mxu0 %v6998_v59  ;;  %v2419_v6 = vsel %vm7522_vm7, %v2208_v43, %v2418_v62  ;;  %v780_v5 = vld [vmem:[%s7482_s4 + $0x10] sm:$0xf]  ;;  %v2605_v12 = vsel %vm7704_vm14, %v2600_v50, %v2604_v40  ;;  %6744 = vmatprep.subr.bf16.mxu1 %v7021_v54 }
  0xbd   : > { %v312_v8 = vsel %vm7664_vm10, 0, %v311_v4  ;;  %v781_v10 = vld [vmem:[%s7482_s4 + $0x14] sm:$0xf]  ;;  %2420 = vst [vmem:[#allocation2 + $0x90] sm:$0xf] %v2419_v6  ;;  %1781 = vmatmul.mubr.bf16.gmra.mxu0 %v5944_v63  ;;  %v848_v15 = vshrl.u32 %v780_v5, 16  ;;  %v2224_v45 = vor.u32 %v2222_v2, %v7773_v7 }
  0xbe   : > { %v493_v13 = vsel %vm7510_vm4, %v485_v49, %v492_v1  ;;  %v680_v14 = vld [vmem:[#allocation2 + $0xa8] sm:$0xf]  ;;  %313 = vst [vmem:[#allocation2 + $0x5c] sm:$0x8] %v312_v8  ;;  %v851_v16 = vshll.u32 %v780_v5, 16  ;;  %v857_v21 = vshll.u32 %v781_v10, 16 }
  0xbf   : > { %v681_v18 = vsel %vm7522_vm7, %v484_v61, %v680_v14  ;;  %683 = vst [vmem:[#allocation2 + $0xb4] sm:$0xf] %v493_v13  ;;  %v861_v23 = vshrl.u32 %v781_v10, 16  ;;  %v2529_v24 = vld [vmem:[%s7482_s4 + $0x1c] sm:$0xf]  ;;  %v2612_v27 = vshrl.u32 %v2528_v17, 16  ;;  %6745 = vmatpush3.bf16.msra.mxu1 %v7021_v54 }
  0xc0   : > { %v7030_v28 = vld [vmem:[#allocation6 + $0x158] sm:$0xff]   ;;  %682 = vst [vmem:[#allocation2 + $0xa8] sm:$0xf] %v681_v18  ;;  %v850_v30 = vrot.slane %v848_v15, 4  ;;  %v853_v31 = vrot.slane %v851_v16, 5  ;;  %v2615_v32 = vshll.u32 %v2528_v17, 16 }
  0xc1   : > { %v2621_v33 = vshll.u32 %v2529_v24, 16  ;;  %v7000_v34 = vld [vmem:[#allocation2 + $0x38] ss:$12 sps:$4 sm:$0xff]   ;;  %v859_v39 = vrot.slane %v857_v21, 5  ;;  %v863_v40 = vrot.slane %v861_v23, 4  ;;  %v2614_v41 = vrot.slane %v2612_v27, 4  ;;  %6746 = vmatprep.subr.bf16.mxu1 %v7030_v28 }
  0xc2   : > { %v2899_v36 = vld [vmem:[#allocation2 + $0x44] sm:$0xf]  ;;  %2898 = vst [vmem:[#allocation2 + $0x38] sm:$0xf] %v2605_v12  ;;  %v854_v38 = vor.u32 %v853_v31, %v850_v30  ;;  %6683 = vmatmul.mubr.bf16.gmra.mxu1 %v7000_v34  ;;  %v2617_v42 = vrot.slane %v2615_v32, 5  ;;  %v2625_v43 = vshrl.u32 %v2529_v24, 16 }
  0xc3   : > { %v2900_v37 = vsel %vm7713_vm15, %v2610_v0, %v2899_v36  ;;  %v7789_v19 = vrot.slane %v2621_v33, 5  ;;  %6686 = vmatprep.mubr.msk.bf16.mxu1 %vm7331_vm13, %v9010_v20  ;;  %v864_v48 = vor.u32 %v863_v40, %v859_v39  ;;  %v275_v50 = vld [vmem:[#allocation2 + $0xc0] sm:$0x1]  ;;  %v7038_v51 = vld [vmem:[#allocation6 + $0x150] sm:$0xff]   ;;  %v364_v59 = vld [vmem:[%s7482_s4 + $0x38] sm:$0xf]  ;;  %6747 = vmatpush3.bf16.msra.mxu1 %v7030_v28 }
  0xc4   : > { %2901 = vst [vmem:[#allocation2 + $0x44] sm:$0xf] %v2900_v37  ;;  %v855_v47 = vrot.slane %v854_v38, 4  ;;  %v2618_v53 = vor.u32 %v2617_v42, %v2614_v41  ;;  %v2627_v55 = vrot.slane %v2625_v43, 4  ;;  %v276_v58 = vsel %vm7493_vm2, 0, %v275_v50  ;;  %6748 = vmatprep.subr.bf16.mxu1 %v7038_v51 }
  0xc5   : > { %v1134_v52 = vld [vmem:[#allocation2 + $0x5c] sm:$0xf]  ;;  %v865_v62 = vrot.slane %v864_v48, 4  ;;  %277 = vst [vmem:[#allocation2 + $0xc0] sm:$0x1] %v276_v58  ;;  %v495_v0 = vshrl.u32 %v364_v59, 16 }
  0xc6   : > { %v1211_v61 = vld [vmem:[#allocation2 + $0xb4] sm:$0xff]  ;;  %v860_v49 = vsel %vm7704_vm14, %v855_v47, %v859_v39  ;;  %v365_v63 = vld [vmem:[%s7482_s4 + $0x3c] sm:$0xf]  ;;  %v498_v54 = vshll.u32 %v364_v59, 16  ;;  %v2628_v6 = vor.u32 %v2627_v55, %v7789_v19  ;;  %v2619_v15 = vrot.slane %v2618_v53, 4 }
  0xc7   : > { %v1209_v1 = vld [vmem:[#allocation2 + $0xa8] sm:$0xff]  ;;  %1133 = vst [vmem:[#allocation2 + $0x50] sm:$0xf] %v860_v49  ;;  %v1135_v10 = vsel %vm7713_vm15, %v865_v62, %v1134_v52  ;;  %v497_v12 = vrot.slane %v495_v0, 7  ;;  %v730_v13 = vld [vmem:[%s7482_s4 + $0x38] sm:$0xf]  ;;  %6749 = vmatpush3.bf16.msra.mxu1 %v7038_v51 }
  0xc8   : > { %v7001_v2 = vld [vmem:[#allocation2 + $0xac] ss:$12 sps:$4 sm:$0xff]   ;;  %v2422_v4 = vld [vmem:[#allocation2 + $0xa8] sm:$0xf]  ;;  %v5947_v5 = vcombine.low %v1209_v1, %v1211_v61  ;;  %v731_v14 = vld [vmem:[%s7482_s4 + $0x3c] sm:$0xf]  ;;  %v2624_v48 = vsel %vm7704_vm14, %v2619_v15, %v7789_v19 }
  0xc9   : > { %v2423_v8 = vsel %vm7522_vm7, %v2224_v45, %v2422_v4  ;;  %1788 = vmatprep.mubr.bf16.mxu0 %v7001_v2  ;;  %1136 = vst [vmem:[#allocation2 + $0x5c] sm:$0xf] %v1135_v10  ;;  %v2629_v16 = vrot.slane %v2628_v6, 4  ;;  %v503_v17 = vshrl.u32 %v365_v63, 16  ;;  %v506_v18 = vshll.u32 %v365_v63, 16  ;;  %v7046_v61 = vld [vmem:[#allocation6 + $0x148] sm:$0xff]  }
  0xca   : > { %2424 = vst [vmem:[#allocation2 + $0xa8] sm:$0xf] %v2423_v8  ;;  %760 = vst [vmem:[#allocation2 + $0xc4] sm:$0xf] %v730_v13  ;;  %v2090_v21 = vld [vmem:[%s7482_s4 + $0x40] sm:$0xf]  ;;  %1789 = vmatmul.mubr.bf16.gmra.mxu0 %v5947_v5  ;;  %v500_v23 = vor.u32 %v498_v54, %v497_v12  ;;  %6750 = vmatprep.subr.bf16.mxu1 %v7046_v61 }
  0xcb   : > { %761 = vst [vmem:[#allocation2 + $0xd0] sm:$0xf] %v731_v14  ;;  %v501_v24 = vrot.slane %v497_v12, 4  ;;  %v2235_v27 = vshrl.u32 %v2090_v21, 16  ;;  %v2238_v30 = vshll.u32 %v2090_v21, 16  ;;  %v505_v31 = vrot.slane %v503_v17, 7  ;;  %6751 = vmatpush3.bf16.msra.mxu1 %v7046_v61 }
  0xcc   : > { %v314_v28 = vld [vmem:[#allocation2 + $0x74] sm:$0x8]  ;;  %v782_v33 = vld [vmem:[%s7482_s4 + $0x18] sm:$0xf]  ;;  %v783_v34 = vld [vmem:[%s7482_s4 + $0x1c] sm:$0xf] }
  0xcd   : > { %v315_v32 = vsel %vm7664_vm10, 0, %v314_v28  ;;  %v7812_v36 = vrot.slane %v2235_v27, 7  ;;  %v867_v37 = vshrl.u32 %v782_v33, 16  ;;  %v870_v38 = vshll.u32 %v782_v33, 16  ;;  %v2530_v40 = vld [vmem:[%s7482_s4 + $0x20] sm:$0xf] }
  0xce   : > { %316 = vst [vmem:[#allocation2 + $0x74] sm:$0x8] %v315_v32  ;;  %v876_v39 = vshll.u32 %v783_v34, 16  ;;  %v508_v41 = vor.u32 %v506_v18, %v505_v31  ;;  %v684_v42 = vld [vmem:[#allocation2 + $0xc0] sm:$0xf]  ;;  %v880_v43 = vshrl.u32 %v783_v34, 16 }
  0xcf   : > { %v2531_v45 = vld [vmem:[%s7482_s4 + $0x24] sm:$0xf]  ;;  %v2631_v47 = vshrl.u32 %v2530_v40, 16  ;;  %v685_v50 = vsel %vm7522_vm7, %v500_v23, %v684_v42  ;;  %v869_v52 = vrot.slane %v867_v37, 4  ;;  %v872_v53 = vrot.slane %v870_v38, 5 }
  0xd0   : > { %v509_v55 = vsel %vm7510_vm4, %v501_v24, %v508_v41  ;;  %686 = vst [vmem:[#allocation2 + $0xc0] sm:$0xf] %v685_v50  ;;  %v878_v58 = vrot.slane %v876_v39, 5  ;;  %v882_v51 = vrot.slane %v880_v43, 4  ;;  %v7004_v49 = vld [vmem:[#allocation2 + $0x50] ss:$12 sps:$4 sm:$0xff]   ;;  %v2240_v6 = vor.u32 %v2238_v30, %v7812_v36 }
  0xd1   : > { %v2633_v59 = vrot.slane %v2631_v47, 4  ;;  %v2903_v62 = vld [vmem:[#allocation2 + $0x5c] sm:$0xf]  ;;  %687 = vst [vmem:[#allocation2 + $0xcc] sm:$0xf] %v509_v55  ;;  %v873_v63 = vor.u32 %v872_v53, %v869_v52  ;;  %v2634_v54 = vshll.u32 %v2530_v40, 16  ;;  %6687 = vmatmul.mubr.bf16.gmra.mxu1 %v7004_v49 }
  0xd2   : > { %2902 = vst [vmem:[#allocation2 + $0x50] sm:$0xf] %v2624_v48  ;;  %v2904_v19 = vsel %vm7713_vm15, %v2629_v16, %v2903_v62  ;;  %v883_v0 = vor.u32 %v882_v51, %v878_v58  ;;  %v2640_v1 = vshll.u32 %v2531_v45, 16  ;;  %v2644_v4 = vshrl.u32 %v2531_v45, 16  ;;  %6690 = vmatprep.mubr.msk.bf16.mxu1 %vm7331_vm13, %v9010_v20  ;;  %v278_v15 = vld [vmem:[#allocation2 + $0xd8] sm:$0x1] }
  0xd3   : > { %2905 = vst [vmem:[#allocation2 + $0x5c] sm:$0xf] %v2904_v19  ;;  %v874_v2 = vrot.slane %v873_v63, 4  ;;  %v2636_v10 = vrot.slane %v2634_v54, 5  ;;  %v366_v16 = vld [vmem:[%s7482_s4 + $0x40] sm:$0xf] }
  0xd4   : > { %v884_v8 = vrot.slane %v883_v0, 4  ;;  %v2642_v12 = vrot.slane %v2640_v1, 5  ;;  %v2646_v14 = vrot.slane %v2644_v4, 4  ;;  %v279_v21 = vsel %vm7493_vm2, 0, %v278_v15  ;;  %v367_v23 = vld [vmem:[%s7482_s4 + $0x44] sm:$0xf] }
  0xd5   : > { %v1138_v5 = vld [vmem:[#allocation2 + $0x74] sm:$0xf]  ;;  %v879_v13 = vsel %vm7704_vm14, %v874_v2, %v878_v58  ;;  %v2637_v18 = vor.u32 %v2636_v10, %v2633_v59  ;;  %v511_v24 = vshrl.u32 %v366_v16, 16  ;;  %v732_v27 = vld [vmem:[%s7482_s4 + $0x40] sm:$0xf]  ;;  %v514_v32 = vshll.u32 %v366_v16, 16 }
  0xd6   : > { %1137 = vst [vmem:[#allocation2 + $0x68] sm:$0xf] %v879_v13  ;;  %v1139_v17 = vsel %vm7713_vm15, %v884_v8, %v1138_v5  ;;  %v2647_v31 = vor.u32 %v2646_v14, %v2642_v12  ;;  %280 = vst [vmem:[#allocation2 + $0xd8] sm:$0x1] %v279_v21  ;;  %v519_v33 = vshrl.u32 %v367_v23, 16  ;;  %v522_v34 = vshll.u32 %v367_v23, 16 }
  0xd7   : > { %v1213_v30 = vld [vmem:[#allocation2 + $0xc0] sm:$0xff]  ;;  %1140 = vst [vmem:[#allocation2 + $0x74] sm:$0xf] %v1139_v17  ;;  %762 = vst [vmem:[#allocation2 + $0xdc] sm:$0xf] %v732_v27  ;;  %v2638_v40 = vrot.slane %v2637_v18, 4 }
  0xd8   : > { %v2426_v28 = vld [vmem:[#allocation2 + $0xc0] sm:$0xf]  ;;  %v1215_v37 = vld [vmem:[#allocation2 + $0xcc] sm:$0xff]  ;;  %v513_v41 = vrot.slane %v511_v24, 7  ;;  %v2648_v43 = vrot.slane %v2647_v31, 4  ;;  %v521_v45 = vrot.slane %v519_v33, 7 }
  0xd9   : > { %v7007_v38 = vld [vmem:[#allocation2 + $0xc4] ss:$12 sps:$4 sm:$0xff]   ;;  %v2427_v39 = vsel %vm7522_vm7, %v2240_v6, %v2426_v28  ;;  %v5950_v42 = vcombine.low %v1213_v30, %v1215_v37  ;;  %v2092_v48 = vld [vmem:[%s7482_s4 + $0x48] sm:$0xf]  ;;  %v2643_v50 = vsel %vm7704_vm14, %v2638_v40, %v2642_v12  ;;  %v317_v58 = vld [vmem:[#allocation2 + $0x8c] sm:$0x8] }
  0xda   : > { %2428 = vst [vmem:[#allocation2 + $0xc0] sm:$0xf] %v2427_v39  ;;  %v733_v47 = vld [vmem:[%s7482_s4 + $0x44] sm:$0xf]  ;;  %1796 = vmatprep.mubr.bf16.mxu0 %v7007_v38  ;;  %v516_v52 = vor.u32 %v514_v32, %v513_v41  ;;  %v517_v53 = vrot.slane %v513_v41, 4  ;;  %v2251_v55 = vshrl.u32 %v2092_v48, 16  ;;  %v524_v59 = vor.u32 %v522_v34, %v521_v45 }
  0xdb   : > { %763 = vst [vmem:[#allocation2 + $0xe8] sm:$0xf] %v733_v47  ;;  %v784_v51 = vld [vmem:[%s7482_s4 + $0x20] sm:$0xf]  ;;  %1797 = vmatmul.mubr.bf16.gmra.mxu0 %v5950_v42  ;;  %v2254_v61 = vshll.u32 %v2092_v48, 16  ;;  %v318_v49 = vsel %vm7664_vm10, 0, %v317_v58 }
  0xdc   : > { %v785_v62 = vld [vmem:[%s7482_s4 + $0x24] sm:$0xf]  ;;  %v886_v63 = vshrl.u32 %v784_v51, 16  ;;  %v7847_v19 = vrot.slane %v2251_v55, 7  ;;  %319 = vst [vmem:[#allocation2 + $0x8c] sm:$0x8] %v318_v49  ;;  %v525_v4 = vsel %vm7510_vm4, %v517_v53, %v524_v59 }
  0xdd   : > { %v889_v0 = vshll.u32 %v784_v51, 16  ;;  %v895_v54 = vshll.u32 %v785_v62, 16  ;;  %v899_v1 = vshrl.u32 %v785_v62, 16  ;;  %v2532_v2 = vld [vmem:[%s7482_s4 + $0x28] sm:$0xf] }
  0xde   : > { %v888_v6 = vrot.slane %v886_v63, 4  ;;  %v2533_v8 = vld [vmem:[%s7482_s4 + $0x2c] sm:$0xf]  ;;  %v2650_v5 = vshrl.u32 %v2532_v2, 16  ;;  %v7009_v10 = vld [vmem:[#allocation2 + $0x68] ss:$12 sps:$4 sm:$0xff]  }
  0xdf   : > { %v2907_v12 = vld [vmem:[#allocation2 + $0x74] sm:$0xf]  ;;  %691 = vst [vmem:[#allocation2 + $0xe4] sm:$0xf] %v525_v4  ;;  %2906 = vst [vmem:[#allocation2 + $0x68] sm:$0xf] %v2643_v50  ;;  %6691 = vmatmul.mubr.bf16.gmra.mxu1 %v7009_v10 }
  0xe0   : > { %v2908_v13 = vsel %vm7713_vm15, %v2648_v43, %v2907_v12  ;;  %v688_v14 = vld [vmem:[#allocation2 + $0xd8] sm:$0xf]  ;;  %v891_v15 = vrot.slane %v889_v0, 5  ;;  %v897_v16 = vrot.slane %v895_v54, 5  ;;  %v901_v17 = vrot.slane %v899_v1, 4  ;;  %6694 = vmatprep.mubr.msk.bf16.mxu1 %vm7331_vm13, %v9010_v20 }
  0xe1   : > { %2909 = vst [vmem:[#allocation2 + $0x74] sm:$0xf] %v2908_v13  ;;  %v689_v18 = vsel %vm7522_vm7, %v516_v52, %v688_v14  ;;  %v2652_v21 = vrot.slane %v2650_v5, 4  ;;  %v2653_v23 = vshll.u32 %v2532_v2, 16  ;;  %v2659_v24 = vshll.u32 %v2533_v8, 16 }
  0xe2   : > { %690 = vst [vmem:[#allocation2 + $0xd8] sm:$0xf] %v689_v18  ;;  %v892_v27 = vor.u32 %v891_v15, %v888_v6  ;;  %v902_v30 = vor.u32 %v901_v17, %v897_v16  ;;  %v2663_v28 = vshrl.u32 %v2533_v8, 16  ;;  %v281_v31 = vld [vmem:[#allocation2 + $0xf0] sm:$0x1]  ;;  %v2256_v43 = vor.u32 %v2254_v61, %v7847_v19 }
  0xe3   : > { %v2655_v32 = vrot.slane %v2653_v23, 5  ;;  %v7859_v33 = vrot.slane %v2659_v24, 5  ;;  %v282_v34 = vsel %vm7493_vm2, 0, %v281_v31  ;;  %v368_v37 = vld [vmem:[%s7482_s4 + $0x48] sm:$0xf] }
  0xe4   : > { %v893_v38 = vrot.slane %v892_v27, 4  ;;  %v903_v39 = vrot.slane %v902_v30, 4  ;;  %v1142_v40 = vld [vmem:[#allocation2 + $0x8c] sm:$0xf]  ;;  %v2665_v41 = vrot.slane %v2663_v28, 4  ;;  %v527_v42 = vshrl.u32 %v368_v37, 16 }
  0xe5   : > { %283 = vst [vmem:[#allocation2 + $0xf0] sm:$0x1] %v282_v34  ;;  %v2656_v45 = vor.u32 %v2655_v32, %v2652_v21  ;;  %v369_v47 = vld [vmem:[%s7482_s4 + $0x4c] sm:$0xf]  ;;  %v530_v48 = vshll.u32 %v368_v37, 16 }
  0xe6   : > { %v734_v50 = vld [vmem:[%s7482_s4 + $0x48] sm:$0xf]  ;;  %v898_v52 = vsel %vm7704_vm14, %v893_v38, %v897_v16  ;;  %v1143_v53 = vsel %vm7713_vm15, %v903_v39, %v1142_v40  ;;  %v2666_v55 = vor.u32 %v2665_v41, %v7859_v33  ;;  %v529_v58 = vrot.slane %v527_v42, 7  ;;  %v735_v51 = vld [vmem:[%s7482_s4 + $0x4c] sm:$0xf]  ;;  %v7054_v41 = vld [vmem:[#allocation6 + $0x140] sm:$0xff]  }
  0xe7   : > { %764 = vst [vmem:[#allocation2 + $0xf4] sm:$0xf] %v734_v50  ;;  %v2094_v59 = vld [vmem:[%s7482_s4 + $0x50] sm:$0xf]  ;;  %v1219_v49 = vld [vmem:[#allocation2 + $0xe4] sm:$0xff]  ;;  %v535_v61 = vshrl.u32 %v369_v47, 16  ;;  %6752 = vmatprep.subr.bf16.mxu1 %v7054_v41 }
  0xe8   : > { %1141 = vst [vmem:[#allocation2 + $0x80] sm:$0xf] %v898_v52  ;;  %1144 = vst [vmem:[#allocation2 + $0x8c] sm:$0xf] %v1143_v53  ;;  %v538_v62 = vshll.u32 %v369_v47, 16  ;;  %v2267_v63 = vshrl.u32 %v2094_v59, 16  ;;  %v532_v1 = vor.u32 %v530_v48, %v529_v58  ;;  %6753 = vmatpush3.bf16.msra.mxu1 %v7054_v41 }
  0xe9   : > { %765 = vst [vmem:[#allocation2 + $0x100] sm:$0xf] %v735_v51  ;;  %v2657_v0 = vrot.slane %v2656_v45, 4  ;;  %v2667_v54 = vrot.slane %v2666_v55, 4  ;;  %v533_v2 = vrot.slane %v529_v58, 4  ;;  %v1217_v4 = vld [vmem:[#allocation2 + $0xd8] sm:$0xff] }
  0xea   : > { %v7013_v6 = vld [vmem:[#allocation2 + $0xdc] ss:$12 sps:$4 sm:$0xff]   ;;  %v2430_v8 = vld [vmem:[#allocation2 + $0xd8] sm:$0xf]  ;;  %v537_v5 = vrot.slane %v535_v61, 7  ;;  %v5953_v12 = vcombine.low %v1217_v4, %v1219_v49  ;;  %v7876_v13 = vrot.slane %v2267_v63, 7 }
  0xeb   : > { %v2431_v10 = vsel %vm7522_vm7, %v2256_v43, %v2430_v8  ;;  %v2270_v14 = vshll.u32 %v2094_v59, 16  ;;  %v320_v15 = vld [vmem:[#allocation2 + $0xa4] sm:$0x8]  ;;  %v786_v16 = vld [vmem:[%s7482_s4 + $0x28] sm:$0xf]  ;;  %1804 = vmatprep.mubr.bf16.mxu0 %v7013_v6  ;;  %v2662_v27 = vsel %vm7704_vm14, %v2657_v0, %v7859_v33 }
  0xec   : > { %2432 = vst [vmem:[#allocation2 + $0xd8] sm:$0xf] %v2431_v10  ;;  %v540_v17 = vor.u32 %v538_v62, %v537_v5  ;;  %v692_v18 = vld [vmem:[#allocation2 + $0xf0] sm:$0xf]  ;;  %v321_v21 = vsel %vm7664_vm10, 0, %v320_v15  ;;  %v905_v24 = vshrl.u32 %v786_v16, 16  ;;  %1805 = vmatmul.mubr.bf16.gmra.mxu0 %v5953_v12 }
  0xed   : > { %v787_v23 = vld [vmem:[%s7482_s4 + $0x2c] sm:$0xf]  ;;  %v693_v30 = vsel %vm7522_vm7, %v532_v1, %v692_v18  ;;  %322 = vst [vmem:[#allocation2 + $0xa4] sm:$0x8] %v321_v21  ;;  %v908_v28 = vshll.u32 %v786_v16, 16  ;;  %v2272_v58 = vor.u32 %v2270_v14, %v7876_v13 }
  0xee   : > { %v914_v31 = vshll.u32 %v787_v23, 16  ;;  %v2534_v32 = vld [vmem:[%s7482_s4 + $0x30] sm:$0xf]  ;;  %v2535_v34 = vld [vmem:[%s7482_s4 + $0x34] sm:$0xf]  ;;  %v541_v37 = vsel %vm7510_vm4, %v533_v2, %v540_v17  ;;  %v907_v38 = vrot.slane %v905_v24, 4 }
  0xef   : > { %694 = vst [vmem:[#allocation2 + $0xf0] sm:$0xf] %v693_v30  ;;  %v918_v39 = vshrl.u32 %v787_v23, 16  ;;  %v2669_v40 = vshrl.u32 %v2534_v32, 16  ;;  %v7015_v42 = vld [vmem:[#allocation2 + $0x80] ss:$12 sps:$4 sm:$0xff]  }
  0xf0   : > { %695 = vst [vmem:[#allocation2 + $0xfc] sm:$0xf] %v541_v37  ;;  %2910 = vst [vmem:[#allocation2 + $0x80] sm:$0xf] %v2662_v27  ;;  %v2911_v33 = vld [vmem:[#allocation2 + $0x8c] sm:$0xf]  ;;  %6695 = vmatmul.mubr.bf16.gmra.mxu1 %v7015_v42 }
  0xf1   : > { %v910_v43 = vrot.slane %v908_v28, 5  ;;  %v916_v45 = vrot.slane %v914_v31, 5  ;;  %v920_v47 = vrot.slane %v918_v39, 4  ;;  %v2671_v48 = vrot.slane %v2669_v40, 4  ;;  %6698 = vmatprep.mubr.msk.bf16.mxu1 %vm7331_vm13, %v9010_v20  ;;  %v284_v49 = vld [vmem:[#allocation2 + $0x108] sm:$0x1] }
  0xf2   : > { %v2912_v50 = vsel %vm7713_vm15, %v2667_v54, %v2911_v33  ;;  %v2672_v52 = vshll.u32 %v2534_v32, 16  ;;  %v2678_v53 = vshll.u32 %v2535_v34, 16  ;;  %v2682_v55 = vshrl.u32 %v2535_v34, 16  ;;  %v370_v61 = vld [vmem:[%s7482_s4 + $0x50] sm:$0xf] }
  0xf3   : > { %2913 = vst [vmem:[#allocation2 + $0x8c] sm:$0xf] %v2912_v50  ;;  %v911_v51 = vor.u32 %v910_v43, %v907_v38  ;;  %v921_v59 = vor.u32 %v920_v47, %v916_v45  ;;  %v371_v62 = vld [vmem:[%s7482_s4 + $0x54] sm:$0xf]  ;;  %v285_v1 = vsel %vm7493_vm2, 0, %v284_v49  ;;  %v543_v5 = vshrl.u32 %v370_v61, 16 }
  0xf4   : > { %v2674_v63 = vrot.slane %v2672_v52, 5  ;;  %v7898_v0 = vrot.slane %v2678_v53, 5  ;;  %v2684_v54 = vrot.slane %v2682_v55, 4  ;;  %v736_v2 = vld [vmem:[%s7482_s4 + $0x50] sm:$0xf]  ;;  %v546_v10 = vshll.u32 %v370_v61, 16 }
  0xf5   : > { %v912_v4 = vrot.slane %v911_v51, 4  ;;  %v922_v6 = vrot.slane %v921_v59, 4  ;;  %v1146_v8 = vld [vmem:[#allocation2 + $0xa4] sm:$0xf]  ;;  %286 = vst [vmem:[#allocation2 + $0x108] sm:$0x1] %v285_v1 }
  0xf6   : > { %766 = vst [vmem:[#allocation2 + $0x10c] sm:$0xf] %v736_v2  ;;  %v1221_v12 = vld [vmem:[#allocation2 + $0xf0] sm:$0xff]  ;;  %v2675_v15 = vor.u32 %v2674_v63, %v2671_v48  ;;  %v2685_v16 = vor.u32 %v2684_v54, %v7898_v0  ;;  %v551_v17 = vshrl.u32 %v371_v62, 16  ;;  %v554_v18 = vshll.u32 %v371_v62, 16 }
  0xf7   : > { %v2434_v14 = vld [vmem:[#allocation2 + $0xf0] sm:$0xf]  ;;  %v1223_v21 = vld [vmem:[#allocation2 + $0xfc] sm:$0xff]  ;;  %v917_v27 = vsel %vm7704_vm14, %v912_v4, %v916_v45  ;;  %v1147_v30 = vsel %vm7713_vm15, %v922_v6, %v1146_v8  ;;  %v545_v28 = vrot.slane %v543_v5, 7  ;;  %v737_v31 = vld [vmem:[%s7482_s4 + $0x54] sm:$0xf] }
  0xf8   : > { %v7017_v23 = vld [vmem:[#allocation2 + $0xf4] ss:$12 sps:$4 sm:$0xff]   ;;  %v2435_v24 = vsel %vm7522_vm7, %v2272_v58, %v2434_v14  ;;  %v5956_v32 = vcombine.low %v1221_v12, %v1223_v21  ;;  %1145 = vst [vmem:[#allocation2 + $0x98] sm:$0xf] %v917_v27  ;;  %1148 = vst [vmem:[#allocation2 + $0xa4] sm:$0xf] %v1147_v30 }
  0xf9   : > { %2436 = vst [vmem:[#allocation2 + $0xf0] sm:$0xf] %v2435_v24  ;;  %v2676_v34 = vrot.slane %v2675_v15, 4  ;;  %v553_v37 = vrot.slane %v551_v17, 7  ;;  %767 = vst [vmem:[#allocation2 + $0x118] sm:$0xf] %v737_v31  ;;  %1812 = vmatprep.mubr.bf16.mxu0 %v7017_v23  ;;  %v548_v40 = vor.u32 %v546_v10, %v545_v28 }
  0xfa   : > { %v2096_v38 = vld [vmem:[%s7482_s4 + $0x58] sm:$0xf]  ;;  %v2686_v39 = vrot.slane %v2685_v16, 4  ;;  %v549_v41 = vrot.slane %v545_v28, 4  ;;  %v323_v33 = vld [vmem:[#allocation2 + $0xbc] sm:$0x8]  ;;  %1813 = vmatmul.mubr.bf16.gmra.mxu0 %v5956_v32 }
  0xfb   : > { %v2283_v42 = vshrl.u32 %v2096_v38, 16  ;;  %v556_v43 = vor.u32 %v554_v18, %v553_v37  ;;  %v2286_v45 = vshll.u32 %v2096_v38, 16  ;;  %v324_v47 = vsel %vm7664_vm10, 0, %v323_v33  ;;  %v788_v48 = vld [vmem:[%s7482_s4 + $0x30] sm:$0xf] }
  0xfc   : > { %v789_v50 = vld [vmem:[%s7482_s4 + $0x34] sm:$0xf]  ;;  %325 = vst [vmem:[#allocation2 + $0xbc] sm:$0x8] %v324_v47  ;;  %v924_v53 = vshrl.u32 %v788_v48, 16  ;;  %v927_v55 = vshll.u32 %v788_v48, 16  ;;  %v2681_v54 = vsel %vm7704_vm14, %v2676_v34, %v7898_v0 }
  0xfd   : > { %v7916_v52 = vrot.slane %v2283_v42, 7  ;;  %v933_v58 = vshll.u32 %v789_v50, 16  ;;  %v2536_v51 = vld [vmem:[%s7482_s4 + $0x38] sm:$0xf]  ;;  %v557_v59 = vsel %vm7510_vm4, %v549_v41, %v556_v43  ;;  %v696_v49 = vld [vmem:[#allocation2 + $0x108] sm:$0xf] }
  0xfe   : > { %v937_v61 = vshrl.u32 %v789_v50, 16  ;;  %v2537_v62 = vld [vmem:[%s7482_s4 + $0x3c] sm:$0xf]  ;;  %v2688_v63 = vshrl.u32 %v2536_v51, 16  ;;  %v697_v1 = vsel %vm7522_vm7, %v548_v40, %v696_v49  ;;  %699 = vst [vmem:[#allocation2 + $0x114] sm:$0xf] %v557_v59 }
  0xff   : > { %v926_v2 = vrot.slane %v924_v53, 4  ;;  %v929_v4 = vrot.slane %v927_v55, 5  ;;  %698 = vst [vmem:[#allocation2 + $0x108] sm:$0xf] %v697_v1  ;;  %v935_v6 = vrot.slane %v933_v58, 5  ;;  %v2691_v10 = vshll.u32 %v2536_v51, 16 }
 0x100   : > { %v939_v8 = vrot.slane %v937_v61, 4  ;;  %v2690_v5 = vrot.slane %v2688_v63, 4  ;;  %v7020_v12 = vld [vmem:[#allocation2 + $0x98] ss:$12 sps:$4 sm:$0xff]   ;;  %v2697_v18 = vshll.u32 %v2537_v62, 16  ;;  %v2701_v0 = vshrl.u32 %v2537_v62, 16 }
 0x101   : > { %v930_v14 = vor.u32 %v929_v4, %v926_v2  ;;  %2914 = vst [vmem:[#allocation2 + $0x98] sm:$0xf] %v2681_v54  ;;  %v2915_v15 = vld [vmem:[#allocation2 + $0xa4] sm:$0xf]  ;;  %v2693_v17 = vrot.slane %v2691_v10, 5  ;;  %6699 = vmatmul.mubr.bf16.gmra.mxu1 %v7020_v12  ;;  %v2288_v23 = vor.u32 %v2286_v45, %v7916_v52 }
 0x102   : > { %v940_v16 = vor.u32 %v939_v8, %v935_v6  ;;  %v2916_v21 = vsel %vm7713_vm15, %v2686_v39, %v2915_v15  ;;  %v251_v27 = vld [vmem:[#allocation2] sm:$0x1]  ;;  %6702 = vmatprep.mubr.msk.bf16.mxu1 %vm7331_vm13, %v9010_v20  ;;  %v2699_v32 = vrot.slane %v2697_v18, 5  ;;  %v2703_v34 = vrot.slane %v2701_v0, 4  ;;  %v2075_v33 = vld [vmem:[%s7482_s4 + $0x4] sm:$0xf] }
 0x103   : > { %v931_v24 = vrot.slane %v930_v14, 4  ;;  %2917 = vst [vmem:[#allocation2 + $0xa4] sm:$0xf] %v2916_v21  ;;  %v1150_v28 = vld [vmem:[#allocation2 + $0xbc] sm:$0xf]  ;;  %v2694_v31 = vor.u32 %v2693_v17, %v2690_v5  ;;  %v252_v38 = vsel %vm7493_vm2, 0, %v251_v27 }
 0x104   : > { %v941_v30 = vrot.slane %v940_v16, 4  ;;  %v2074_v39 = vld [vmem:[%s7482_s4] sm:$0xf]  ;;  %v2704_v42 = vor.u32 %v2703_v34, %v2699_v32  ;;  %253 = vst [vmem:[#allocation2] sm:$0x1] %v252_v38  ;;  %v2115_v61 = vshrl.u32 %v2075_v33, 16 }
 0x105   : > { %v936_v37 = vsel %vm7704_vm14, %v931_v24, %v935_v6  ;;  %v1227_v40 = vld [vmem:[#allocation2 + $0x114] sm:$0xff]  ;;  %v2107_v43 = vshrl.u32 %v2074_v39, 16  ;;  %v2458_v45 = vld [vmem:[%s7482_s4] sm:$0xf]  ;;  %v2110_v9 = vshll.u32 %v2074_v39, 16  ;;  %v2695_v58 = vrot.slane %v2694_v31, 4 }
 0x106   : > { %1149 = vst [vmem:[#allocation2 + $0xb0] sm:$0xf] %v936_v37  ;;  %v1151_v41 = vsel %vm7713_vm15, %v941_v30, %v1150_v28  ;;  %v1225_v47 = vld [vmem:[#allocation2 + $0x108] sm:$0xff]  ;;  %2490 = vst [vmem:[#allocation2 + $0x4] sm:$0xf] %v2458_v45  ;;  %v2118_v62 = vshll.u32 %v2075_v33, 16 }
 0x107   : > { %v7022_v48 = vld [vmem:[#allocation2 + $0x10c] ss:$12 sps:$4 sm:$0xff]   ;;  %v2438_v50 = vld [vmem:[#allocation2 + $0x108] sm:$0xf]  ;;  %1152 = vst [vmem:[#allocation2 + $0xbc] sm:$0xf] %v1151_v41  ;;  %v5959_v55 = vcombine.low %v1225_v47, %v1227_v40  ;;  %v2700_v12 = vsel %vm7704_vm14, %v2695_v58, %v2699_v32 }
 0x108   : > { %v2439_v53 = vsel %vm7522_vm7, %v2288_v23, %v2438_v50  ;;  %v2459_v51 = vld [vmem:[%s7482_s4 + $0x4] sm:$0xf]  ;;  %v6100_v59 = vld [vmem:[%s7482_s4 + $0x8] sm:$0xf]  ;;  %1820 = vmatprep.mubr.bf16.mxu0 %v7022_v48  ;;  %v2109_v49 = vrot.slane %v2107_v43, 7  ;;  %v2705_v1 = vrot.slane %v2704_v42, 4 }
 0x109   : > { %2440 = vst [vmem:[#allocation2 + $0x108] sm:$0xf] %v2439_v53  ;;  %2491 = vst [vmem:[#allocation2 + $0x10] sm:$0xf] %v2459_v51  ;;  %v6101_v63 = vld [vmem:[%s7482_s4 + $0xc] sm:$0xf]  ;;  %1821 = vmatmul.mubr.bf16.gmra.mxu0 %v5959_v55 }
 0x10a   : > { %v3917_v54 = vshrl.u32 %v6100_v59, 16  ;;  %v3920_v2 = vshll.u32 %v6100_v59, 16  ;;  %v3925_v4 = vshrl.u32 %v6101_v63, 16  ;;  %v2112_v6 = vor.u32 %v2110_v9, %v2109_v49  ;;  %v326_v16 = vld [vmem:[#allocation2 + $0xd4] sm:$0x8]  ;;  %v7063_v43 = vld [vmem:[#allocation6 + $0x1f8] sm:$0xff]  }
 0x10b   : > { %v2113_v8 = vrot.slane %v2109_v49, 4  ;;  %v2117_v5 = vrot.slane %v2115_v61, 7  ;;  %v3928_v15 = vshll.u32 %v6101_v63, 16  ;;  %v790_v17 = vld [vmem:[%s7482_s4 + $0x38] sm:$0xf]  ;;  %v327_v23 = vsel %vm7664_vm10, 0, %v326_v16  ;;  %6533 = vmatprep.subr.bf16.mxu1 %v7063_v43 }
 0x10c   : > { %v3919_v10 = vrot.slane %v3917_v54, 7  ;;  %v3927_v14 = vrot.slane %v3925_v4, 7  ;;  %v2394_v0 = vld [vmem:[#allocation2] sm:$0xf]  ;;  %328 = vst [vmem:[#allocation2 + $0xd4] sm:$0x8] %v327_v23 }
 0x10d   : > { %v2120_v18 = vor.u32 %v2118_v62, %v2117_v5  ;;  %v2395_v30 = vsel %vm7522_vm7, %v2112_v6, %v2394_v0  ;;  %v791_v32 = vld [vmem:[%s7482_s4 + $0x3c] sm:$0xf]  ;;  %v943_v34 = vshrl.u32 %v790_v17, 16  ;;  %v946_v37 = vshll.u32 %v790_v17, 16  ;;  %v2538_v38 = vld [vmem:[%s7482_s4 + $0x40] sm:$0xf] }
 0x10e   : > { %v3923_v21 = vrot.slane %v3919_v10, 4  ;;  %v7024_v24 = vld [vmem:[#allocation2 + $0xb0] ss:$12 sps:$4 sm:$0xff]   ;;  %2396 = vst [vmem:[#allocation2] sm:$0xf] %v2395_v30  ;;  %v3930_v39 = vor.u32 %v3928_v15, %v3927_v14  ;;  %v952_v40 = vshll.u32 %v791_v32, 16  ;;  %v3922_v51 = vor.u32 %v3920_v2, %v3919_v10 }
 0x10f   : > { %v2919_v27 = vld [vmem:[#allocation2 + $0xbc] sm:$0xf]  ;;  %2918 = vst [vmem:[#allocation2 + $0xb0] sm:$0xf] %v2700_v12  ;;  %v2121_v31 = vsel %vm7510_vm4, %v2113_v8, %v2120_v18  ;;  %6703 = vmatmul.mubr.bf16.gmra.mxu1 %v7024_v24  ;;  %v956_v41 = vshrl.u32 %v791_v32, 16  ;;  %v2707_v33 = vshrl.u32 %v2538_v38, 16 }
 0x110   : > { %v2920_v28 = vsel %vm7713_vm15, %v2705_v1, %v2919_v27  ;;  %2397 = vst [vmem:[#allocation2 + $0xc] sm:$0xf] %v2121_v31  ;;  %v2539_v42 = vld [vmem:[%s7482_s4 + $0x44] sm:$0xf]  ;;  %6706 = vmatprep.mubr.msk.bf16.mxu1 %vm7331_vm13, %v9010_v20  ;;  %v945_v45 = vrot.slane %v943_v34, 4  ;;  %v948_v47 = vrot.slane %v946_v37, 5  ;;  %v3931_v6 = vsel %vm7510_vm4, %v3923_v21, %v3930_v39 }
 0x111   : > { %2921 = vst [vmem:[#allocation2 + $0xbc] sm:$0xf] %v2920_v28  ;;  %v2710_v48 = vshll.u32 %v2538_v38, 16  ;;  %v2716_v50 = vshll.u32 %v2539_v42, 16  ;;  %v954_v9 = vrot.slane %v952_v40, 5  ;;  %v958_v53 = vrot.slane %v956_v41, 4 }
 0x112   : > { %v2709_v55 = vrot.slane %v2707_v33, 4  ;;  %v2720_v58 = vshrl.u32 %v2539_v42, 16  ;;  %v6130_v59 = vld [vmem:[%s7482_s4 + $0x8] sm:$0xf]  ;;  %v949_v49 = vor.u32 %v948_v47, %v945_v45  ;;  %v6131_v63 = vld [vmem:[%s7482_s4 + $0xc] sm:$0xf] }
 0x113   : > { %v2712_v61 = vrot.slane %v2710_v48, 5  ;;  %v7963_v62 = vrot.slane %v2716_v50, 5  ;;  %v959_v54 = vor.u32 %v958_v53, %v954_v9  ;;  %v6102_v4 = vld [vmem:[%s7482_s4 + $0x10] sm:$0xf]  ;;  %v1154_v5 = vld [vmem:[#allocation2 + $0xd4] sm:$0xf] }
 0x114   : > { %v2722_v1 = vrot.slane %v2720_v58, 4  ;;  %v950_v8 = vrot.slane %v949_v49, 4  ;;  %v7031_v14 = vld [vmem:[#allocation6 + $0x238] sm:$0xff]   ;;  %v6103_v10 = vld [vmem:[%s7482_s4 + $0x14] sm:$0xf]  ;;  %v3933_v16 = vshrl.u32 %v6102_v4, 16 }
 0x115   : > { %v2713_v12 = vor.u32 %v2712_v61, %v2709_v55  ;;  %v7969_v15 = vld [vmem:[#allocation2 + $0x18] sm:$0xff]  ;;  %v2954_v17 = vld [vmem:[#allocation2] sm:$0xff]  ;;  %v960_v0 = vrot.slane %v959_v54, 4  ;;  %v3936_v24 = vshll.u32 %v6102_v4, 16  ;;  %v3941_v27 = vshrl.u32 %v6103_v10, 16 }
 0x116   : > { %v7032_v2 = vld [vmem:[#allocation2 + $0x1c] ss:$12 sps:$4 sm:$0xff]   ;;  %v4186_v18 = vld [vmem:[#allocation2] sm:$0xf]  ;;  %v2723_v23 = vor.u32 %v2722_v1, %v7963_v62  ;;  %v7027_v28 = vld [vmem:[#allocation2 + $0x4] ss:$12 sps:$4 sm:$0xff]   ;;  %v955_v31 = vsel %vm7704_vm14, %v950_v8, %v954_v9 }
 0x117   : > { %v2956_v30 = vld [vmem:[#allocation2 + $0xc] sm:$0xff]  ;;  %v4187_v21 = vsel %vm7522_vm7, %v3922_v51, %v4186_v18  ;;  %v7977_v32 = vrot.slane %v2713_v12, 4  ;;  %v7979_v34 = vld [vmem:[#allocation2 + $0x24] sm:$0xff]  ;;  %v3935_v37 = vrot.slane %v3933_v16, 7  ;;  %4276 = vst [vmem:[#allocation2 + $0x4] sm:$0xf] %v6130_v59  ;;  %v1155_v38 = vsel %vm7713_vm15, %v960_v0, %v1154_v5  ;;  %3531 = vmatprep.mubr.bf16.mxu0 %v7027_v28 }
 0x118   : > { %4188 = vst [vmem:[#allocation2] sm:$0xf] %v4187_v21  ;;  %4189 = vst [vmem:[#allocation2 + $0xc] sm:$0xf] %v3931_v6  ;;  %v6028_v39 = vcombine.low %v2954_v17, %v2956_v30  ;;  %v3943_v40 = vrot.slane %v3941_v27, 7  ;;  %v2145_v33 = vrot.slane %v7575_v11, 4  ;;  %v6031_v49 = vcombine.low %v7969_v15, %v7979_v34 }
 0x119   : > { %4277 = vst [vmem:[#allocation2 + $0x10] sm:$0xf] %v6131_v63  ;;  %1153 = vst [vmem:[#allocation2 + $0xc8] sm:$0xf] %v955_v31  ;;  %v4190_v41 = vld [vmem:[#allocation2 + $0x18] sm:$0xf]  ;;  %v3938_v43 = vor.u32 %v3936_v24, %v3935_v37  ;;  %v2719_v53 = vsel %vm7704_vm14, %v7977_v32, %v7963_v62 }
 0x11a   : > { %v6132_v42 = vld [vmem:[%s7482_s4 + $0x10] sm:$0xf]  ;;  %1156 = vst [vmem:[#allocation2 + $0xd4] sm:$0xf] %v1155_v38  ;;  %v3939_v45 = vrot.slane %v3935_v37, 4  ;;  %v3944_v47 = vshll.u32 %v6103_v10, 16  ;;  %3532 = vmatmul.mubr.bf16.vlgmr.msra.gmra.mxu0 %v6028_v39 }
 0x11b   : > { %v6133_v48 = vld [vmem:[%s7482_s4 + $0x14] sm:$0xf]  ;;  %4278 = vst [vmem:[#allocation2 + $0x1c] sm:$0xf] %v6132_v42  ;;  %v329_v50 = vld [vmem:[#allocation2 + $0xec] sm:$0x8]  ;;  %6787 = vmatpush3.bf16.msra.mxu0 %v7031_v14  ;;  %3539 = vmatprep.mubr.bf16.mxu0 %v7032_v2  ;;  %v4191_v63 = vsel %vm7522_vm7, %v3938_v43, %v4190_v41 }
 0x11c   : > { %v7039_v9 = vld [vmem:[#allocation6 + $0x230] sm:$0xff]   ;;  %v2724_v55 = vrot.slane %v2723_v23, 4  ;;  %4279 = vst [vmem:[#allocation2 + $0x28] sm:$0xf] %v6133_v48  ;;  %v330_v58 = vsel %vm7664_vm10, 0, %v329_v50  ;;  %v3946_v61 = vor.u32 %v3944_v47, %v3943_v40  ;;  %6788 = vmatprep.subr.bf16.mxu0 %v9010_v20  ;;  %v7047_v32 = vld [vmem:[#allocation6 + $0x228] sm:$0xff]  }
 0x11d   : > { %v792_v51 = vld [vmem:[%s7482_s4 + $0x40] sm:$0xf]  ;;  %v793_v59 = vld [vmem:[%s7482_s4 + $0x44] sm:$0xf]  ;;  %331 = vst [vmem:[#allocation2 + $0xec] sm:$0x8] %v330_v58 }
 0x11e   : > { %v962_v62 = vshrl.u32 %v792_v51, 16  ;;  %v965_v54 = vshll.u32 %v792_v51, 16  ;;  %v2540_v1 = vld [vmem:[%s7482_s4 + $0x48] sm:$0xf]  ;;  %v2541_v4 = vld [vmem:[%s7482_s4 + $0x4c] sm:$0xf]  ;;  %v3947_v14 = vsel %vm7510_vm4, %v3939_v45, %v3946_v61 }
 0x11f   : > { %4192 = vst [vmem:[#allocation2 + $0x18] sm:$0xf] %v4191_v63  ;;  %v971_v6 = vshll.u32 %v793_v59, 16  ;;  %v975_v8 = vshrl.u32 %v793_v59, 16  ;;  %v2726_v5 = vshrl.u32 %v2540_v1, 16  ;;  %v2729_v12 = vshll.u32 %v2540_v1, 16  ;;  %6789 = vmatpush3.bf16.msra.mxu0 %v7039_v9 }
 0x120   : > { %v2079_v10 = vld [vmem:[%s7482_s4 + $0x14] sm:$0xf]  ;;  %v964_v15 = vrot.slane %v962_v62, 4  ;;  %v967_v2 = vrot.slane %v965_v54, 5  ;;  %v2735_v16 = vshll.u32 %v2541_v4, 16  ;;  %v2739_v21 = vshrl.u32 %v2541_v4, 16  ;;  %6790 = vmatprep.subr.bf16.mxu0 %v9010_v20 }
 0x121   : > { %v2462_v17 = vld [vmem:[%s7482_s4 + $0x10] sm:$0xf]  ;;  %4193 = vst [vmem:[#allocation2 + $0x24] sm:$0xf] %v3947_v14  ;;  %v973_v18 = vrot.slane %v971_v6, 5  ;;  %v977_v0 = vrot.slane %v975_v8, 4 }
 0x122   : > { %v2728_v23 = vrot.slane %v2726_v5, 4  ;;  %v2731_v24 = vrot.slane %v2729_v12, 5  ;;  %v2463_v27 = vld [vmem:[%s7482_s4 + $0x14] sm:$0xf]  ;;  %2494 = vst [vmem:[#allocation2 + $0x34] sm:$0xf] %v2462_v17  ;;  %v968_v30 = vor.u32 %v967_v2, %v964_v15  ;;  %3540 = vmatmul.mubr.bf16.gmra.mxu0 %v6031_v49 }
 0x123   : > { %v8006_v28 = vrot.slane %v2735_v16, 5  ;;  %v2147_v31 = vshrl.u32 %v2079_v10, 16  ;;  %2495 = vst [vmem:[#allocation2 + $0x40] sm:$0xf] %v2463_v27  ;;  %v7029_v34 = vld [vmem:[#allocation2 + $0xc8] ss:$12 sps:$4 sm:$0xff]   ;;  %v978_v38 = vor.u32 %v977_v0, %v973_v18  ;;  %6791 = vmatpush3.bf16.msra.mxu0 %v7047_v32 }
 0x124   : > { %v2923_v37 = vld [vmem:[#allocation2 + $0xd4] sm:$0xf]  ;;  %v2732_v39 = vor.u32 %v2731_v24, %v2728_v23  ;;  %2922 = vst [vmem:[#allocation2 + $0xc8] sm:$0xf] %v2719_v53  ;;  %v969_v41 = vrot.slane %v968_v30, 4  ;;  %v2741_v42 = vrot.slane %v2739_v21, 4  ;;  %6707 = vmatmul.mubr.bf16.gmra.mxu1 %v7029_v34  ;;  %6792 = vmatprep.subr.bf16.mxu0 %v9010_v20 }
 0x125   : > { %v2924_v40 = vsel %vm7713_vm15, %v2724_v55, %v2923_v37  ;;  %v2149_v43 = vrot.slane %v2147_v31, 7  ;;  %v6104_v45 = vld [vmem:[%s7482_s4 + $0x18] sm:$0xf]  ;;  %v979_v47 = vrot.slane %v978_v38, 4  ;;  %v1158_v48 = vld [vmem:[#allocation2 + $0xec] sm:$0xf]  ;;  %6710 = vmatprep.mubr.msk.bf16.mxu1 %vm7331_vm13, %v9010_v20 }
 0x126   : > { %2925 = vst [vmem:[#allocation2 + $0xd4] sm:$0xf] %v2924_v40  ;;  %v8012_v50 = vrot.slane %v2732_v39, 4  ;;  %v2150_v9 = vshll.u32 %v2079_v10, 16  ;;  %v3949_v58 = vshrl.u32 %v6104_v45, 16  ;;  %v974_v53 = vsel %vm7704_vm14, %v969_v41, %v973_v18  ;;  %v7055_v59 = vld [vmem:[#allocation6 + $0x220] sm:$0xff]  }
 0x127   : > { %v2742_v55 = vor.u32 %v2741_v42, %v8006_v28  ;;  %v6105_v51 = vld [vmem:[%s7482_s4 + $0x1c] sm:$0xf]  ;;  %1157 = vst [vmem:[#allocation2 + $0xe0] sm:$0xf] %v974_v53  ;;  %v1159_v61 = vsel %vm7713_vm15, %v979_v47, %v1158_v48  ;;  %v3952_v62 = vshll.u32 %v6104_v45, 16  ;;  %6793 = vmatpush3.bf16.msra.mxu0 %v7055_v59 }
 0x128   : > { %v2152_v49 = vor.u32 %v2150_v9, %v2149_v43  ;;  %v3951_v63 = vrot.slane %v3949_v58, 7  ;;  %1160 = vst [vmem:[#allocation2 + $0xec] sm:$0xf] %v1159_v61  ;;  %v3957_v1 = vshrl.u32 %v6105_v51, 16  ;;  %v3960_v4 = vshll.u32 %v6105_v51, 16  ;;  %v7065_v8 = vld [vmem:[#allocation6 + $0x218] sm:$0xff]   ;;  %6794 = vmatprep.subr.bf16.mxu0 %v9010_v20 }
 0x129   : > { %v2743_v54 = vrot.slane %v2742_v55, 4  ;;  %v332_v6 = vld [vmem:[#allocation2 + $0x104] sm:$0x8]  ;;  %v2738_v5 = vsel %vm7704_vm14, %v8012_v50, %v8006_v28  ;;  %v794_v15 = vld [vmem:[%s7482_s4 + $0x48] sm:$0xf]  ;;  %v2962_v43 = vld [vmem:[#allocation2 + $0x30] sm:$0xff] }
 0x12a   : > { %v2153_v12 = vsel %vm7510_vm4, %v2145_v33, %v2152_v49  ;;  %v3955_v10 = vrot.slane %v3951_v63, 4  ;;  %v333_v14 = vsel %vm7664_vm10, 0, %v332_v6  ;;  %v795_v2 = vld [vmem:[%s7482_s4 + $0x4c] sm:$0xf]  ;;  %v3959_v16 = vrot.slane %v3957_v1, 7 }
 0x12b   : > { %2405 = vst [vmem:[#allocation2 + $0x3c] sm:$0xf] %v2153_v12  ;;  %v4194_v17 = vld [vmem:[#allocation2 + $0x30] sm:$0xf]  ;;  %334 = vst [vmem:[#allocation2 + $0x104] sm:$0x8] %v333_v14  ;;  %v3954_v24 = vor.u32 %v3952_v62, %v3951_v63  ;;  %6795 = vmatpush3.bf16.msra.mxu0 %v7065_v8 }
 0x12c   : > { %v981_v18 = vshrl.u32 %v794_v15, 16  ;;  %v984_v0 = vshll.u32 %v794_v15, 16  ;;  %v990_v23 = vshll.u32 %v795_v2, 16  ;;  %v2542_v11 = vld [vmem:[%s7482_s4 + $0x50] sm:$0xf]  ;;  %v994_v33 = vshrl.u32 %v795_v2, 16  ;;  %6796 = vmatprep.subr.bf16.mxu0 %v9010_v20 }
 0x12d   : > { %v2543_v27 = vld [vmem:[%s7482_s4 + $0x54] sm:$0xf]  ;;  %v2745_v30 = vshrl.u32 %v2542_v11, 16  ;;  %v2748_v28 = vshll.u32 %v2542_v11, 16  ;;  %v3962_v21 = vor.u32 %v3960_v4, %v3959_v16  ;;  %v6134_v37 = vld [vmem:[%s7482_s4 + $0x18] sm:$0xf]  ;;  %v4195_v58 = vsel %vm7522_vm7, %v3954_v24, %v4194_v17 }
 0x12e   : > { %v983_v31 = vrot.slane %v981_v18, 4  ;;  %v986_v32 = vrot.slane %v984_v0, 5  ;;  %v992_v34 = vrot.slane %v990_v23, 5  ;;  %v6135_v38 = vld [vmem:[%s7482_s4 + $0x1c] sm:$0xf]  ;;  %v996_v39 = vrot.slane %v994_v33, 4 }
 0x12f   : > { %v2747_v40 = vrot.slane %v2745_v30, 4  ;;  %v2750_v41 = vrot.slane %v2748_v28, 5  ;;  %v2754_v42 = vshll.u32 %v2543_v27, 16  ;;  %v2758_v47 = vshrl.u32 %v2543_v27, 16  ;;  %v7034_v48 = vld [vmem:[#allocation2 + $0xe0] ss:$12 sps:$4 sm:$0xff]  }
 0x130   : > { %v987_v45 = vor.u32 %v986_v32, %v983_v31  ;;  %v2927_v50 = vld [vmem:[#allocation2 + $0xec] sm:$0xf]  ;;  %v3963_v9 = vsel %vm7510_vm4, %v3955_v10, %v3962_v21  ;;  %v997_v53 = vor.u32 %v996_v39, %v992_v34  ;;  %2926 = vst [vmem:[#allocation2 + $0xe0] sm:$0xf] %v2738_v5  ;;  %6711 = vmatmul.mubr.bf16.gmra.mxu1 %v7034_v48  ;;  %v7035_v62 = vld [vmem:[#allocation2 + $0x34] ss:$12 sps:$4 sm:$0xff]  }
 0x131   : > { %v2751_v55 = vor.u32 %v2750_v41, %v2747_v40  ;;  %v2928_v51 = vsel %vm7713_vm15, %v2743_v54, %v2927_v50  ;;  %v8047_v61 = vrot.slane %v2754_v42, 5  ;;  %v2760_v49 = vrot.slane %v2758_v47, 4  ;;  %6714 = vmatprep.mubr.msk.bf16.mxu1 %vm7331_vm13, %v9010_v20  ;;  %4196 = vst [vmem:[#allocation2 + $0x30] sm:$0xf] %v4195_v58  ;;  %4280 = vst [vmem:[#allocation2 + $0x34] sm:$0xf] %v6134_v37 }
 0x132   : > { %v988_v59 = vrot.slane %v987_v45, 4  ;;  %2929 = vst [vmem:[#allocation2 + $0xec] sm:$0xf] %v2928_v51  ;;  %v2964_v63 = vld [vmem:[#allocation2 + $0x3c] sm:$0xff]  ;;  %v998_v1 = vrot.slane %v997_v53, 4  ;;  %v7078_v10 = vld [vmem:[#allocation6 + $0x210] sm:$0xff]   ;;  %3547 = vmatprep.mubr.bf16.mxu0 %v7035_v62 }
 0x133   : > { %v1162_v4 = vld [vmem:[#allocation2 + $0x104] sm:$0xf]  ;;  %4197 = vst [vmem:[#allocation2 + $0x3c] sm:$0xf] %v3963_v9  ;;  %4281 = vst [vmem:[#allocation2 + $0x40] sm:$0xf] %v6135_v38  ;;  %v6034_v8 = vcombine.low %v2962_v43, %v2964_v63  ;;  %v2761_v15 = vor.u32 %v2760_v49, %v8047_v61  ;;  %6797 = vmatpush3.bf16.msra.mxu0 %v7078_v10 }
 0x134   : > { %v993_v54 = vsel %vm7704_vm14, %v988_v59, %v992_v34  ;;  %v2752_v6 = vrot.slane %v2751_v55, 4  ;;  %v2081_v5 = vld [vmem:[%s7482_s4 + $0x1c] sm:$0xf]  ;;  %v2464_v12 = vld [vmem:[%s7482_s4 + $0x18] sm:$0xf]  ;;  %v1163_v14 = vsel %vm7713_vm15, %v998_v1, %v1162_v4  ;;  %v2161_v24 = vrot.slane %v7604_v57, 4  ;;  %6798 = vmatprep.subr.bf16.mxu0 %v9010_v20 }
 0x135   : > { %1161 = vst [vmem:[#allocation2 + $0xf8] sm:$0xf] %v993_v54  ;;  %v2163_v2 = vshrl.u32 %v2081_v5, 16  ;;  %v2166_v16 = vshll.u32 %v2081_v5, 16  ;;  %v2465_v17 = vld [vmem:[%s7482_s4 + $0x1c] sm:$0xf]  ;;  %3548 = vmatmul.mubr.bf16.gmra.mxu0 %v6034_v8 }
 0x136   : > { %2496 = vst [vmem:[#allocation2 + $0x4c] sm:$0xf] %v2464_v12  ;;  %v6106_v18 = vld [vmem:[%s7482_s4 + $0x20] sm:$0xf]  ;;  %1164 = vst [vmem:[#allocation2 + $0x104] sm:$0xf] %v1163_v14  ;;  %v2757_v31 = vsel %vm7704_vm14, %v2752_v6, %v8047_v61 }
 0x137   : > { %2497 = vst [vmem:[#allocation2 + $0x58] sm:$0xf] %v2465_v17  ;;  %v6107_v0 = vld [vmem:[%s7482_s4 + $0x24] sm:$0xf]  ;;  %v3965_v23 = vshrl.u32 %v6106_v18, 16  ;;  %v3968_v11 = vshll.u32 %v6106_v18, 16 }
 0x138   : > { %v2165_v33 = vrot.slane %v2163_v2, 7  ;;  %v3973_v27 = vshrl.u32 %v6107_v0, 16  ;;  %v3976_v30 = vshll.u32 %v6107_v0, 16  ;;  %v8062_v21 = vld [vmem:[#allocation2 + $0x48] sm:$0xf]  ;;  %v2762_v32 = vrot.slane %v2761_v15, 4 }
 0x139   : > { %v3967_v28 = vrot.slane %v3965_v23, 7  ;;  %v335_v57 = vld [vmem:[#allocation2 + $0x11c] sm:$0x8]  ;;  %v796_v38 = vld [vmem:[%s7482_s4 + $0x50] sm:$0xf]  ;;  %v2177_v59 = vrot.slane %v7652_v26, 4 }
 0x13a   : > { %v2168_v34 = vor.u32 %v2166_v16, %v2165_v33  ;;  %v3975_v37 = vrot.slane %v3973_v27, 7  ;;  %v336_v41 = vsel %vm7664_vm10, 0, %v335_v57  ;;  %v797_v42 = vld [vmem:[%s7482_s4 + $0x54] sm:$0xf]  ;;  %v1000_v43 = vshrl.u32 %v796_v38, 16 }
 0x13b   : > { %v3970_v39 = vor.u32 %v3968_v11, %v3967_v28  ;;  %v3971_v40 = vrot.slane %v3967_v28, 4  ;;  %337 = vst [vmem:[#allocation2 + $0x11c] sm:$0x8] %v336_v41  ;;  %v1003_v48 = vshll.u32 %v796_v38, 16  ;;  %v1009_v50 = vshll.u32 %v797_v42, 16 }
 0x13c   : > { %v2169_v45 = vsel %vm7510_vm4, %v2161_v24, %v2168_v34  ;;  %v3978_v47 = vor.u32 %v3976_v30, %v3975_v37  ;;  %v2544_v9 = vld [vmem:[%s7482_s4 + $0x58] sm:$0xf]  ;;  %v2545_v58 = vld [vmem:[%s7482_s4 + $0x5c] sm:$0xf]  ;;  %v1002_v53 = vrot.slane %v1000_v43, 4  ;;  %v1013_v55 = vshrl.u32 %v797_v42, 16 }
 0x13d   : > { %2409 = vst [vmem:[#allocation2 + $0x54] sm:$0xf] %v2169_v45  ;;  %v2764_v51 = vshrl.u32 %v2544_v9, 16  ;;  %v7037_v61 = vld [vmem:[#allocation2 + $0xf8] ss:$12 sps:$4 sm:$0xff]   ;;  %v4199_v62 = vsel %vm7522_vm7, %v3970_v39, %v8062_v21  ;;  %v1005_v4 = vrot.slane %v1003_v48, 5 }
 0x13e   : > { %v2931_v49 = vld [vmem:[#allocation2 + $0x104] sm:$0xf]  ;;  %v3979_v63 = vsel %vm7510_vm4, %v3971_v40, %v3978_v47  ;;  %2930 = vst [vmem:[#allocation2 + $0xf8] sm:$0xf] %v2757_v31  ;;  %v1011_v54 = vrot.slane %v1009_v50, 5  ;;  %v1015_v6 = vrot.slane %v1013_v55, 4  ;;  %6715 = vmatmul.mubr.bf16.gmra.mxu1 %v7037_v61 }
 0x13f   : > { %v2932_v1 = vsel %vm7713_vm15, %v2762_v32, %v2931_v49  ;;  %v2083_v8 = vld [vmem:[%s7482_s4 + $0x24] sm:$0xf]  ;;  %v2966_v26 = vld [vmem:[#allocation2 + $0x48] sm:$0xff]  ;;  %v6136_v5 = vld [vmem:[%s7482_s4 + $0x20] sm:$0xf]  ;;  %v2766_v10 = vrot.slane %v2764_v51, 4  ;;  %6718 = vmatprep.mubr.msk.bf16.mxu1 %vm7331_vm13, %v9010_v20  ;;  %v1006_v17 = vor.u32 %v1005_v4, %v1002_v53 }
 0x140   : > { %2933 = vst [vmem:[#allocation2 + $0x104] sm:$0xf] %v2932_v1  ;;  %v6137_v12 = vld [vmem:[%s7482_s4 + $0x24] sm:$0xf]  ;;  %v2767_v14 = vshll.u32 %v2544_v9, 16  ;;  %v2773_v15 = vshll.u32 %v2545_v58, 16  ;;  %v1016_v18 = vor.u32 %v1015_v6, %v1011_v54 }
 0x141   : > { %v2777_v2 = vshrl.u32 %v2545_v58, 16  ;;  %v2466_v16 = vld [vmem:[%s7482_s4 + $0x20] sm:$0xf]  ;;  %v2179_v0 = vshrl.u32 %v2083_v8, 16  ;;  %v2182_v23 = vshll.u32 %v2083_v8, 16  ;;  %v1007_v31 = vrot.slane %v1006_v17, 4 }
 0x142   : > { %v2467_v11 = vld [vmem:[%s7482_s4 + $0x24] sm:$0xf]  ;;  %2498 = vst [vmem:[#allocation2 + $0x64] sm:$0xf] %v2466_v16  ;;  %v6108_v24 = vld [vmem:[%s7482_s4 + $0x28] sm:$0xf] }
 0x143   : > { %v2769_v33 = vrot.slane %v2767_v14, 5  ;;  %v8092_v27 = vrot.slane %v2773_v15, 5  ;;  %v2779_v30 = vrot.slane %v2777_v2, 4  ;;  %2499 = vst [vmem:[#allocation2 + $0x70] sm:$0xf] %v2467_v11  ;;  %v3981_v21 = vshrl.u32 %v6108_v24, 16 }
 0x144   : > { %v6109_v28 = vld [vmem:[%s7482_s4 + $0x2c] sm:$0xf]  ;;  %v1017_v32 = vrot.slane %v1016_v18, 4  ;;  %v1166_v34 = vld [vmem:[#allocation2 + $0x11c] sm:$0xf]  ;;  %v2181_v37 = vrot.slane %v2179_v0, 7  ;;  %v1012_v45 = vsel %vm7704_vm14, %v1007_v31, %v1011_v54 }
 0x145   : > { %v3984_v57 = vshll.u32 %v6108_v24, 16  ;;  %v2968_v38 = vld [vmem:[#allocation2 + $0x54] sm:$0xff]  ;;  %v2770_v40 = vor.u32 %v2769_v33, %v2766_v10  ;;  %v2780_v41 = vor.u32 %v2779_v30, %v8092_v27  ;;  %v3983_v42 = vrot.slane %v3981_v21, 7  ;;  %4200 = vst [vmem:[#allocation2 + $0x48] sm:$0xf] %v4199_v62 }
 0x146   : > { %v7040_v39 = vld [vmem:[#allocation2 + $0x4c] ss:$12 sps:$4 sm:$0xff]   ;;  %v3989_v43 = vshrl.u32 %v6109_v28, 16  ;;  %4201 = vst [vmem:[#allocation2 + $0x54] sm:$0xf] %v3979_v63  ;;  %v1167_v47 = vsel %vm7713_vm15, %v1017_v32, %v1166_v34  ;;  %v6037_v48 = vcombine.low %v2966_v26, %v2968_v38  ;;  %v2184_v50 = vor.u32 %v2182_v23, %v2181_v37 }
 0x147   : > { %4282 = vst [vmem:[#allocation2 + $0x4c] sm:$0xf] %v6136_v5  ;;  %4283 = vst [vmem:[#allocation2 + $0x58] sm:$0xf] %v6137_v12  ;;  %3555 = vmatprep.mubr.bf16.mxu0 %v7040_v39  ;;  %v2771_v9 = vrot.slane %v2770_v40, 4  ;;  %v3992_v51 = vshll.u32 %v6109_v28, 16  ;;  %v3986_v8 = vor.u32 %v3984_v57, %v3983_v42 }
 0x148   : > { %1165 = vst [vmem:[#allocation2 + $0x110] sm:$0xf] %v1012_v45  ;;  %1168 = vst [vmem:[#allocation2 + $0x11c] sm:$0xf] %v1167_v47  ;;  %v338_v58 = vld [vmem:[#allocation2 + $0x134] sm:$0x8]  ;;  %3556 = vmatmul.mubr.bf16.gmra.mxu0 %v6037_v48  ;;  %v2185_v53 = vsel %vm7510_vm4, %v2177_v59, %v2184_v50 }
 0x149   : > { %v3991_v55 = vrot.slane %v3989_v43, 7  ;;  %v339_v61 = vsel %vm7664_vm10, 0, %v338_v58  ;;  %v798_v49 = vld [vmem:[%s7482_s4 + $0x58] sm:$0xf]  ;;  %v2781_v63 = vrot.slane %v2780_v41, 4  ;;  %v3987_v62 = vrot.slane %v3983_v42, 4 }
 0x14a   : > { %2413 = vst [vmem:[#allocation2 + $0x6c] sm:$0xf] %v2185_v53  ;;  %v4202_v1 = vld [vmem:[#allocation2 + $0x60] sm:$0xf]  ;;  %340 = vst [vmem:[#allocation2 + $0x134] sm:$0x8] %v339_v61  ;;  %v2776_v17 = vsel %vm7704_vm14, %v2771_v9, %v8092_v27 }
 0x14b   : > { %v799_v4 = vld [vmem:[%s7482_s4 + $0x5c] sm:$0xf]  ;;  %v1019_v54 = vshrl.u32 %v798_v49, 16  ;;  %v1022_v6 = vshll.u32 %v798_v49, 16  ;;  %v3994_v59 = vor.u32 %v3992_v51, %v3991_v55  ;;  %v2546_v12 = vld [vmem:[%s7482_s4 + $0x60] sm:$0xf]  ;;  %v4203_v37 = vsel %vm7522_vm7, %v3986_v8, %v4202_v1 }
 0x14c   : > { %v1028_v26 = vshll.u32 %v799_v4, 16  ;;  %v1032_v5 = vshrl.u32 %v799_v4, 16  ;;  %v2547_v10 = vld [vmem:[%s7482_s4 + $0x64] sm:$0xf]  ;;  %v2783_v2 = vshrl.u32 %v2546_v12, 16  ;;  %v2786_v16 = vshll.u32 %v2546_v12, 16 }
 0x14d   : > { %v1021_v14 = vrot.slane %v1019_v54, 4  ;;  %v1024_v15 = vrot.slane %v1022_v6, 5  ;;  %v2970_v18 = vld [vmem:[#allocation2 + $0x60] sm:$0xff]  ;;  %v6138_v0 = vld [vmem:[%s7482_s4 + $0x28] sm:$0xf]  ;;  %v2792_v33 = vshll.u32 %v2547_v10, 16  ;;  %v3995_v34 = vsel %vm7510_vm4, %v3987_v62, %v3994_v59 }
 0x14e   : > { %v6139_v23 = vld [vmem:[%s7482_s4 + $0x2c] sm:$0xf]  ;;  %v1030_v11 = vrot.slane %v1028_v26, 5  ;;  %v1034_v24 = vrot.slane %v1032_v5, 4  ;;  %v2785_v28 = vrot.slane %v2783_v2, 4  ;;  %v2788_v21 = vrot.slane %v2786_v16, 5 }
 0x14f   : > { %v1025_v30 = vor.u32 %v1024_v15, %v1021_v14  ;;  %v2796_v31 = vshrl.u32 %v2547_v10, 16  ;;  %v7042_v32 = vld [vmem:[#allocation2 + $0x110] ss:$12 sps:$4 sm:$0xff]   ;;  %v8117_v40 = vrot.slane %v2792_v33, 5  ;;  %4204 = vst [vmem:[#allocation2 + $0x60] sm:$0xf] %v4203_v37 }
 0x150   : > { %v1035_v57 = vor.u32 %v1034_v24, %v1030_v11  ;;  %2934 = vst [vmem:[#allocation2 + $0x110] sm:$0xf] %v2776_v17  ;;  %v2935_v27 = vld [vmem:[#allocation2 + $0x11c] sm:$0xf]  ;;  %v2789_v39 = vor.u32 %v2788_v21, %v2785_v28  ;;  %6719 = vmatmul.mubr.bf16.gmra.mxu1 %v7042_v32  ;;  %v7043_v45 = vld [vmem:[#allocation2 + $0x64] ss:$12 sps:$4 sm:$0xff]  }
 0x151   : > { %v1026_v38 = vrot.slane %v1025_v30, 4  ;;  %v2798_v41 = vrot.slane %v2796_v31, 4  ;;  %v2936_v42 = vsel %vm7713_vm15, %v2781_v63, %v2935_v27  ;;  %v2972_v43 = vld [vmem:[#allocation2 + $0x6c] sm:$0xff]  ;;  %v1170_v48 = vld [vmem:[#allocation2 + $0x134] sm:$0xf]  ;;  %6722 = vmatprep.mubr.msk.bf16.mxu1 %vm7331_vm13, %v9010_v20  ;;  %3563 = vmatprep.mubr.bf16.mxu0 %v7043_v45  ;;  %v2193_v1 = vrot.slane %v7690_v35, 4 }
 0x152   : > { %v1036_v47 = vrot.slane %v1035_v57, 4  ;;  %2937 = vst [vmem:[#allocation2 + $0x11c] sm:$0xf] %v2936_v42  ;;  %4205 = vst [vmem:[#allocation2 + $0x6c] sm:$0xf] %v3995_v34  ;;  %v2790_v9 = vrot.slane %v2789_v39, 4  ;;  %v6040_v58 = vcombine.low %v2970_v18, %v2972_v43 }
 0x153   : > { %4284 = vst [vmem:[#allocation2 + $0x64] sm:$0xf] %v6138_v0  ;;  %4285 = vst [vmem:[#allocation2 + $0x70] sm:$0xf] %v6139_v23  ;;  %v1031_v50 = vsel %vm7704_vm14, %v1026_v38, %v1030_v11  ;;  %v2085_v53 = vld [vmem:[%s7482_s4 + $0x2c] sm:$0xf]  ;;  %v2799_v62 = vor.u32 %v2798_v41, %v8117_v40 }
 0x154   : > { %1169 = vst [vmem:[#allocation2 + $0x128] sm:$0xf] %v1031_v50  ;;  %v1171_v55 = vsel %vm7713_vm15, %v1036_v47, %v1170_v48  ;;  %v2195_v51 = vshrl.u32 %v2085_v53, 16  ;;  %v2198_v61 = vshll.u32 %v2085_v53, 16  ;;  %v2468_v49 = vld [vmem:[%s7482_s4 + $0x28] sm:$0xf]  ;;  %3564 = vmatmul.mubr.bf16.gmra.mxu0 %v6040_v58  ;;  %v2795_v35 = vsel %vm7704_vm14, %v2790_v9, %v8117_v40  ;;  %v6284_v9 = vpop.f32.mrf.mxu0  ;;  %v6350_v58 = vpop.f32.mrf.mxu1 }
 0x155   : > { %v2469_v63 = vld [vmem:[%s7482_s4 + $0x2c] sm:$0xf]  ;;  %1172 = vst [vmem:[#allocation2 + $0x134] sm:$0xf] %v1171_v55  ;;  %2500 = vst [vmem:[#allocation2 + $0x7c] sm:$0xf] %v2468_v49 }
 0x156   : > { %2501 = vst [vmem:[#allocation2 + $0x88] sm:$0xf] %v2469_v63  ;;  %v6110_v4 = vld [vmem:[%s7482_s4 + $0x30] sm:$0xf]  ;;  %v6111_v54 = vld [vmem:[%s7482_s4 + $0x34] sm:$0xf] }
 0x157   : > { %v2197_v6 = vrot.slane %v2195_v51, 7  ;;  %v3997_v8 = vshrl.u32 %v6110_v4, 16  ;;  %v4000_v59 = vshll.u32 %v6110_v4, 16  ;;  %v4005_v26 = vshrl.u32 %v6111_v54, 16  ;;  %v8134_v12 = vld [vmem:[#allocation2 + $0x78] sm:$0xf] }
 0x158   : > { %v4008_v5 = vshll.u32 %v6111_v54, 16  ;;  %v2209_v10 = vrot.slane %v7743_v56, 4  ;;  %v7091_v14 = vld [vmem:[#allocation6 + $0x208] sm:$0xff]   ;;  %v800_v18 = vld [vmem:[%s7482_s4 + $0x60] sm:$0xf]  ;;  %v2800_v0 = vrot.slane %v2799_v62, 4 }
 0x159   : > { %v2200_v15 = vor.u32 %v2198_v61, %v2197_v6  ;;  %v3999_v2 = vrot.slane %v3997_v8, 7  ;;  %v4007_v16 = vrot.slane %v4005_v26, 7  ;;  %v341_v17 = vld [vmem:[#allocation2 + $0x14c] sm:$0x8]  ;;  %v801_v11 = vld [vmem:[%s7482_s4 + $0x64] sm:$0xf]  ;;  %6799 = vmatpush3.bf16.msra.mxu0 %v7091_v14 }
 0x15a   : > { %v342_v23 = vsel %vm7664_vm10, 0, %v341_v17  ;;  %v1038_v24 = vshrl.u32 %v800_v18, 16  ;;  %v1041_v33 = vshll.u32 %v800_v18, 16  ;;  %v2548_v32 = vld [vmem:[%s7482_s4 + $0x68] sm:$0xf]  ;;  %6800 = vmatprep.subr.bf16.mxu0 %v9010_v20  ;;  %v1047_v27 = vshll.u32 %v801_v11, 16 }
 0x15b   : > { %v2201_v30 = vsel %vm7510_vm4, %v2193_v1, %v2200_v15  ;;  %v4002_v28 = vor.u32 %v4000_v59, %v3999_v2  ;;  %v4003_v21 = vrot.slane %v3999_v2, 4  ;;  %v4010_v31 = vor.u32 %v4008_v5, %v4007_v16  ;;  %343 = vst [vmem:[#allocation2 + $0x14c] sm:$0x8] %v342_v23  ;;  %v2549_v34 = vld [vmem:[%s7482_s4 + $0x6c] sm:$0xf]  ;;  %v6285_v15 = vpop.f32.mrf.mxu0  ;;  %v6351_v2 = vpop.f32.mrf.mxu1 }
 0x15c   : > { %2417 = vst [vmem:[#allocation2 + $0x84] sm:$0xf] %v2201_v30  ;;  %v1040_v37 = vrot.slane %v1038_v24, 4  ;;  %v1043_v57 = vrot.slane %v1041_v33, 5  ;;  %v1051_v38 = vshrl.u32 %v801_v11, 16  ;;  %v1049_v47 = vrot.slane %v1047_v27, 5 }
 0x15d   : > { %v7045_v39 = vld [vmem:[#allocation2 + $0x128] ss:$12 sps:$4 sm:$0xff]   ;;  %v4011_v41 = vsel %vm7510_vm4, %v4003_v21, %v4010_v31  ;;  %v4207_v42 = vsel %vm7522_vm7, %v4002_v28, %v8134_v12  ;;  %v6140_v53 = vld [vmem:[%s7482_s4 + $0x30] sm:$0xf]  ;;  %v2802_v51 = vshrl.u32 %v2548_v32, 16  ;;  %v2805_v61 = vshll.u32 %v2548_v32, 16 }
 0x15e   : > { %v2939_v40 = vld [vmem:[#allocation2 + $0x134] sm:$0xf]  ;;  %2938 = vst [vmem:[#allocation2 + $0x128] sm:$0xf] %v2795_v35  ;;  %v1044_v45 = vor.u32 %v1043_v57, %v1040_v37  ;;  %v1053_v48 = vrot.slane %v1051_v38, 4  ;;  %6723 = vmatmul.mubr.bf16.gmra.mxu1 %v7045_v39  ;;  %v2811_v49 = vshll.u32 %v2549_v34, 16  ;;  %v8169_v11 = vadd.f32 %v6285_v15, %v6284_v9  ;;  %v8174_v39 = vpop.f32.mrf.mxu0 }
 0x15f   : > { %v2940_v43 = vsel %vm7713_vm15, %v2800_v0, %v2939_v40  ;;  %v2087_v50 = vld [vmem:[%s7482_s4 + $0x34] sm:$0xf]  ;;  %v2815_v63 = vshrl.u32 %v2549_v34, 16  ;;  %v2470_v62 = vld [vmem:[%s7482_s4 + $0x30] sm:$0xf]  ;;  %6726 = vmatprep.mubr.msk.bf16.mxu1 %vm7331_vm13, %v9010_v20  ;;  %v2974_v1 = vld [vmem:[#allocation2 + $0x78] sm:$0xff]  ;;  %v8176_v40 = vpop.f32.mrf.mxu1 }
 0x160   : > { %2941 = vst [vmem:[#allocation2 + $0x134] sm:$0xf] %v2940_v43  ;;  %v6141_v55 = vld [vmem:[%s7482_s4 + $0x34] sm:$0xf]  ;;  %v1045_v4 = vrot.slane %v1044_v45, 4  ;;  %v1054_v54 = vor.u32 %v1053_v48, %v1049_v47  ;;  %v2211_v6 = vshrl.u32 %v2087_v50, 16  ;;  %v8183_v48 = vadd.f32 %v6351_v2, %v6350_v58 }
 0x161   : > { %v2214_v8 = vshll.u32 %v2087_v50, 16  ;;  %v2471_v59 = vld [vmem:[%s7482_s4 + $0x34] sm:$0xf]  ;;  %2502 = vst [vmem:[#allocation2 + $0x94] sm:$0xf] %v2470_v62  ;;  %v2804_v26 = vrot.slane %v2802_v51, 4 }
 0x162   : > { %v2807_v5 = vrot.slane %v2805_v61, 5  ;;  %v8163_v12 = vrot.slane %v2811_v49, 5  ;;  %v2817_v14 = vrot.slane %v2815_v63, 4  ;;  %2503 = vst [vmem:[#allocation2 + $0xa0] sm:$0xf] %v2471_v59  ;;  %v1050_v16 = vsel %vm7704_vm14, %v1045_v4, %v1049_v47 }
 0x163   : > { %v6112_v35 = vld [vmem:[%s7482_s4 + $0x38] sm:$0xf]  ;;  %v1055_v17 = vrot.slane %v1054_v54, 4  ;;  %v1174_v18 = vld [vmem:[#allocation2 + $0x14c] sm:$0xf]  ;;  %v2213_v0 = vrot.slane %v2211_v6, 7  ;;  %v8190_v6 = vpop.f32.mrf.mxu0 }
 0x164   : > { %v6113_v23 = vld [vmem:[%s7482_s4 + $0x3c] sm:$0xf]  ;;  %v2976_v24 = vld [vmem:[#allocation2 + $0x84] sm:$0xff]  ;;  %1173 = vst [vmem:[#allocation2 + $0x140] sm:$0xf] %v1050_v16  ;;  %v2808_v30 = vor.u32 %v2807_v5, %v2804_v26  ;;  %v4013_v28 = vshrl.u32 %v6112_v35, 16  ;;  %v2818_v57 = vor.u32 %v2817_v14, %v8163_v12 }
 0x165   : > { %v7048_v33 = vld [vmem:[#allocation2 + $0x7c] ss:$12 sps:$4 sm:$0xff]   ;;  %v4016_v21 = vshll.u32 %v6112_v35, 16  ;;  %4208 = vst [vmem:[#allocation2 + $0x78] sm:$0xf] %v4207_v42  ;;  %v1175_v31 = vsel %vm7713_vm15, %v1055_v17, %v1174_v18  ;;  %v6043_v32 = vcombine.low %v2974_v1, %v2976_v24  ;;  %v2216_v34 = vor.u32 %v2214_v8, %v2213_v0  ;;  %v8192_v8 = vpop.f32.mrf.mxu1 }
 0x166   : > { %4209 = vst [vmem:[#allocation2 + $0x84] sm:$0xf] %v4011_v41  ;;  %4286 = vst [vmem:[#allocation2 + $0x7c] sm:$0xf] %v6140_v53  ;;  %v4021_v37 = vshrl.u32 %v6113_v23, 16  ;;  %3571 = vmatprep.mubr.bf16.mxu0 %v7048_v33  ;;  %v4015_v27 = vrot.slane %v4013_v28, 7 }
 0x167   : > { %4287 = vst [vmem:[#allocation2 + $0x88] sm:$0xf] %v6141_v55  ;;  %1176 = vst [vmem:[#allocation2 + $0x14c] sm:$0xf] %v1175_v31  ;;  %v4024_v38 = vshll.u32 %v6113_v23, 16  ;;  %v2809_v41 = vrot.slane %v2808_v30, 4  ;;  %3572 = vmatmul.mubr.bf16.gmra.mxu0 %v6043_v32  ;;  %v2217_v42 = vsel %vm7510_vm4, %v2209_v10, %v2216_v34  ;;  %v6290_v32 = vpop.f32.mrf.mxu0  ;;  %v6356_v34 = vpop.f32.mrf.mxu1 }
 0x168   : > { %v4023_v43 = vrot.slane %v4021_v37, 7  ;;  %v344_v45 = vld [vmem:[#allocation2 + $0x164] sm:$0x8]  ;;  %v802_v47 = vld [vmem:[%s7482_s4 + $0x68] sm:$0xf]  ;;  %v4018_v50 = vor.u32 %v4016_v21, %v4015_v27  ;;  %v4019_v9 = vrot.slane %v4015_v27, 4 }
 0x169   : > { %2421 = vst [vmem:[#allocation2 + $0x9c] sm:$0xf] %v2217_v42  ;;  %v4210_v53 = vld [vmem:[#allocation2 + $0x90] sm:$0xf]  ;;  %v345_v55 = vsel %vm7664_vm10, 0, %v344_v45  ;;  %v1057_v10 = vshrl.u32 %v802_v47, 16  ;;  %v2814_v59 = vsel %vm7704_vm14, %v2809_v41, %v8163_v12 }
 0x16a   : > { %v803_v51 = vld [vmem:[%s7482_s4 + $0x6c] sm:$0xf]  ;;  %v4026_v56 = vor.u32 %v4024_v38, %v4023_v43  ;;  %346 = vst [vmem:[#allocation2 + $0x164] sm:$0x8] %v345_v55  ;;  %v1060_v61 = vshll.u32 %v802_v47, 16  ;;  %v2819_v62 = vrot.slane %v2818_v57, 4  ;;  %v4211_v30 = vsel %vm7522_vm7, %v4018_v50, %v4210_v53  ;;  %v6291_v50 = vpop.f32.mrf.mxu0 }
 0x16b   : > { %v1066_v49 = vshll.u32 %v803_v51, 16  ;;  %v2550_v63 = vld [vmem:[%s7482_s4 + $0x70] sm:$0xf]  ;;  %v1070_v1 = vshrl.u32 %v803_v51, 16  ;;  %v2551_v58 = vld [vmem:[%s7482_s4 + $0x74] sm:$0xf] }
 0x16c   : > { %v2821_v4 = vshrl.u32 %v2550_v63, 16  ;;  %v2824_v54 = vshll.u32 %v2550_v63, 16  ;;  %v2978_v26 = vld [vmem:[#allocation2 + $0x90] sm:$0xff]  ;;  %v6142_v5 = vld [vmem:[%s7482_s4 + $0x38] sm:$0xf]  ;;  %v1059_v35 = vrot.slane %v1057_v10, 4  ;;  %v4027_v33 = vsel %vm7510_vm4, %v4019_v9, %v4026_v56  ;;  %v6357_v9 = vpop.f32.mrf.mxu1 }
 0x16d   : > { %v6143_v14 = vld [vmem:[%s7482_s4 + $0x3c] sm:$0xf]  ;;  %v1062_v15 = vrot.slane %v1060_v61, 5  ;;  %v1068_v2 = vrot.slane %v1066_v49, 5  ;;  %v1072_v16 = vrot.slane %v1070_v1, 4  ;;  %v2830_v0 = vshll.u32 %v2551_v58, 16 }
 0x16e   : > { %v2823_v17 = vrot.slane %v2821_v4, 4  ;;  %v2826_v18 = vrot.slane %v2824_v54, 5  ;;  %v7050_v23 = vld [vmem:[#allocation2 + $0x140] ss:$12 sps:$4 sm:$0xff]   ;;  %v2834_v41 = vshrl.u32 %v2551_v58, 16  ;;  %v8215_v10 = vadd.f32 %v6357_v9, %v6356_v34  ;;  %v8221_v58 = vpop.f32.mrf.mxu0  ;;  %v8223_v4 = vpop.f32.mrf.mxu1 }
 0x16f   : > { %v2943_v24 = vld [vmem:[#allocation2 + $0x14c] sm:$0xf]  ;;  %v1063_v28 = vor.u32 %v1062_v15, %v1059_v35  ;;  %2942 = vst [vmem:[#allocation2 + $0x140] sm:$0xf] %v2814_v59  ;;  %v1073_v21 = vor.u32 %v1072_v16, %v1068_v2  ;;  %6727 = vmatmul.mubr.bf16.gmra.mxu1 %v7050_v23  ;;  %v7051_v57 = vld [vmem:[#allocation2 + $0x94] ss:$12 sps:$4 sm:$0xff]  }
 0x170   : > { %v2944_v12 = vsel %vm7713_vm15, %v2819_v62, %v2943_v24  ;;  %v2827_v31 = vor.u32 %v2826_v18, %v2823_v17  ;;  %v2980_v37 = vld [vmem:[#allocation2 + $0x9c] sm:$0xff]  ;;  %v8205_v38 = vrot.slane %v2830_v0, 5  ;;  %6730 = vmatprep.mubr.msk.bf16.mxu1 %vm7331_vm13, %v9010_v20  ;;  %4212 = vst [vmem:[#allocation2 + $0x90] sm:$0xf] %v4211_v30  ;;  %4288 = vst [vmem:[#allocation2 + $0x94] sm:$0xf] %v6142_v5  ;;  %3579 = vmatprep.mubr.bf16.mxu0 %v7051_v57  ;;  %v8230_v17 = vpop.f32.mrf.mxu0  ;;  %v8232_v18 = vpop.f32.mrf.mxu1 }
 0x171   : > { %2945 = vst [vmem:[#allocation2 + $0x14c] sm:$0xf] %v2944_v12  ;;  %v1064_v27 = vrot.slane %v1063_v28, 4  ;;  %4213 = vst [vmem:[#allocation2 + $0x9c] sm:$0xf] %v4027_v33  ;;  %v1074_v42 = vrot.slane %v1073_v21, 4  ;;  %v6046_v47 = vcombine.low %v2978_v26, %v2980_v37 }
 0x172   : > { %4289 = vst [vmem:[#allocation2 + $0xa0] sm:$0xf] %v6143_v14  ;;  %v1178_v43 = vld [vmem:[#allocation2 + $0x164] sm:$0xf]  ;;  %v8209_v45 = vrot.slane %v2827_v31, 4  ;;  %v2836_v55 = vrot.slane %v2834_v41, 4  ;;  %v8227_v14 = vadd.f32 %v6291_v50, %v6290_v32  ;;  %v6296_v32 = vpop.f32.mrf.mxu0  ;;  %v6362_v34 = vpop.f32.mrf.mxu1 }
 0x173   : > { %v1069_v53 = vsel %vm7704_vm14, %v1064_v27, %v1068_v2  ;;  %v2089_v51 = vld [vmem:[%s7482_s4 + $0x3c] sm:$0xf]  ;;  %v2472_v56 = vld [vmem:[%s7482_s4 + $0x38] sm:$0xf]  ;;  %v1179_v61 = vsel %vm7713_vm15, %v1074_v42, %v1178_v43  ;;  %3580 = vmatmul.mubr.bf16.gmra.mxu0 %v6046_v47  ;;  %v6114_v1 = vld [vmem:[%s7482_s4 + $0x40] sm:$0xf] }
 0x174   : > { %1177 = vst [vmem:[#allocation2 + $0x158] sm:$0xf] %v1069_v53  ;;  %v2227_v49 = vshrl.u32 %v2089_v51, 16  ;;  %v2230_v63 = vshll.u32 %v2089_v51, 16  ;;  %v2473_v62 = vld [vmem:[%s7482_s4 + $0x3c] sm:$0xf]  ;;  %v2837_v54 = vor.u32 %v2836_v55, %v8205_v38  ;;  %v2833_v30 = vsel %vm7704_vm14, %v8209_v45, %v8205_v38  ;;  %v6297_v53 = vpop.f32.mrf.mxu0  ;;  %v6363_v55 = vpop.f32.mrf.mxu1 }
 0x175   : > { %2504 = vst [vmem:[#allocation2 + $0xac] sm:$0xf] %v2472_v56  ;;  %1180 = vst [vmem:[#allocation2 + $0x164] sm:$0xf] %v1179_v61  ;;  %v6115_v59 = vld [vmem:[%s7482_s4 + $0x44] sm:$0xf] }
 0x176   : > { %2505 = vst [vmem:[#allocation2 + $0xb8] sm:$0xf] %v2473_v62  ;;  %v4029_v26 = vshrl.u32 %v6114_v1, 16  ;;  %v4032_v5 = vshll.u32 %v6114_v1, 16  ;;  %v2225_v35 = vrot.slane %v7773_v7, 4  ;;  %v2229_v15 = vrot.slane %v2227_v49, 7 }
 0x177   : > { %v4037_v2 = vshrl.u32 %v6115_v59, 16  ;;  %v4040_v16 = vshll.u32 %v6115_v59, 16  ;;  %v2838_v0 = vrot.slane %v2837_v54, 4  ;;  %v8234_v24 = vld [vmem:[#allocation2 + $0xa8] sm:$0xf]  ;;  %v2241_v49 = vrot.slane %v7812_v36, 4 }
 0x178   : > { %v4031_v23 = vrot.slane %v4029_v26, 7  ;;  %v347_v33 = vld [vmem:[#allocation2 + $0x17c] sm:$0x8]  ;;  %v2232_v28 = vor.u32 %v2230_v63, %v2229_v15  ;;  %v804_v21 = vld [vmem:[%s7482_s4 + $0x70] sm:$0xf]  ;;  %v8260_v59 = vadd.f32 %v6297_v53, %v6296_v32  ;;  %v8262_v26 = vadd.f32 %v6363_v55, %v6362_v34 }
 0x179   : > { %v4039_v7 = vrot.slane %v4037_v2, 7  ;;  %v348_v12 = vsel %vm7664_vm10, 0, %v347_v33  ;;  %v805_v31 = vld [vmem:[%s7482_s4 + $0x74] sm:$0xf]  ;;  %v1076_v27 = vshrl.u32 %v804_v21, 16  ;;  %v1079_v41 = vshll.u32 %v804_v21, 16 }
 0x17a   : > { %v8244_v37 = vor.u32 %v4032_v5, %v4031_v23  ;;  %v4035_v57 = vrot.slane %v4031_v23, 4  ;;  %349 = vst [vmem:[#allocation2 + $0x17c] sm:$0x8] %v348_v12  ;;  %v2552_v42 = vld [vmem:[%s7482_s4 + $0x78] sm:$0xf]  ;;  %v2233_v38 = vsel %vm7510_vm4, %v2225_v35, %v2232_v28  ;;  %v1085_v45 = vshll.u32 %v805_v31, 16  ;;  %v8264_v5 = vpop.f32.mrf.mxu0  ;;  %v8266_v35 = vpop.f32.mrf.mxu1 }
 0x17b   : > { %v4042_v43 = vor.u32 %v4040_v16, %v4039_v7  ;;  %v1089_v47 = vshrl.u32 %v805_v31, 16  ;;  %v2553_v50 = vld [vmem:[%s7482_s4 + $0x7c] sm:$0xf]  ;;  %v8251_v9 = vld [vmem:[%s7482_s4 + $0x44] sm:$0xf]  ;;  %v1078_v51 = vrot.slane %v1076_v27, 4 }
 0x17c   : > { %2425 = vst [vmem:[#allocation2 + $0xb4] sm:$0xf] %v2233_v38  ;;  %v1081_v56 = vrot.slane %v1079_v41, 5  ;;  %v2840_v61 = vshrl.u32 %v2552_v42, 16  ;;  %v7053_v63 = vld [vmem:[#allocation2 + $0x158] ss:$12 sps:$4 sm:$0xff]   ;;  %v4215_v54 = vsel %vm7522_vm7, %v8244_v37, %v8234_v24  ;;  %v8277_v37 = vpop.f32.mrf.mxu1 }
 0x17d   : > { %v2947_v62 = vld [vmem:[#allocation2 + $0x164] sm:$0xf]  ;;  %v4043_v1 = vsel %vm7510_vm4, %v4035_v57, %v4042_v43  ;;  %2946 = vst [vmem:[#allocation2 + $0x158] sm:$0xf] %v2833_v30  ;;  %v1087_v16 = vrot.slane %v1085_v45, 5  ;;  %v1091_v23 = vrot.slane %v1089_v47, 4  ;;  %6731 = vmatmul.mubr.bf16.gmra.mxu1 %v7053_v63 }
 0x17e   : > { %v2948_v15 = vsel %vm7713_vm15, %v2838_v0, %v2947_v62  ;;  %v1082_v2 = vor.u32 %v1081_v56, %v1078_v51  ;;  %v2474_v33 = vld [vmem:[%s7482_s4 + $0x40] sm:$0xf]  ;;  %v2475_v28 = vld [vmem:[%s7482_s4 + $0x44] sm:$0xf]  ;;  %v2982_v24 = vld [vmem:[#allocation2 + $0xa8] sm:$0xff]  ;;  %v2842_v21 = vrot.slane %v2840_v61, 4  ;;  %v8275_v0 = vpop.f32.mrf.mxu0  ;;  %6734 = vmatprep.mubr.msk.bf16.mxu1 %vm7331_vm13, %v9010_v20  ;;  %v8288_v56 = vpop.f32.mrf.mxu1 }
 0x17f   : > { %2949 = vst [vmem:[#allocation2 + $0x164] sm:$0xf] %v2948_v15  ;;  %v6144_v7 = vld [vmem:[%s7482_s4 + $0x40] sm:$0xf]  ;;  %v6145_v12 = vld [vmem:[%s7482_s4 + $0x44] sm:$0xf]  ;;  %v1092_v27 = vor.u32 %v1091_v23, %v1087_v16 }
 0x180   : > { %v2843_v31 = vshll.u32 %v2552_v42, 16  ;;  %v2849_v32 = vshll.u32 %v2553_v50, 16  ;;  %v2853_v34 = vshrl.u32 %v2553_v50, 16  ;;  %2506 = vst [vmem:[#allocation2 + $0xc4] sm:$0xf] %v2474_v33  ;;  %9035 = vst [vmem:[#allocation15_spill] sm:$0xff] %v8277_v37  ;;  %v8286_v51 = vpop.f32.mrf.mxu0 }
 0x181   : > { %2507 = vst [vmem:[#allocation2 + $0xd0] sm:$0xf] %v2475_v28  ;;  %v6116_v30 = vld [vmem:[%s7482_s4 + $0x48] sm:$0xf]  ;;  %v1083_v57 = vrot.slane %v1082_v2, 4  ;;  %v2243_v41 = vshrl.u32 %v8251_v9, 16 }
 0x182   : > { %v2246_v38 = vshll.u32 %v8251_v9, 16  ;;  %v6117_v43 = vld [vmem:[%s7482_s4 + $0x4c] sm:$0xf]  ;;  %v7104_v42 = vld [vmem:[#allocation6 + $0x200] sm:$0xff]   ;;  %v1182_v45 = vld [vmem:[#allocation2 + $0x17c] sm:$0xf] }
 0x183   : > { %v2845_v47 = vrot.slane %v2843_v31, 5  ;;  %v8284_v50 = vrot.slane %v2849_v32, 5  ;;  %v2855_v53 = vrot.slane %v2853_v34, 4  ;;  %v4045_v55 = vshrl.u32 %v6116_v30, 16  ;;  %6801 = vmatpush3.bf16.msra.mxu0 %v7104_v42  ;;  %v2984_v9 = vld [vmem:[#allocation2 + $0xb4] sm:$0xff]  ;;  %v6303_v32 = vpop.f32.mrf.mxu0  ;;  %v6369_v34 = vpop.f32.mrf.mxu1 }
 0x184   : > { %v1088_v61 = vsel %vm7704_vm14, %v1083_v57, %v1087_v16  ;;  %v1093_v63 = vrot.slane %v1092_v27, 4  ;;  %v2245_v62 = vrot.slane %v2243_v41, 7  ;;  %v4048_v15 = vshll.u32 %v6116_v30, 16  ;;  %v7056_v2 = vld [vmem:[#allocation2 + $0xac] ss:$12 sps:$4 sm:$0xff]  }
 0x185   : > { %1181 = vst [vmem:[#allocation2 + $0x170] sm:$0xf] %v1088_v61  ;;  %v2846_v23 = vor.u32 %v2845_v47, %v2842_v21  ;;  %v2856_v33 = vor.u32 %v2855_v53, %v8284_v50  ;;  %v8293_v28 = vrot.slane %v4045_v55, 7  ;;  %v4053_v31 = vshrl.u32 %v6117_v43, 16  ;;  %4216 = vst [vmem:[#allocation2 + $0xa8] sm:$0xf] %v4215_v54  ;;  %3587 = vmatprep.mubr.bf16.mxu0 %v7056_v2  ;;  %v8302_v54 = vpop.f32.mrf.mxu0 }
 0x186   : > { %4217 = vst [vmem:[#allocation2 + $0xb4] sm:$0xf] %v4043_v1  ;;  %4290 = vst [vmem:[#allocation2 + $0xac] sm:$0xf] %v6144_v7  ;;  %v1183_v16 = vsel %vm7713_vm15, %v1093_v63, %v1182_v45  ;;  %v6049_v30 = vcombine.low %v2982_v24, %v2984_v9  ;;  %v2248_v57 = vor.u32 %v2246_v38, %v2245_v62  ;;  %v4056_v27 = vshll.u32 %v6117_v43, 16  ;;  %v8304_v7 = vpop.f32.mrf.mxu1 }
 0x187   : > { %4291 = vst [vmem:[#allocation2 + $0xb8] sm:$0xf] %v6145_v12  ;;  %1184 = vst [vmem:[#allocation2 + $0x17c] sm:$0xf] %v1183_v16  ;;  %v2847_v21 = vrot.slane %v2846_v23, 4  ;;  %v2857_v41 = vrot.slane %v2856_v33, 4  ;;  %v8298_v42 = vor.u32 %v4048_v15, %v8293_v28 }
 0x188   : > { %v8300_v47 = vld [vmem:[#allocation2 + $0xc0] sm:$0xf]  ;;  %v302_v1 = vld [vmem:[#allocation2 + $0x14] sm:$0x8]  ;;  %9036 = vst [vmem:[#allocation16_spill] sm:$0xff] %v8304_v7  ;;  %3588 = vmatmul.mubr.bf16.gmra.mxu0 %v6049_v30  ;;  %v2249_v24 = vsel %vm7510_vm4, %v2241_v49, %v2248_v57  ;;  %v4051_v12 = vrot.slane %v8293_v28, 4  ;;  %v8319_v49 = vpop.f32.mrf.mxu0  ;;  %v8321_v62 = vpop.f32.mrf.mxu1 }
 0x189   : > { %v4055_v38 = vrot.slane %v4053_v31, 7  ;;  %v303_v43 = vsel %vm7664_vm10, 0, %v302_v1  ;;  %v2522_v45 = vld [vmem:[%s7482_s4] sm:$0xf]  ;;  %v2852_v53 = vsel %vm7704_vm14, %v2847_v21, %v8284_v50  ;;  %2429 = vst [vmem:[#allocation2 + $0xcc] sm:$0xf] %v2249_v24  ;;  %v4219_v57 = vsel %vm7522_vm7, %v8298_v42, %v8300_v47 }
 0x18a   : > { %304 = vst [vmem:[#allocation2 + $0x14] sm:$0x8] %v303_v43  ;;  %v2523_v55 = vld [vmem:[%s7482_s4 + $0x4] sm:$0xf]  ;;  %v2555_v61 = vshrl.u32 %v2522_v45, 16  ;;  %v2558_v36 = vshll.u32 %v2522_v45, 16  ;;  %v6308_v16 = vpop.f32.mrf.mxu0  ;;  %v8335_v42 = vadd.f32 %v6303_v32, %v8286_v51  ;;  %v8338_v47 = vadd.f32 %v6369_v34, %v8288_v56 }
 0x18b   : > { %v6160_v63 = vld [vmem:[%s7482_s4 + $0x8] sm:$0xf]  ;;  %9037 = vst [vmem:[#allocation17_spill] sm:$0xff] %v8321_v62  ;;  %v4058_v15 = vor.u32 %v4056_v27, %v4055_v38  ;;  %v2564_v44 = vshll.u32 %v2523_v55, 16  ;;  %v2568_v9 = vshrl.u32 %v2523_v55, 16  ;;  %v2986_v30 = vld [vmem:[#allocation2 + $0xc0] sm:$0xff]  ;;  %v1895_v38 = vpop.f32.mrf.mxu1 }
 0x18c   : > { %v6161_v2 = vld [vmem:[%s7482_s4 + $0xc] sm:$0xf]  ;;  %v4337_v23 = vshrl.u32 %v6160_v63, 16  ;;  %v2557_v33 = vrot.slane %v2555_v61, 4  ;;  %v2560_v28 = vrot.slane %v2558_v36, 5  ;;  %v4340_v50 = vshll.u32 %v6160_v63, 16  ;;  %v6309_v63 = vpop.f32.mrf.mxu0 }
 0x18d   : > { %v4346_v31 = vshll.u32 %v6161_v2, 16  ;;  %v6146_v21 = vld [vmem:[%s7482_s4 + $0x48] sm:$0xf]  ;;  %v6147_v1 = vld [vmem:[%s7482_s4 + $0x4c] sm:$0xf]  ;;  %v2566_v24 = vrot.slane %v2564_v44, 5  ;;  %v4059_v7 = vsel %vm7510_vm4, %v4051_v12, %v4058_v15  ;;  %v6680_v44 = vpop.f32.mrf.mxu1  ;;  %v8346_v56 = vadd.f32 %v8169_v11, %v1895_v38 }
 0x18e   : > { %v2570_v43 = vrot.slane %v2568_v9, 4  ;;  %v4339_v27 = vrot.slane %v4337_v23, 4  ;;  %v2561_v45 = vor.u32 %v2560_v28, %v2557_v33  ;;  %v4342_v55 = vrot.slane %v4340_v50, 5  ;;  %v7058_v20 = vld [vmem:[#allocation2 + $0x170] ss:$12 sps:$4 sm:$0xff]   ;;  %v8343_v50 = vpop.f32.mrf.mxu0 }
 0x18f   : > { %v8330_v61 = vrot.slane %v4346_v31, 5  ;;  %v4350_v36 = vshrl.u32 %v6161_v2, 16  ;;  %v2951_v62 = vld [vmem:[#allocation2 + $0x17c] sm:$0xf]  ;;  %2950 = vst [vmem:[#allocation2 + $0x170] sm:$0xf] %v2852_v53  ;;  %6735 = vmatmul.mubr.bf16.gmra.mxu1 %v7058_v20  ;;  %v1898_v34 = vpop.f32.mrf.mxu1 }
 0x190   : > { %v2571_v37 = vor.u32 %v2570_v43, %v2566_v24  ;;  %v2952_v9 = vsel %vm7713_vm15, %v2857_v41, %v2951_v62  ;;  %v2562_v23 = vrot.slane %v2561_v45, 4  ;;  %v4343_v2 = vor.u32 %v4342_v55, %v4339_v27  ;;  %v6162_v28 = vld [vmem:[%s7482_s4 + $0x10] sm:$0xf]  ;;  %4220 = vst [vmem:[#allocation2 + $0xc0] sm:$0xf] %v4219_v57  ;;  %v8353_v43 = vpop.f32.mrf.mxu0 }
 0x191   : > { %v4352_v33 = vrot.slane %v4350_v36, 4  ;;  %2953 = vst [vmem:[#allocation2 + $0x17c] sm:$0xf] %v2952_v9  ;;  %v2988_v12 = vld [vmem:[#allocation2 + $0xcc] sm:$0xff]  ;;  %v2891_v15 = vld [vmem:[#allocation2 + $0x14] sm:$0xf]  ;;  %v8359_v55 = vadd.f32 %v6309_v63, %v6308_v16 }
 0x192   : > { %v7059_v51 = vld [vmem:[#allocation2 + $0xc4] ss:$12 sps:$4 sm:$0xff]   ;;  %v2572_v32 = vrot.slane %v2571_v37, 4  ;;  %4221 = vst [vmem:[#allocation2 + $0xcc] sm:$0xf] %v4059_v7  ;;  %v2567_v41 = vsel %vm7704_vm14, %v2562_v23, %v2566_v24  ;;  %v6052_v62 = vcombine.low %v2986_v30, %v2988_v12  ;;  %v2257_v31 = vrot.slane %v7847_v19, 4  ;;  %v6314_v36 = vpop.f32.mrf.mxu0 }
 0x193   : > { %4292 = vst [vmem:[#allocation2 + $0xc4] sm:$0xf] %v6146_v21  ;;  %4293 = vst [vmem:[#allocation2 + $0xd0] sm:$0xf] %v6147_v1  ;;  %v4353_v53 = vor.u32 %v4352_v33, %v8330_v61  ;;  %v6163_v20 = vld [vmem:[%s7482_s4 + $0x14] sm:$0xf]  ;;  %3595 = vmatprep.mubr.bf16.mxu0 %v7059_v51  ;;  %v6681_v21 = vpop.f32.mrf.mxu1  ;;  %v6289_v24 = vadd.f32 %v8190_v6, %v8174_v39 }
 0x194   : > { %2890 = vst [vmem:[#allocation2 + $0x8] sm:$0xf] %v2567_v41  ;;  %v2892_v11 = vsel %vm7713_vm15, %v2572_v32, %v2891_v15  ;;  %v4356_v37 = vshrl.u32 %v6162_v28, 16  ;;  %v4359_v7 = vshll.u32 %v6162_v28, 16  ;;  %v4365_v57 = vshll.u32 %v6163_v20, 16  ;;  %3596 = vmatmul.mubr.bf16.gmra.mxu0 %v6052_v62  ;;  %v6315_v51 = vpop.f32.mrf.mxu0  ;;  %v7064_v62 = vld [vmem:[#allocation6 + $0x1b8] sm:$0xff]  }
 0x195   : > { %2893 = vst [vmem:[#allocation2 + $0x14] sm:$0xf] %v2892_v11  ;;  %v4344_v1 = vrot.slane %v4343_v2, 4  ;;  %v4369_v30 = vshrl.u32 %v6163_v20, 16  ;;  %v4354_v44 = vrot.slane %v4353_v53, 4  ;;  %v8361_v23 = vadd.f32 %v6289_v24, %v1898_v34 }
 0x196   : > { %v4358_v27 = vrot.slane %v4356_v37, 4  ;;  %v4361_v38 = vrot.slane %v4359_v7, 5  ;;  %v4367_v45 = vrot.slane %v4365_v57, 5  ;;  %v2093_v28 = vld [vmem:[%s7482_s4 + $0x4c] sm:$0xf]  ;;  %v8371_v7 = vpop.f32.mrf.mxu0 }
 0x197   : > { %v4371_v9 = vrot.slane %v4369_v30, 4  ;;  %9038 = vst [vmem:[#allocation18_spill] sm:$0xff] %v8361_v23  ;;  %v2476_v2 = vld [vmem:[%s7482_s4 + $0x48] sm:$0xf]  ;;  %v2477_v12 = vld [vmem:[%s7482_s4 + $0x4c] sm:$0xf]  ;;  %v4349_v39 = vsel %vm7704_vm14, %v4344_v1, %v8330_v61  ;;  %v1903_v61 = vpop.f32.mrf.mxu1  ;;  %v8373_v1 = vadd.f32 %v6315_v51, %v6314_v36 }
 0x198   : > { %v4362_v33 = vor.u32 %v4361_v38, %v4358_v27  ;;  %v7062_v6 = vld [vmem:[#allocation2 + $0x20] ss:$12 sps:$4 sm:$0xff]   ;;  %v2259_v16 = vshrl.u32 %v2093_v28, 16  ;;  %v2262_v63 = vshll.u32 %v2093_v28, 16  ;;  %2508 = vst [vmem:[#allocation2 + $0xdc] sm:$0xf] %v2476_v2 }
 0x199   : > { %v4372_v32 = vor.u32 %v4371_v9, %v4367_v45  ;;  %2509 = vst [vmem:[#allocation2 + $0xe8] sm:$0xf] %v2477_v12  ;;  %v6118_v15 = vld [vmem:[%s7482_s4 + $0x50] sm:$0xf]  ;;  %v6119_v41 = vld [vmem:[%s7482_s4 + $0x54] sm:$0xf]  ;;  %v8378_v9 = vadd.f32 %v8227_v14, %v1903_v61  ;;  %v6684_v51 = vpop.f32.mrf.mxu1  ;;  %v6295_v14 = vadd.f32 %v8230_v17, %v8221_v58 }
 0x19a   : > { %v4363_v53 = vrot.slane %v4362_v33, 4  ;;  %v4656_v34 = vld [vmem:[#allocation2 + $0x2c] sm:$0xf]  ;;  %v4061_v20 = vshrl.u32 %v6118_v15, 16  ;;  %v4064_v11 = vshll.u32 %v6118_v15, 16  ;;  %v4069_v37 = vshrl.u32 %v6119_v41, 16 }
 0x19b   : > { %v4373_v57 = vrot.slane %v4372_v32, 4  ;;  %v2261_v21 = vrot.slane %v2259_v16, 7  ;;  %v4072_v30 = vshll.u32 %v6119_v41, 16  ;;  %9039 = vst [vmem:[#allocation19_spill] sm:$0xff] %v8378_v9  ;;  %v7070_v12 = vld [vmem:[#allocation6 + $0x1f0] sm:$0xff]   ;;  %v1906_v41 = vpop.f32.mrf.mxu1  ;;  %v7089_v23 = vld [vmem:[#allocation6 + $0x1d8] sm:$0xff]  }
 0x19c   : > { %v7061_v24 = vld [vmem:[#allocation2 + $0x8] ss:$12 sps:$4 sm:$0xff]   ;;  %v4368_v38 = vsel %vm7704_vm14, %v4363_v53, %v4367_v45  ;;  %v4063_v36 = vrot.slane %v4061_v20, 7  ;;  %v4071_v45 = vrot.slane %v4069_v37, 7  ;;  %v7068_v16 = vld [vmem:[#allocation2 + $0x38] ss:$12 sps:$4 sm:$0xff]   ;;  %v8394_v58 = vadd.f32 %v6295_v14, %v1906_v41 }
 0x19d   : > { %v4652_v27 = vld [vmem:[#allocation2 + $0x14] sm:$0xf]  ;;  %4651 = vst [vmem:[#allocation2 + $0x8] sm:$0xf] %v4349_v39  ;;  %4655 = vst [vmem:[#allocation2 + $0x20] sm:$0xf] %v4368_v38  ;;  %v4657_v28 = vsel %vm7713_vm15, %v4373_v57, %v4656_v34  ;;  %v2264_v2 = vor.u32 %v2262_v63, %v2261_v21  ;;  %6754 = vmatprep.mubr.bf16.mxu1 %v7061_v24  ;;  %v8386_v39 = vpop.f32.mrf.mxu0  ;;  %v6685_v57 = vpop.f32.mrf.mxu1 }
 0x19e   : > { %v4653_v33 = vsel %vm7713_vm15, %v4354_v44, %v4652_v27  ;;  %4658 = vst [vmem:[#allocation2 + $0x2c] sm:$0xf] %v4657_v28  ;;  %6755 = vmatmul.mubr.bf16.vlgmr.msra.gmra.mxu1 %v7062_v6  ;;  %v4066_v32 = vor.u32 %v4064_v11, %v4063_v36  ;;  %v6164_v63 = vld [vmem:[%s7482_s4 + $0x18] sm:$0xf]  ;;  %v7071_v15 = vld [vmem:[#allocation6 + $0x1b0] sm:$0xff]   ;;  %9040 = vst [vmem:[#allocation20_spill] sm:$0xff] %v8394_v58  ;;  %v4074_v19 = vor.u32 %v4072_v30, %v4071_v45 }
 0x19f   : > { %4654 = vst [vmem:[#allocation2 + $0x14] sm:$0xf] %v4653_v33  ;;  %v2265_v44 = vsel %vm7510_vm4, %v2257_v31, %v2264_v2  ;;  %6534 = vmatpush3.bf16.msra.mxu1 %v7064_v62  ;;  %v4222_v53 = vld [vmem:[#allocation2 + $0xd8] sm:$0xf]  ;;  %v6165_v34 = vld [vmem:[%s7482_s4 + $0x1c] sm:$0xf]  ;;  %6758 = vmatprep.mubr.bf16.mxu1 %v7068_v16  ;;  %v6320_v27 = vpop.f32.mrf.mxu0 }
 0x1a0   : > { %2433 = vst [vmem:[#allocation2 + $0xe4] sm:$0xf] %v2265_v44  ;;  %v4375_v20 = vshrl.u32 %v6164_v63, 16  ;;  %v4378_v37 = vshll.u32 %v6164_v63, 16  ;;  %v4067_v17 = vrot.slane %v4063_v36, 4  ;;  %v4384_v31 = vshll.u32 %v6165_v34, 16  ;;  %6535 = vmatprep.subr.bf16.mxu1 %v7070_v12 }
 0x1a1   : > { %v4388_v6 = vshrl.u32 %v6165_v34, 16  ;;  %v7076_v11 = vld [vmem:[#allocation6 + $0x1e8] sm:$0xff]   ;;  %v7069_v61 = vld [vmem:[#allocation2 + $0x50] ss:$12 sps:$4 sm:$0xff]   ;;  %v4223_v38 = vsel %vm7522_vm7, %v4066_v32, %v4222_v53  ;;  %v6149_v28 = vld [vmem:[%s7482_s4 + $0x54] sm:$0xf]  ;;  %v6321_v41 = vpop.f32.mrf.mxu0 }
 0x1a2   : > { %v4377_v62 = vrot.slane %v4375_v20, 4  ;;  %v4380_v21 = vrot.slane %v4378_v37, 5  ;;  %v7077_v24 = vld [vmem:[#allocation6 + $0x1a8] sm:$0xff]   ;;  %v6148_v33 = vld [vmem:[%s7482_s4 + $0x50] sm:$0xf]  ;;  %v4386_v2 = vrot.slane %v4384_v31, 5  ;;  %v4075_v20 = vsel %vm7510_vm4, %v4067_v17, %v4074_v19 }
 0x1a3   : > { %v4390_v30 = vrot.slane %v4388_v6, 4  ;;  %v6166_v36 = vld [vmem:[%s7482_s4 + $0x20] sm:$0xf]  ;;  %v6167_v51 = vld [vmem:[%s7482_s4 + $0x24] sm:$0xf]  ;;  %6536 = vmatpush3.bf16.msra.mxu1 %v7071_v15  ;;  %v2990_v34 = vld [vmem:[#allocation2 + $0xd8] sm:$0xff]  ;;  %v8404_v53 = vadd.f32 %v6321_v41, %v6320_v27 }
 0x1a4   : > { %v4381_v45 = vor.u32 %v4380_v21, %v4377_v62  ;;  %v4660_v14 = vld [vmem:[#allocation2 + $0x44] sm:$0xf]  ;;  %v4394_v44 = vshrl.u32 %v6166_v36, 16  ;;  %v4397_v12 = vshll.u32 %v6166_v36, 16  ;;  %v4403_v16 = vshll.u32 %v6167_v51, 16  ;;  %6537 = vmatprep.subr.bf16.mxu1 %v7076_v11 }
 0x1a5   : > { %v7083_v63 = vld [vmem:[#allocation6 + $0x1e0] sm:$0xff]   ;;  %v4391_v37 = vor.u32 %v4390_v30, %v4386_v2  ;;  %v4407_v32 = vshrl.u32 %v6167_v51, 16  ;;  %v7066_v15 = vld [vmem:[#allocation2 + $0xdc] ss:$12 sps:$4 sm:$0xff]   ;;  %4224 = vst [vmem:[#allocation2 + $0xd8] sm:$0xf] %v4223_v38 }
 0x1a6   : > { %v4382_v31 = vrot.slane %v4381_v45, 4  ;;  %v4396_v6 = vrot.slane %v4394_v44, 4  ;;  %v4399_v57 = vrot.slane %v4397_v12, 5  ;;  %v4405_v62 = vrot.slane %v4403_v16, 5  ;;  %v7084_v21 = vld [vmem:[#allocation6 + $0x1a0] sm:$0xff]   ;;  %6759 = vmatmul.mubr.bf16.gmra.mxu1 %v7069_v61  ;;  %3603 = vmatprep.mubr.bf16.mxu0 %v7066_v15 }
 0x1a7   : > { %v2992_v36 = vld [vmem:[#allocation2 + $0xe4] sm:$0xff]  ;;  %v4392_v58 = vrot.slane %v4391_v37, 4  ;;  %v4409_v9 = vrot.slane %v4407_v32, 4  ;;  %4294 = vst [vmem:[#allocation2 + $0xdc] sm:$0xf] %v6148_v33  ;;  %6538 = vmatpush3.bf16.msra.mxu1 %v7077_v24  ;;  %v1911_v24 = vpop.f32.mrf.mxu1 }
 0x1a8   : > { %4225 = vst [vmem:[#allocation2 + $0xe4] sm:$0xf] %v4075_v20  ;;  %4295 = vst [vmem:[#allocation2 + $0xe8] sm:$0xf] %v6149_v28  ;;  %v4387_v17 = vsel %vm7704_vm14, %v4382_v31, %v4386_v2  ;;  %v6055_v19 = vcombine.low %v2990_v34, %v2992_v36  ;;  %v4400_v11 = vor.u32 %v4399_v57, %v4396_v6  ;;  %v4664_v27 = vld [vmem:[#allocation2 + $0x5c] sm:$0xf]  ;;  %6539 = vmatprep.subr.bf16.mxu1 %v7083_v63  ;;  %v8415_v34 = vpop.f32.mrf.mxu0 }
 0x1a9   : > { %v2095_v30 = vld [vmem:[%s7482_s4 + $0x54] sm:$0xf]  ;;  %v2478_v51 = vld [vmem:[%s7482_s4 + $0x50] sm:$0xf]  ;;  %4659 = vst [vmem:[#allocation2 + $0x38] sm:$0xf] %v4387_v17  ;;  %v4661_v61 = vsel %vm7713_vm15, %v4392_v58, %v4660_v14  ;;  %v4410_v38 = vor.u32 %v4409_v9, %v4405_v62  ;;  %v8421_v6 = vadd.f32 %v8260_v59, %v1911_v24  ;;  %v6688_v57 = vpop.f32.mrf.mxu1 }
 0x1aa   : > { %v2275_v45 = vshrl.u32 %v2095_v30, 16  ;;  %v2278_v33 = vshll.u32 %v2095_v30, 16  ;;  %v2479_v28 = vld [vmem:[%s7482_s4 + $0x54] sm:$0xf]  ;;  %2510 = vst [vmem:[#allocation2 + $0xf4] sm:$0xf] %v2478_v51  ;;  %3604 = vmatmul.mubr.bf16.gmra.mxu0 %v6055_v19  ;;  %v8430_v30 = vpop.f32.mrf.mxu0 }
 0x1ab   : > { %v6120_v44 = vld [vmem:[%s7482_s4 + $0x58] sm:$0xf]  ;;  %4662 = vst [vmem:[#allocation2 + $0x44] sm:$0xf] %v4661_v61  ;;  %v4401_v2 = vrot.slane %v4400_v11, 4  ;;  %v4411_v20 = vrot.slane %v4410_v38, 4  ;;  %6540 = vmatpush3.bf16.msra.mxu1 %v7084_v21  ;;  %v6301_v21 = vadd.f32 %v8275_v0, %v8264_v5  ;;  %v1914_v59 = vpop.f32.mrf.mxu1 }
 0x1ac   : > { %2511 = vst [vmem:[#allocation2 + $0x100] sm:$0xf] %v2479_v28  ;;  %v6121_v12 = vld [vmem:[%s7482_s4 + $0x5c] sm:$0xf]  ;;  %v4077_v16 = vshrl.u32 %v6120_v44, 16  ;;  %v4080_v41 = vshll.u32 %v6120_v44, 16  ;;  %6541 = vmatprep.subr.bf16.mxu1 %v7089_v23 }
 0x1ad   : > { %v2273_v58 = vrot.slane %v7876_v13, 4  ;;  %v2277_v9 = vrot.slane %v2275_v45, 7  ;;  %v4085_v14 = vshrl.u32 %v6121_v12, 16  ;;  %v4406_v37 = vsel %vm7704_vm14, %v4401_v2, %v4405_v62  ;;  %v7090_v31 = vld [vmem:[#allocation6 + $0x198] sm:$0xff]   ;;  %v7096_v17 = vld [vmem:[#allocation6 + $0x1d0] sm:$0xff]   ;;  %v7102_v0 = vld [vmem:[#allocation6 + $0x1c8] sm:$0xff]  }
 0x1ae   : > { %v4079_v63 = vrot.slane %v4077_v16, 7  ;;  %v4088_v32 = vshll.u32 %v6121_v12, 16  ;;  %4663 = vst [vmem:[#allocation2 + $0x50] sm:$0xf] %v4406_v37  ;;  %v4665_v36 = vsel %vm7713_vm15, %v4411_v20, %v4664_v27  ;;  %v7074_v19 = vld [vmem:[#allocation2 + $0x68] ss:$12 sps:$4 sm:$0xff]   ;;  %v8435_v2 = vadd.f32 %v6301_v21, %v1914_v59  ;;  %v6689_v12 = vpop.f32.mrf.mxu1 }
 0x1af   : > { %v2280_v13 = vor.u32 %v2278_v33, %v2277_v9  ;;  %v4087_v15 = vrot.slane %v4085_v14, 7  ;;  %4666 = vst [vmem:[#allocation2 + $0x5c] sm:$0xf] %v4665_v36  ;;  %v6168_v11 = vld [vmem:[%s7482_s4 + $0x28] sm:$0xf]  ;;  %v7097_v33 = vld [vmem:[#allocation6 + $0x190] sm:$0xff]   ;;  %6762 = vmatprep.mubr.bf16.mxu1 %v7074_v19  ;;  %6542 = vmatpush3.bf16.msra.mxu1 %v7090_v31 }
 0x1b0   : > { %v8425_v62 = vor.u32 %v4080_v41, %v4079_v63  ;;  %v4083_v61 = vrot.slane %v4079_v63, 4  ;;  %v4226_v27 = vld [vmem:[#allocation2 + $0xf0] sm:$0xf]  ;;  %v6169_v38 = vld [vmem:[%s7482_s4 + $0x2c] sm:$0xf]  ;;  %v4413_v45 = vshrl.u32 %v6168_v11, 16  ;;  %6543 = vmatprep.subr.bf16.mxu1 %v7096_v17  ;;  %v6326_v63 = vpop.f32.mrf.mxu0 }
 0x1b1   : > { %v2281_v51 = vsel %vm7510_vm4, %v2273_v58, %v2280_v13  ;;  %v4416_v23 = vshll.u32 %v6168_v11, 16  ;;  %v4090_v28 = vor.u32 %v4088_v32, %v4087_v15  ;;  %v4422_v44 = vshll.u32 %v6169_v38, 16  ;;  %v7075_v24 = vld [vmem:[#allocation2 + $0x80] ss:$12 sps:$4 sm:$0xff]   ;;  %v6170_v9 = vld [vmem:[%s7482_s4 + $0x30] sm:$0xf] }
 0x1b2   : > { %2437 = vst [vmem:[#allocation2 + $0xfc] sm:$0xf] %v2281_v51  ;;  %v4426_v5 = vshrl.u32 %v6169_v38, 16  ;;  %v4415_v16 = vrot.slane %v4413_v45, 4  ;;  %v6171_v14 = vld [vmem:[%s7482_s4 + $0x34] sm:$0xf]  ;;  %6763 = vmatmul.mubr.bf16.gmra.mxu1 %v7075_v24  ;;  %v4227_v17 = vsel %vm7522_vm7, %v8425_v62, %v4226_v27  ;;  %v6327_v12 = vpop.f32.mrf.mxu0 }
 0x1b3   : > { %v4418_v41 = vrot.slane %v4416_v23, 5  ;;  %v4424_v20 = vrot.slane %v4422_v44, 5  ;;  %v7103_v37 = vld [vmem:[#allocation6 + $0x188] sm:$0xff]   ;;  %v6150_v32 = vld [vmem:[%s7482_s4 + $0x58] sm:$0xf]  ;;  %v4432_v31 = vshrl.u32 %v6170_v9, 16  ;;  %v4091_v59 = vsel %vm7510_vm4, %v4083_v61, %v4090_v28  ;;  %6544 = vmatpush3.bf16.msra.mxu1 %v7097_v33 }
 0x1b4   : > { %v4428_v58 = vrot.slane %v4426_v5, 4  ;;  %v6151_v57 = vld [vmem:[%s7482_s4 + $0x5c] sm:$0xf]  ;;  %v4668_v13 = vld [vmem:[#allocation2 + $0x74] sm:$0xf]  ;;  %v4435_v15 = vshll.u32 %v6170_v9, 16  ;;  %6545 = vmatprep.subr.bf16.mxu1 %v7102_v0  ;;  %v8446_v9 = vadd.f32 %v6327_v12, %v6326_v63 }
 0x1b5   : > { %v4419_v36 = vor.u32 %v4418_v41, %v4415_v16  ;;  %v4441_v19 = vshll.u32 %v6171_v14, 16  ;;  %v7110_v11 = vld [vmem:[#allocation6 + $0x1c0] sm:$0xff]   ;;  %v2994_v21 = vld [vmem:[#allocation2 + $0xf0] sm:$0xff]  ;;  %v4445_v38 = vshrl.u32 %v6171_v14, 16  ;;  %v4434_v23 = vrot.slane %v4432_v31, 4 }
 0x1b6   : > { %v4429_v51 = vor.u32 %v4428_v58, %v4424_v20  ;;  %v4437_v44 = vrot.slane %v4435_v15, 5  ;;  %v7111_v24 = vld [vmem:[#allocation6 + $0x180] sm:$0xff]   ;;  %v4672_v33 = vld [vmem:[#allocation2 + $0x8c] sm:$0xf]  ;;  %v1919_v58 = vpop.f32.mrf.mxu1  ;;  %4228 = vst [vmem:[#allocation2 + $0xf0] sm:$0xf] %v4227_v17 }
 0x1b7   : > { %v4420_v45 = vrot.slane %v4419_v36, 4  ;;  %v4443_v5 = vrot.slane %v4441_v19, 5  ;;  %v4447_v41 = vrot.slane %v4445_v38, 4  ;;  %v7072_v28 = vld [vmem:[#allocation2 + $0xf4] ss:$12 sps:$4 sm:$0xff]   ;;  %6546 = vmatpush3.bf16.msra.mxu1 %v7103_v37  ;;  %v2289_v17 = vrot.slane %v7916_v52, 4  ;;  %v8463_v37 = vpop.f32.mrf.mxu0 }
 0x1b8   : > { %v4430_v16 = vrot.slane %v4429_v51, 4  ;;  %v4438_v27 = vor.u32 %v4437_v44, %v4434_v23  ;;  %4296 = vst [vmem:[#allocation2 + $0xf4] sm:$0xf] %v6150_v32  ;;  %v2097_v36 = vld [vmem:[%s7482_s4 + $0x5c] sm:$0xf]  ;;  %3611 = vmatprep.mubr.bf16.mxu0 %v7072_v28  ;;  %6547 = vmatprep.subr.bf16.mxu1 %v7110_v11 }
 0x1b9   : > { %v2996_v61 = vld [vmem:[#allocation2 + $0xfc] sm:$0xff]  ;;  %v4425_v62 = vsel %vm7704_vm14, %v4420_v45, %v4424_v20  ;;  %v4448_v63 = vor.u32 %v4447_v41, %v4443_v5  ;;  %v2480_v31 = vld [vmem:[%s7482_s4 + $0x58] sm:$0xf]  ;;  %v8456_v20 = vadd.f32 %v8335_v42, %v1919_v58  ;;  %v2291_v32 = vshrl.u32 %v2097_v36, 16  ;;  %v6123_v51 = vld [vmem:[%s7482_s4 + $0x64] sm:$0xf] }
 0x1ba   : > { %4229 = vst [vmem:[#allocation2 + $0xfc] sm:$0xf] %v4091_v59  ;;  %4297 = vst [vmem:[#allocation2 + $0x100] sm:$0xf] %v6151_v57  ;;  %v4669_v0 = vsel %vm7713_vm15, %v4430_v16, %v4668_v13  ;;  %v6058_v14 = vcombine.low %v2994_v21, %v2996_v61  ;;  %v2481_v15 = vld [vmem:[%s7482_s4 + $0x5c] sm:$0xf]  ;;  %v6692_v13 = vpop.f32.mrf.mxu1  ;;  %v6307_v42 = vadd.f32 %v8319_v49, %v8302_v54 }
 0x1bb   : > { %4667 = vst [vmem:[#allocation2 + $0x68] sm:$0xf] %v4425_v62  ;;  %4670 = vst [vmem:[#allocation2 + $0x74] sm:$0xf] %v4669_v0  ;;  %v4439_v19 = vrot.slane %v4438_v27, 4  ;;  %v2294_v57 = vshll.u32 %v2097_v36, 16  ;;  %6548 = vmatpush3.bf16.msra.mxu1 %v7111_v24  ;;  %v8472_v27 = vpop.f32.mrf.mxu0 }
 0x1bc   : > { %2512 = vst [vmem:[#allocation2 + $0x10c] sm:$0xf] %v2480_v31  ;;  %2513 = vst [vmem:[#allocation2 + $0x118] sm:$0xf] %v2481_v15  ;;  %v6122_v59 = vld [vmem:[%s7482_s4 + $0x60] sm:$0xf]  ;;  %3612 = vmatmul.mubr.bf16.gmra.mxu0 %v6058_v14  ;;  %v1922_v11 = vpop.f32.mrf.mxu1 }
 0x1bd   : > { %v4449_v21 = vrot.slane %v4448_v63, 4  ;;  %v4093_v38 = vshrl.u32 %v6122_v59, 16  ;;  %v4444_v45 = vsel %vm7704_vm14, %v4439_v19, %v4443_v5  ;;  %v2293_v23 = vrot.slane %v2291_v32, 7  ;;  %v7081_v5 = vld [vmem:[#allocation2 + $0x98] ss:$12 sps:$4 sm:$0xff]  }
 0x1be   : > { %v4096_v44 = vshll.u32 %v6122_v59, 16  ;;  %v4101_v12 = vshrl.u32 %v6123_v51, 16  ;;  %4671 = vst [vmem:[#allocation2 + $0x80] sm:$0xf] %v4444_v45  ;;  %v4104_v41 = vshll.u32 %v6123_v51, 16  ;;  %v8469_v61 = vadd.f32 %v6307_v42, %v1922_v11  ;;  %v6693_v28 = vpop.f32.mrf.mxu1  ;;  %6766 = vmatprep.mubr.bf16.mxu1 %v7081_v5 }
 0x1bf   : > { %v4673_v52 = vsel %vm7713_vm15, %v4449_v21, %v4672_v33  ;;  %v4095_v16 = vrot.slane %v4093_v38, 7  ;;  %v2296_v54 = vor.u32 %v2294_v57, %v2293_v23  ;;  %v6172_v62 = vld [vmem:[%s7482_s4 + $0x38] sm:$0xf]  ;;  %v4230_v14 = vld [vmem:[#allocation2 + $0x108] sm:$0xf]  ;;  %v6332_v38 = vpop.f32.mrf.mxu0 }
 0x1c0   : > { %4674 = vst [vmem:[#allocation2 + $0x8c] sm:$0xf] %v4673_v52  ;;  %v4103_v49 = vrot.slane %v4101_v12, 7  ;;  %v6173_v33 = vld [vmem:[%s7482_s4 + $0x3c] sm:$0xf]  ;;  %v4451_v63 = vshrl.u32 %v6172_v62, 16 }
 0x1c1   : > { %v2297_v58 = vsel %vm7510_vm4, %v2289_v17, %v2296_v54  ;;  %v4098_v0 = vor.u32 %v4096_v44, %v4095_v16  ;;  %v4454_v24 = vshll.u32 %v6172_v62, 16  ;;  %v4099_v36 = vrot.slane %v4095_v16, 4  ;;  %v7082_v59 = vld [vmem:[#allocation2 + $0xb0] ss:$12 sps:$4 sm:$0xff]   ;;  %v6174_v17 = vld [vmem:[%s7482_s4 + $0x40] sm:$0xf]  ;;  %v6333_v5 = vpop.f32.mrf.mxu0 }
 0x1c2   : > { %2441 = vst [vmem:[#allocation2 + $0x114] sm:$0xf] %v2297_v58  ;;  %v4106_v31 = vor.u32 %v4104_v41, %v4103_v49  ;;  %v4460_v15 = vshll.u32 %v6173_v33, 16  ;;  %v4464_v19 = vshrl.u32 %v6173_v33, 16  ;;  %v4453_v32 = vrot.slane %v4451_v63, 4  ;;  %6767 = vmatmul.mubr.bf16.gmra.mxu1 %v7082_v59 }
 0x1c3   : > { %v4456_v57 = vrot.slane %v4454_v24, 5  ;;  %v6175_v51 = vld [vmem:[%s7482_s4 + $0x44] sm:$0xf]  ;;  %v6152_v42 = vld [vmem:[%s7482_s4 + $0x60] sm:$0xf]  ;;  %v4470_v12 = vshrl.u32 %v6174_v17, 16  ;;  %v4231_v54 = vsel %vm7522_vm7, %v4098_v0, %v4230_v14  ;;  %v8487_v59 = vpop.f32.mrf.mxu0 }
 0x1c4   : > { %v4462_v13 = vrot.slane %v4460_v15, 5  ;;  %v4466_v21 = vrot.slane %v4464_v19, 4  ;;  %v6153_v45 = vld [vmem:[%s7482_s4 + $0x64] sm:$0xf]  ;;  %v4473_v11 = vshll.u32 %v6174_v17, 16  ;;  %v4479_v52 = vshll.u32 %v6175_v51, 16 }
 0x1c5   : > { %v4457_v23 = vor.u32 %v4456_v57, %v4453_v32  ;;  %v4676_v44 = vld [vmem:[#allocation2 + $0xa4] sm:$0xf]  ;;  %v2998_v16 = vld [vmem:[#allocation2 + $0x108] sm:$0xff]  ;;  %v4107_v41 = vsel %vm7510_vm4, %v4099_v36, %v4106_v31  ;;  %v4483_v28 = vshrl.u32 %v6175_v51, 16  ;;  %v4472_v58 = vrot.slane %v4470_v12, 4  ;;  %v1927_v32 = vpop.f32.mrf.mxu1 }
 0x1c6   : > { %v4467_v49 = vor.u32 %v4466_v21, %v4462_v13  ;;  %v4475_v33 = vrot.slane %v4473_v11, 5  ;;  %v4481_v63 = vrot.slane %v4479_v52, 5  ;;  %v7085_v19 = vld [vmem:[#allocation2 + $0x124] ss:$12 sps:$4 sm:$0xff]   ;;  %v8485_v57 = vadd.f32 %v6333_v5, %v6332_v38  ;;  %v7079_v31 = vld [vmem:[#allocation2 + $0x10c] ss:$12 sps:$4 sm:$0xff]  }
 0x1c7   : > { %v4458_v62 = vrot.slane %v4457_v23, 4  ;;  %v4485_v15 = vrot.slane %v4483_v28, 4  ;;  %v6124_v21 = vld [vmem:[%s7482_s4 + $0x68] sm:$0xf]  ;;  %v6313_v17 = vadd.f32 %v8353_v43, %v8343_v50  ;;  %v8495_v51 = vadd.f32 %v8359_v55, %v1927_v32  ;;  %4232 = vst [vmem:[#allocation2 + $0x108] sm:$0xf] %v4231_v54  ;;  %3619 = vmatprep.mubr.bf16.mxu0 %v7079_v31 }
 0x1c8   : > { %v4468_v24 = vrot.slane %v4467_v49, 4  ;;  %v4476_v14 = vor.u32 %v4475_v33, %v4472_v58  ;;  %4298 = vst [vmem:[#allocation2 + $0x10c] sm:$0xf] %v6152_v42  ;;  %v6125_v11 = vld [vmem:[%s7482_s4 + $0x6c] sm:$0xf]  ;;  %v4109_v52 = vshrl.u32 %v6124_v21, 16  ;;  %v6696_v49 = vpop.f32.mrf.mxu1 }
 0x1c9   : > { %v3000_v36 = vld [vmem:[#allocation2 + $0x114] sm:$0xff]  ;;  %v4463_v0 = vsel %vm7704_vm14, %v4458_v62, %v4462_v13  ;;  %v4486_v12 = vor.u32 %v4485_v15, %v4481_v63  ;;  %v4680_v13 = vld [vmem:[#allocation2 + $0xbc] sm:$0xf]  ;;  %v3002_v43 = vld [vmem:[#allocation2 + $0x120] sm:$0xff]  ;;  %v4112_v55 = vshll.u32 %v6124_v21, 16  ;;  %v4120_v42 = vshll.u32 %v6125_v11, 16  ;;  %v8502_v62 = vpop.f32.mrf.mxu0 }
 0x1ca   : > { %4233 = vst [vmem:[#allocation2 + $0x114] sm:$0xf] %v4107_v41  ;;  %4299 = vst [vmem:[#allocation2 + $0x118] sm:$0xf] %v6153_v45  ;;  %v4677_v38 = vsel %vm7713_vm15, %v4468_v24, %v4676_v44  ;;  %v6061_v23 = vcombine.low %v2998_v16, %v3000_v36  ;;  %v4477_v50 = vrot.slane %v4476_v14, 4  ;;  %v4117_v41 = vshrl.u32 %v6125_v11, 16  ;;  %v1930_v16 = vpop.f32.mrf.mxu1 }
 0x1cb   : > { %4675 = vst [vmem:[#allocation2 + $0x98] sm:$0xf] %v4463_v0  ;;  %4678 = vst [vmem:[#allocation2 + $0xa4] sm:$0xf] %v4677_v38  ;;  %v4234_v45 = vld [vmem:[#allocation2 + $0x120] sm:$0xf]  ;;  %v8506_v32 = vadd.f32 %v6313_v17, %v1930_v16  ;;  %v6338_v49 = vpop.f32.mrf.mxu0  ;;  %v6337_v60 = vadd.f32 %v8502_v62, %v8487_v59 }
 0x1cc   : > { %v6154_v54 = vld [vmem:[%s7482_s4 + $0x68] sm:$0xf]  ;;  %3620 = vmatmul.mubr.bf16.gmra.mxu0 %v6061_v23  ;;  %v4487_v28 = vrot.slane %v4486_v12, 4  ;;  %v4111_v5 = vrot.slane %v4109_v52, 7  ;;  %v6155_v44 = vld [vmem:[%s7482_s4 + $0x6c] sm:$0xf]  ;;  %v4482_v58 = vsel %vm7704_vm14, %v4477_v50, %v4481_v63  ;;  %v6697_v38 = vpop.f32.mrf.mxu1 }
 0x1cd   : > { %4300 = vst [vmem:[#allocation2 + $0x124] sm:$0xf] %v6154_v54  ;;  %v3004_v33 = vld [vmem:[#allocation2 + $0x12c] sm:$0xff]  ;;  %3627 = vmatprep.mubr.bf16.mxu0 %v7085_v19  ;;  %v4119_v24 = vrot.slane %v4117_v41, 7  ;;  %v7087_v15 = vld [vmem:[#allocation2 + $0xc8] ss:$12 sps:$4 sm:$0xff]  }
 0x1ce   : > { %4301 = vst [vmem:[#allocation2 + $0x130] sm:$0xf] %v6155_v44  ;;  %4679 = vst [vmem:[#allocation2 + $0xb0] sm:$0xf] %v4482_v58  ;;  %v4681_v36 = vsel %vm7713_vm15, %v4487_v28, %v4680_v13  ;;  %v4114_v31 = vor.u32 %v4112_v55, %v4111_v5  ;;  %v4115_v0 = vrot.slane %v4111_v5, 4  ;;  %6770 = vmatprep.mubr.bf16.mxu1 %v7087_v15  ;;  %v6339_v44 = vpop.f32.mrf.mxu0 }
 0x1cf   : > { %v6176_v14 = vld [vmem:[%s7482_s4 + $0x48] sm:$0xf]  ;;  %v6177_v21 = vld [vmem:[%s7482_s4 + $0x4c] sm:$0xf]  ;;  %4682 = vst [vmem:[#allocation2 + $0xbc] sm:$0xf] %v4681_v36  ;;  %v4122_v23 = vor.u32 %v4120_v42, %v4119_v24  ;;  %v6064_v52 = vcombine.low %v3002_v43, %v3004_v33 }
 0x1d0   : > { %v4489_v63 = vshrl.u32 %v6176_v14, 16  ;;  %v4492_v19 = vshll.u32 %v6176_v14, 16  ;;  %v4498_v12 = vshll.u32 %v6177_v21, 16  ;;  %v4235_v17 = vsel %vm7522_vm7, %v4114_v31, %v4234_v45  ;;  %v7088_v42 = vld [vmem:[#allocation2 + $0xe0] ss:$12 sps:$4 sm:$0xff]  }
 0x1d1   : > { %v4502_v11 = vshrl.u32 %v6177_v21, 16  ;;  %v4123_v13 = vsel %vm7510_vm4, %v4115_v0, %v4122_v23  ;;  %4236 = vst [vmem:[#allocation2 + $0x120] sm:$0xf] %v4235_v17  ;;  %v6178_v28 = vld [vmem:[%s7482_s4 + $0x50] sm:$0xf]  ;;  %6771 = vmatmul.mubr.bf16.gmra.mxu1 %v7088_v42  ;;  %v2321_v36 = vrot.slane %v7582_v22, 4  ;;  %v8519_v31 = vadd.f32 %v6339_v44, %v6338_v49  ;;  %v1935_v49 = vpop.f32.mrf.mxu1 }
 0x1d2   : > { %v4491_v50 = vrot.slane %v4489_v63, 4  ;;  %v4494_v55 = vrot.slane %v4492_v19, 5  ;;  %v4500_v41 = vrot.slane %v4498_v12, 5  ;;  %4237 = vst [vmem:[#allocation2 + $0x12c] sm:$0xf] %v4123_v13  ;;  %v4508_v45 = vshrl.u32 %v6178_v28, 16  ;;  %v8521_v19 = vpop.f32.mrf.mxu0 }
 0x1d3   : > { %v4504_v54 = vrot.slane %v4502_v11, 4  ;;  %v6179_v5 = vld [vmem:[%s7482_s4 + $0x54] sm:$0xf]  ;;  %v4511_v24 = vshll.u32 %v6178_v28, 16  ;;  %v4688_v11 = vld [vmem:[#allocation2 + $0xec] sm:$0xf] }
 0x1d4   : > { %v4495_v16 = vor.u32 %v4494_v55, %v4491_v50  ;;  %v4684_v58 = vld [vmem:[#allocation2 + $0xd4] sm:$0xf]  ;;  %v4517_v43 = vshll.u32 %v6179_v5, 16  ;;  %3628 = vmatmul.mubr.bf16.gmra.mxu0 %v6064_v52  ;;  %v4521_v15 = vshrl.u32 %v6179_v5, 16  ;;  %v4510_v14 = vrot.slane %v4508_v45, 4 }
 0x1d5   : > { %v4505_v33 = vor.u32 %v4504_v54, %v4500_v41  ;;  %v4513_v21 = vrot.slane %v4511_v24, 5  ;;  %v2101_v52 = vld [vmem:[%s7482_s4 + $0x6c] sm:$0xf]  ;;  %v2484_v22 = vld [vmem:[%s7482_s4 + $0x68] sm:$0xf]  ;;  %v8535_v45 = vadd.f32 %v8373_v1, %v1935_v49  ;;  %v6700_v24 = vpop.f32.mrf.mxu1 }
 0x1d6   : > { %v4496_v0 = vrot.slane %v4495_v16, 4  ;;  %v4519_v38 = vrot.slane %v4517_v43, 5  ;;  %v4523_v63 = vrot.slane %v4521_v15, 4  ;;  %v2323_v55 = vshrl.u32 %v2101_v52, 16  ;;  %v2485_v54 = vld [vmem:[%s7482_s4 + $0x6c] sm:$0xf] }
 0x1d7   : > { %v4506_v23 = vrot.slane %v4505_v33, 4  ;;  %v4514_v17 = vor.u32 %v4513_v21, %v4510_v14  ;;  %v2326_v42 = vshll.u32 %v2101_v52, 16  ;;  %2516 = vst [vmem:[#allocation2 + $0x13c] sm:$0xf] %v2484_v22  ;;  %v6126_v28 = vld [vmem:[%s7482_s4 + $0x70] sm:$0xf]  ;;  %v6319_v16 = vadd.f32 %v8386_v39, %v8371_v7 }
 0x1d8   : > { %v4501_v12 = vsel %vm7704_vm14, %v4496_v0, %v4500_v41  ;;  %v4524_v50 = vor.u32 %v4523_v63, %v4519_v38  ;;  %2517 = vst [vmem:[#allocation2 + $0x148] sm:$0xf] %v2485_v54  ;;  %v6127_v41 = vld [vmem:[%s7482_s4 + $0x74] sm:$0xf]  ;;  %v4125_v44 = vshrl.u32 %v6126_v28, 16  ;;  %9041 = vst [vmem:[#allocation21_spill] sm:$0xff] %v8535_v45  ;;  %v8537_v0 = vpop.f32.mrf.mxu0  ;;  %v1938_v63 = vpop.f32.mrf.mxu1 }
 0x1d9   : > { %4683 = vst [vmem:[#allocation2 + $0xc8] sm:$0xf] %v4501_v12  ;;  %v4685_v13 = vsel %vm7713_vm15, %v4506_v23, %v4684_v58  ;;  %v4515_v5 = vrot.slane %v4514_v17, 4  ;;  %v2325_v58 = vrot.slane %v2323_v55, 7  ;;  %v4128_v33 = vshll.u32 %v6126_v28, 16 }
 0x1da   : > { %4686 = vst [vmem:[#allocation2 + $0xd4] sm:$0xf] %v4685_v13  ;;  %v4525_v43 = vrot.slane %v4524_v50, 4  ;;  %v4133_v15 = vshrl.u32 %v6127_v41, 16  ;;  %v4127_v21 = vrot.slane %v4125_v44, 7  ;;  %v4136_v23 = vshll.u32 %v6127_v41, 16  ;;  %v6701_v49 = vpop.f32.mrf.mxu1 }
 0x1db   : > { %v4520_v14 = vsel %vm7704_vm14, %v4515_v5, %v4519_v38  ;;  %v2328_v1 = vor.u32 %v2326_v42, %v2325_v58  ;;  %v8543_v12 = vadd.f32 %v6319_v16, %v1938_v63  ;;  %v7094_v17 = vld [vmem:[#allocation2 + $0xf8] ss:$12 sps:$4 sm:$0xff]   ;;  %v6181_v55 = vld [vmem:[%s7482_s4 + $0x5c] sm:$0xf]  ;;  %v6344_v42 = vpop.f32.mrf.mxu0  ;;  %v2103_v22 = vld [vmem:[%s7482_s4 + $0x74] sm:$0xf] }
 0x1dc   : > { %4687 = vst [vmem:[#allocation2 + $0xe0] sm:$0xf] %v4520_v14  ;;  %v4689_v7 = vsel %vm7713_vm15, %v4525_v43, %v4688_v11  ;;  %v4135_v39 = vrot.slane %v4133_v15, 7  ;;  %v6180_v52 = vld [vmem:[%s7482_s4 + $0x58] sm:$0xf]  ;;  %v4130_v13 = vor.u32 %v4128_v33, %v4127_v21  ;;  %v4131_v28 = vrot.slane %v4127_v21, 4  ;;  %6774 = vmatprep.mubr.bf16.mxu1 %v7094_v17 }
 0x1dd   : > { %9042 = vst [vmem:[#allocation22_spill] sm:$0xff] %v8543_v12  ;;  %4690 = vst [vmem:[#allocation2 + $0xec] sm:$0xf] %v4689_v7  ;;  %v2329_v38 = vsel %vm7510_vm4, %v2321_v36, %v2328_v1  ;;  %v4238_v50 = vld [vmem:[#allocation2 + $0x138] sm:$0xf]  ;;  %v4527_v54 = vshrl.u32 %v6180_v52, 16  ;;  %v6345_v36 = vpop.f32.mrf.mxu0 }
 0x1de   : > { %v4530_v11 = vshll.u32 %v6180_v52, 16  ;;  %2449 = vst [vmem:[#allocation2 + $0x144] sm:$0xf] %v2329_v38  ;;  %v4138_v5 = vor.u32 %v4136_v23, %v4135_v39  ;;  %v4536_v41 = vshll.u32 %v6181_v55, 16  ;;  %v4540_v44 = vshrl.u32 %v6181_v55, 16  ;;  %v3006_v17 = vld [vmem:[#allocation2 + $0x138] sm:$0xff] }
 0x1df   : > { %v4529_v16 = vrot.slane %v4527_v54, 4  ;;  %v7095_v43 = vld [vmem:[#allocation2 + $0x110] ss:$12 sps:$4 sm:$0xff]   ;;  %v6182_v15 = vld [vmem:[%s7482_s4 + $0x60] sm:$0xf]  ;;  %v8552_v63 = vadd.f32 %v6345_v36, %v6344_v42  ;;  %v4239_v55 = vsel %vm7522_vm7, %v4130_v13, %v4238_v50 }
 0x1e0   : > { %v4532_v24 = vrot.slane %v4530_v11, 5  ;;  %v4538_v58 = vrot.slane %v4536_v41, 5  ;;  %v4542_v33 = vrot.slane %v4540_v44, 4  ;;  %v6183_v14 = vld [vmem:[%s7482_s4 + $0x64] sm:$0xf]  ;;  %6775 = vmatmul.mubr.bf16.gmra.mxu1 %v7095_v43  ;;  %v4546_v21 = vshrl.u32 %v6182_v15, 16 }
 0x1e1   : > { %v6156_v7 = vld [vmem:[%s7482_s4 + $0x70] sm:$0xf]  ;;  %v6157_v1 = vld [vmem:[%s7482_s4 + $0x74] sm:$0xf]  ;;  %v4692_v49 = vld [vmem:[#allocation2 + $0x104] sm:$0xf]  ;;  %v4139_v38 = vsel %vm7510_vm4, %v4131_v28, %v4138_v5 }
 0x1e2   : > { %v4533_v52 = vor.u32 %v4532_v24, %v4529_v16  ;;  %v4549_v23 = vshll.u32 %v6182_v15, 16  ;;  %v4555_v39 = vshll.u32 %v6183_v14, 16  ;;  %v4543_v54 = vor.u32 %v4542_v33, %v4538_v58  ;;  %v1943_v16 = vpop.f32.mrf.mxu1  ;;  %v7092_v45 = vld [vmem:[#allocation2 + $0x13c] ss:$12 sps:$4 sm:$0xff]   ;;  %4240 = vst [vmem:[#allocation2 + $0x138] sm:$0xf] %v4239_v55 }
 0x1e3   : > { %v4559_v11 = vshrl.u32 %v6183_v14, 16  ;;  %v4548_v41 = vrot.slane %v4546_v21, 4  ;;  %v8562_v15 = vadd.f32 %v8404_v53, %v1943_v16  ;;  %v4696_v50 = vld [vmem:[#allocation2 + $0x11c] sm:$0xf]  ;;  %v2339_v5 = vshrl.u32 %v2103_v22, 16  ;;  %3635 = vmatprep.mubr.bf16.mxu0 %v7092_v45 }
 0x1e4   : > { %v4534_v42 = vrot.slane %v4533_v52, 4  ;;  %v4551_v44 = vrot.slane %v4549_v23, 5  ;;  %v4557_v36 = vrot.slane %v4555_v39, 5  ;;  %v4544_v24 = vrot.slane %v4543_v54, 4  ;;  %v6704_v14 = vpop.f32.mrf.mxu1  ;;  %v8566_v52 = vpop.f32.mrf.mxu0  ;;  %4302 = vst [vmem:[#allocation2 + $0x13c] sm:$0xf] %v6156_v7 }
 0x1e5   : > { %v4561_v43 = vrot.slane %v4559_v11, 4  ;;  %v3008_v12 = vld [vmem:[#allocation2 + $0x144] sm:$0xff]  ;;  %v2342_v33 = vshll.u32 %v2103_v22, 16  ;;  %v2486_v23 = vld [vmem:[%s7482_s4 + $0x70] sm:$0xf]  ;;  %v6325_v22 = vadd.f32 %v8430_v30, %v8415_v34  ;;  %v2341_v55 = vrot.slane %v2339_v5, 7 }
 0x1e6   : > { %v4539_v28 = vsel %vm7704_vm14, %v4534_v42, %v4538_v58  ;;  %v4552_v13 = vor.u32 %v4551_v44, %v4548_v41  ;;  %4241 = vst [vmem:[#allocation2 + $0x144] sm:$0xf] %v4139_v38  ;;  %4303 = vst [vmem:[#allocation2 + $0x148] sm:$0xf] %v6157_v1  ;;  %v4693_v53 = vsel %vm7713_vm15, %v4544_v24, %v4692_v49  ;;  %v2487_v39 = vld [vmem:[%s7482_s4 + $0x74] sm:$0xf]  ;;  %v1946_v42 = vpop.f32.mrf.mxu1  ;;  %v8580_v44 = vpop.f32.mrf.mxu0 }
 0x1e7   : > { %4691 = vst [vmem:[#allocation2 + $0xf8] sm:$0xf] %v4539_v28  ;;  %v6067_v21 = vcombine.low %v3006_v17, %v3008_v12  ;;  %v4562_v58 = vor.u32 %v4561_v43, %v4557_v36  ;;  %v6128_v54 = vld [vmem:[%s7482_s4 + $0x78] sm:$0xf]  ;;  %4694 = vst [vmem:[#allocation2 + $0x104] sm:$0xf] %v4693_v53  ;;  %v8576_v17 = vadd.f32 %v6325_v22, %v1946_v42 }
 0x1e8   : > { %v4553_v11 = vrot.slane %v4552_v13, 4  ;;  %2518 = vst [vmem:[#allocation2 + $0x154] sm:$0xf] %v2486_v23  ;;  %2519 = vst [vmem:[#allocation2 + $0x160] sm:$0xf] %v2487_v39  ;;  %v4141_v1 = vshrl.u32 %v6128_v54, 16  ;;  %v2344_v34 = vor.u32 %v2342_v33, %v2341_v55  ;;  %v6705_v16 = vpop.f32.mrf.mxu1 }
 0x1e9   : > { %v6129_v7 = vld [vmem:[%s7482_s4 + $0x7c] sm:$0xf]  ;;  %v4144_v38 = vshll.u32 %v6128_v54, 16  ;;  %3636 = vmatmul.mubr.bf16.gmra.mxu0 %v6067_v21  ;;  %v4563_v49 = vrot.slane %v4562_v58, 4  ;;  %v9043_v28 = vrot.slane %v7617_v25, 4  ;;  %v6413_v54 = vpop.f32.mrf.mxu0 }
 0x1ea   : > { %v4149_v12 = vshrl.u32 %v6129_v7, 16  ;;  %v4558_v41 = vsel %vm7704_vm14, %v4553_v11, %v4557_v36  ;;  %v4143_v30 = vrot.slane %v4141_v1, 7  ;;  %v4152_v45 = vshll.u32 %v6129_v7, 16  ;;  %v4242_v36 = vld [vmem:[#allocation2 + $0x150] sm:$0xf] }
 0x1eb   : > { %4695 = vst [vmem:[#allocation2 + $0x110] sm:$0xf] %v4558_v41  ;;  %v4697_v24 = vsel %vm7713_vm15, %v4563_v49, %v4696_v50  ;;  %v2345_v13 = vsel %vm7510_vm4, %v9043_v28, %v2344_v34  ;;  %v7100_v33 = vld [vmem:[#allocation2 + $0x128] ss:$12 sps:$4 sm:$0xff]   ;;  %v6185_v21 = vld [vmem:[%s7482_s4 + $0x6c] sm:$0xf]  ;;  %v6414_v34 = vpop.f32.mrf.mxu0 }
 0x1ec   : > { %v4151_v43 = vrot.slane %v4149_v12, 7  ;;  %4698 = vst [vmem:[#allocation2 + $0x11c] sm:$0xf] %v4697_v24  ;;  %v4146_v5 = vor.u32 %v4144_v38, %v4143_v30  ;;  %v6184_v14 = vld [vmem:[%s7482_s4 + $0x68] sm:$0xf]  ;;  %v4147_v53 = vrot.slane %v4143_v30, 4  ;;  %6778 = vmatprep.mubr.bf16.mxu1 %v7100_v33 }
 0x1ed   : > { %2453 = vst [vmem:[#allocation2 + $0x15c] sm:$0xf] %v2345_v13  ;;  %v4565_v58 = vshrl.u32 %v6184_v14, 16  ;;  %v4568_v50 = vshll.u32 %v6184_v14, 16  ;;  %v4574_v39 = vshll.u32 %v6185_v21, 16  ;;  %v4578_v25 = vshrl.u32 %v6185_v21, 16 }
 0x1ee   : > { %v4154_v23 = vor.u32 %v4152_v45, %v4151_v43  ;;  %v7101_v55 = vld [vmem:[#allocation2 + $0x140] ss:$12 sps:$4 sm:$0xff]   ;;  %v4243_v7 = vsel %vm7522_vm7, %v4146_v5, %v4242_v36  ;;  %v6158_v1 = vld [vmem:[%s7482_s4 + $0x78] sm:$0xf]  ;;  %v6159_v38 = vld [vmem:[%s7482_s4 + $0x7c] sm:$0xf]  ;;  %v8598_v5 = vadd.f32 %v6414_v34, %v6413_v54  ;;  %v8600_v36 = vpop.f32.mrf.mxu0  ;;  %v1951_v34 = vpop.f32.mrf.mxu1 }
 0x1ef   : > { %v4567_v22 = vrot.slane %v4565_v58, 4  ;;  %v4570_v11 = vrot.slane %v4568_v50, 5  ;;  %v4576_v42 = vrot.slane %v4574_v39, 5  ;;  %v4580_v49 = vrot.slane %v4578_v25, 4  ;;  %v6186_v12 = vld [vmem:[%s7482_s4 + $0x70] sm:$0xf]  ;;  %6779 = vmatmul.mubr.bf16.gmra.mxu1 %v7101_v55 }
 0x1f0   : > { %v6187_v41 = vld [vmem:[%s7482_s4 + $0x74] sm:$0xf]  ;;  %v4584_v45 = vshrl.u32 %v6186_v12, 16  ;;  %v4587_v24 = vshll.u32 %v6186_v12, 16  ;;  %v4155_v13 = vsel %vm7510_vm4, %v4147_v53, %v4154_v23  ;;  %v8602_v55 = vpop.f32.mrf.mxu0  ;;  %v4704_v54 = vld [vmem:[#allocation2 + $0x14c] sm:$0xf] }
 0x1f1   : > { %v4571_v30 = vor.u32 %v4570_v11, %v4567_v22  ;;  %v4700_v16 = vld [vmem:[#allocation2 + $0x134] sm:$0xf]  ;;  %v4593_v43 = vshll.u32 %v6187_v41, 16  ;;  %v4581_v33 = vor.u32 %v4580_v49, %v4576_v42  ;;  %v4597_v46 = vshrl.u32 %v6187_v41, 16  ;;  %v7105_v41 = vld [vmem:[#allocation2 + $0x16c] ss:$12 sps:$4 sm:$0xff]  }
 0x1f2   : > { %v3010_v28 = vld [vmem:[#allocation2 + $0x150] sm:$0xff]  ;;  %v4586_v21 = vrot.slane %v4584_v45, 4  ;;  %v4589_v58 = vrot.slane %v4587_v24, 5  ;;  %v6189_v24 = vld [vmem:[%s7482_s4 + $0x7c] sm:$0xf] }
 0x1f3   : > { %v4572_v14 = vrot.slane %v4571_v30, 4  ;;  %v4595_v50 = vrot.slane %v4593_v43, 5  ;;  %v7098_v25 = vld [vmem:[#allocation2 + $0x154] ss:$12 sps:$4 sm:$0xff]   ;;  %v4582_v22 = vrot.slane %v4581_v33, 4  ;;  %v4599_v11 = vrot.slane %v4597_v46, 4 }
 0x1f4   : > { %v3012_v39 = vld [vmem:[#allocation2 + $0x15c] sm:$0xff]  ;;  %4244 = vst [vmem:[#allocation2 + $0x150] sm:$0xf] %v4243_v7  ;;  %4304 = vst [vmem:[#allocation2 + $0x154] sm:$0xf] %v6158_v1  ;;  %v4590_v23 = vor.u32 %v4589_v58, %v4586_v21  ;;  %3643 = vmatprep.mubr.bf16.mxu0 %v7098_v25  ;;  %v6419_v7 = vpop.f32.mrf.mxu0  ;;  %v4612_v33 = vshll.u32 %v6189_v24, 16  ;;  %v6331_v21 = vadd.f32 %v8472_v27, %v8463_v37 }
 0x1f5   : > { %4245 = vst [vmem:[#allocation2 + $0x15c] sm:$0xf] %v4155_v13  ;;  %4305 = vst [vmem:[#allocation2 + $0x160] sm:$0xf] %v6159_v38  ;;  %v4577_v29 = vsel %vm7704_vm14, %v4572_v14, %v4576_v42  ;;  %v6070_v53 = vcombine.low %v3010_v28, %v3012_v39  ;;  %v4701_v49 = vsel %vm7713_vm15, %v4582_v22, %v4700_v16  ;;  %v7107_v38 = vld [vmem:[#allocation2 + $0x158] ss:$12 sps:$4 sm:$0xff]   ;;  %v6708_v13 = vpop.f32.mrf.mxu1 }
 0x1f6   : > { %4699 = vst [vmem:[#allocation2 + $0x128] sm:$0xf] %v4577_v29  ;;  %v4600_v12 = vor.u32 %v4599_v11, %v4595_v50  ;;  %4702 = vst [vmem:[#allocation2 + $0x134] sm:$0xf] %v4701_v49  ;;  %v4591_v1 = vrot.slane %v4590_v23, 4  ;;  %v8610_v42 = vadd.f32 %v8446_v9, %v1951_v34  ;;  %6782 = vmatprep.mubr.bf16.mxu1 %v7107_v38  ;;  %v4616_v46 = vshrl.u32 %v6189_v24, 16  ;;  %v6420_v58 = vpop.f32.mrf.mxu0 }
 0x1f7   : > { %3644 = vmatmul.mubr.bf16.gmra.mxu0 %v6070_v53  ;;  %v6188_v30 = vld [vmem:[%s7482_s4 + $0x78] sm:$0xf]  ;;  %v7108_v14 = vld [vmem:[#allocation2 + $0x168] ss:$12 sps:$4 sm:$0xff]   ;;  %v1954_v22 = vpop.f32.mrf.mxu1  ;;  %v8619_v11 = vadd.f32 %v6420_v58, %v6419_v7  ;;  %v4614_v29 = vrot.slane %v4612_v33, 5  ;;  %v9044_v38 = vmov 0.0  }
 0x1f8   : > { %v4601_v45 = vrot.slane %v4600_v12, 4  ;;  %3651 = vmatprep.mubr.bf16.mxu0 %v7105_v41  ;;  %v4603_v43 = vshrl.u32 %v6188_v30, 16  ;;  %v4606_v28 = vshll.u32 %v6188_v30, 16  ;;  %v4596_v16 = vsel %vm7704_vm14, %v4591_v1, %v4595_v50  ;;  %v7109_v53 = vld [vmem:[#allocation2 + $0x170] ss:$12 sps:$4 sm:$0xff]   ;;  %v8623_v27 = vpop.f32.mrf.mxu0 }
 0x1f9   : > { %4703 = vst [vmem:[#allocation2 + $0x140] sm:$0xf] %v4596_v16  ;;  %v4618_v50 = vrot.slane %v4616_v46, 4  ;;  %v8621_v23 = vadd.f32 %v6331_v21, %v1954_v22  ;;  %v6709_v12 = vpop.f32.mrf.mxu1  ;;  %6783 = vmatmul.mubr.bf16.gmra.mxu1 %v7109_v53  ;;  %v7114_v37 = vld [vmem:[#allocation2 + $0x4] ss:$12 sps:$4 sm:$0xff]   ;;  %v6343_v53 = vadd.f32 %v8537_v0, %v8521_v19 }
 0x1fa   : > { %v4705_v9 = vsel %vm7713_vm15, %v4601_v45, %v4704_v54  ;;  %v4605_v39 = vrot.slane %v4603_v43, 4  ;;  %v4608_v25 = vrot.slane %v4606_v28, 5  ;;  %v4708_v54 = vld [vmem:[#allocation2 + $0x164] sm:$0xf]  ;;  %5266 = vmatprep.mubr.bf16.mxu1 %v7114_v37  ;;  %v7112_v45 = vld [vmem:[#allocation2] ss:$12 sps:$4 sm:$0xff]   ;;  %v8631_v24 = vpop.f32.mrf.mxu0 }
 0x1fb   : > { %4706 = vst [vmem:[#allocation2 + $0x14c] sm:$0xf] %v4705_v9  ;;  %v4619_v41 = vor.u32 %v4618_v50, %v4614_v29  ;;  %v7118_v43 = vld [vmem:[#allocation2 + $0x1c] ss:$12 sps:$4 sm:$0xff]   ;;  %v1959_v28 = vpop.f32.mrf.mxu1  ;;  %v7126_v12 = vld [vmem:[#allocation2 + $0x4c] ss:$12 sps:$4 sm:$0xff]  }
 0x1fc   : > { %v4609_v49 = vor.u32 %v4608_v25, %v4605_v39  ;;  %v7115_v13 = vld [vmem:[#allocation2 + $0x8] ss:$12 sps:$4 sm:$0xff]   ;;  %v8634_v16 = vadd.f32 %v8485_v57, %v1959_v28  ;;  %v6425_v46 = vpop.f32.mrf.mxu0  ;;  %v7116_v57 = vld [vmem:[#allocation2 + $0x18] ss:$12 sps:$4 sm:$0xff]   ;;  %v7119_v25 = vld [vmem:[#allocation2 + $0x20] ss:$12 sps:$4 sm:$0xff]  }
 0x1fd   : > { %v4620_v1 = vrot.slane %v4619_v41, 4  ;;  %v6712_v33 = vpop.f32.mrf.mxu1  ;;  %v7122_v39 = vld [vmem:[#allocation2 + $0x34] ss:$12 sps:$4 sm:$0xff]   ;;  %v7120_v50 = vld [vmem:[#allocation2 + $0x30] ss:$12 sps:$4 sm:$0xff]  }
 0x1fe   : > { %v4610_v34 = vrot.slane %v4609_v49, 4  ;;  %v6426_v21 = vpop.f32.mrf.mxu0  ;;  %v7123_v37 = vld [vmem:[#allocation2 + $0x38] ss:$12 sps:$4 sm:$0xff]  }
 0x1ff   : > { %3652 = vmatmul.mubr.bf16.gmra.mxu0 %v7108_v14  ;;  %v4709_v30 = vsel %vm7713_vm15, %v4620_v1, %v4708_v54  ;;  %v1962_v14 = vpop.f32.mrf.mxu1  ;;  %v8642_v9 = vadd.f32 %v6426_v21, %v6425_v46  ;;  %v7130_v0 = vld [vmem:[#allocation2 + $0x64] ss:$12 sps:$4 sm:$0xff]   ;;  %v6349_v46 = vadd.f32 %v8580_v44, %v8566_v52  ;;  %v7128_v21 = vld [vmem:[#allocation2 + $0x60] ss:$12 sps:$4 sm:$0xff]  }
 0x200   : > { %v4615_v7 = vsel %vm7704_vm14, %v4610_v34, %v4614_v29  ;;  %6802 = vmatprep.mubr.msk.bf16.mxu0 %vm7331_vm13, %v9044_v38  ;;  %4710 = vst [vmem:[#allocation2 + $0x164] sm:$0xf] %v4709_v30  ;;  %v8638_v3 = vadd.f32 %v6337_v60, %v1962_v14  ;;  %v8644_v22 = vpop.f32.mrf.mxu0  ;;  %v7124_v30 = vld [vmem:[#allocation2 + $0x48] ss:$12 sps:$4 sm:$0xff]   ;;  %v7132_v52 = vld [vmem:[#allocation2 + $0x78] ss:$12 sps:$4 sm:$0xff]  }
 0x201   : > { %4707 = vst [vmem:[#allocation2 + $0x158] sm:$0xf] %v4615_v7  ;;  %5267 = vmatmul.mubr.bf16.vlgmr.msra.gmra.mxu1 %v7112_v45  ;;  %v6713_v58 = vpop.f32.mrf.mxu1  ;;  %v7127_v45 = vld [vmem:[#allocation2 + $0x50] ss:$12 sps:$4 sm:$0xff]  }
 0x202   : > { %5274 = vmatprep.mubr.bf16.mxu1 %v7118_v43  ;;  %v8653_v49 = vpop.f32.mrf.mxu0 }
 0x203   : > { %v1967_v59 = vpop.f32.mrf.mxu1 }
 0x204   : > { %v8647_v62 = vadd.f32 %v8519_v31, %v1967_v59  ;;  %v7131_v59 = vld [vmem:[#allocation2 + $0x68] ss:$12 sps:$4 sm:$0xff]  }
 0x205   : > { %v6716_v29 = vpop.f32.mrf.mxu1 }
 0x207   : > { %6803 = vmatmul.mubr.bf16.vlgmr.msra.gmra.mxu0 %v7115_v13  ;;  %v1970_v41 = vpop.f32.mrf.mxu1 }
 0x208   : > { %6806 = vmatprep.mubr.msk.bf16.mxu0 %vm7331_vm13, %v9044_v38  ;;  %v8655_v34 = vadd.f32 %v6343_v53, %v1970_v41  ;;  %v6431_v1 = vpop.f32.mrf.mxu0  ;;  %v7138_v41 = vld [vmem:[#allocation2 + $0x94] ss:$12 sps:$4 sm:$0xff]  }
 0x209   : > { %5275 = vmatmul.mubr.bf16.gmra.mxu1 %v7116_v57  ;;  %v6717_v54 = vpop.f32.mrf.mxu1  ;;  %v7134_v57 = vld [vmem:[#allocation2 + $0x7c] ss:$12 sps:$4 sm:$0xff]  }
 0x20a   : > { %5282 = vmatprep.mubr.bf16.mxu1 %v7122_v39  ;;  %v6432_v31 = vpop.f32.mrf.mxu0  ;;  %v7135_v54 = vld [vmem:[#allocation2 + $0x80] ss:$12 sps:$4 sm:$0xff]  }
 0x20b   : > { %v8659_v7 = vadd.f32 %v6432_v31, %v6431_v1  ;;  %v6355_v31 = vadd.f32 %v8192_v8, %v8176_v40 }
 0x20c   : > { %v6434_v19 = vpop.f32.mrf.mxu0 }
 0x20e   : > { %v6435_v43 = vpop.f32.mrf.mxu0 }
 0x20f   : > { %6807 = vmatmul.mubr.bf16.gmra.mxu0 %v7119_v25  ;;  %v8661_v28 = vadd.f32 %v6435_v43, %v6434_v19  ;;  %v7136_v43 = vld [vmem:[#allocation2 + $0x90] ss:$12 sps:$4 sm:$0xff]  }
 0x210   : > { %6810 = vmatprep.mubr.msk.bf16.mxu0 %vm7331_vm13, %v9044_v38  ;;  %v1975_v13 = vpop.f32.mrf.mxu1 }
 0x211   : > { %5283 = vmatmul.mubr.bf16.gmra.mxu1 %v7120_v50  ;;  %v8664_v33 = vadd.f32 %v8552_v63, %v1975_v13  ;;  %v7142_v13 = vld [vmem:[#allocation2 + $0xac] ss:$12 sps:$4 sm:$0xff]  }
 0x212   : > { %5290 = vmatprep.mubr.bf16.mxu1 %v7126_v12  ;;  %v6720_v60 = vpop.f32.mrf.mxu1 }
 0x213   : > { %v7139_v60 = vld [vmem:[#allocation2 + $0x98] ss:$12 sps:$4 sm:$0xff]  }
 0x214   : > { %v6437_v14 = vpop.f32.mrf.mxu0  ;;  %v1978_v58 = vpop.f32.mrf.mxu1 }
 0x215   : > { %v8670_v39 = vadd.f32 %v6349_v46, %v1978_v58  ;;  %v7140_v58 = vld [vmem:[#allocation2 + $0xa8] ss:$12 sps:$4 sm:$0xff]  }
 0x216   : > { %v6438_v25 = vpop.f32.mrf.mxu0  ;;  %v6721_v29 = vpop.f32.mrf.mxu1 }
 0x217   : > { %6811 = vmatmul.mubr.bf16.gmra.mxu0 %v7123_v37  ;;  %v8672_v50 = vadd.f32 %v6438_v25, %v6437_v14  ;;  %v7146_v25 = vld [vmem:[#allocation2 + $0xc4] ss:$12 sps:$4 sm:$0xff]   ;;  %v6361_v29 = vadd.f32 %v8232_v18, %v8223_v4  ;;  %v7147_v18 = vld [vmem:[#allocation2 + $0xc8] ss:$12 sps:$4 sm:$0xff]  }
 0x218   : > { %6814 = vmatprep.mubr.msk.bf16.mxu0 %vm7331_vm13, %v9044_v38  ;;  %v6440_v63 = vpop.f32.mrf.mxu0 }
 0x219   : > { %5291 = vmatmul.mubr.bf16.gmra.mxu1 %v7124_v30 }
 0x21a   : > { %5298 = vmatprep.mubr.bf16.mxu1 %v7130_v0  ;;  %v6441_v53 = vpop.f32.mrf.mxu0 }
 0x21b   : > { %v8674_v12 = vadd.f32 %v6441_v53, %v6440_v63  ;;  %v7143_v63 = vld [vmem:[#allocation2 + $0xb0] ss:$12 sps:$4 sm:$0xff]  }
 0x21e   : > { %v1983_v44 = vpop.f32.mrf.mxu1 }
 0x21f   : > { %6815 = vmatmul.mubr.bf16.gmra.mxu0 %v7127_v45  ;;  %v8679_v37 = vadd.f32 %v8183_v48, %v1983_v44 }
 0x220   : > { %6818 = vmatprep.mubr.msk.bf16.mxu0 %vm7331_vm13, %v9044_v38  ;;  %v6724_v1 = vpop.f32.mrf.mxu1 }
 0x221   : > { %5299 = vmatmul.mubr.bf16.gmra.mxu1 %v7128_v21 }
 0x222   : > { %5306 = vmatprep.mubr.bf16.mxu1 %v7134_v57  ;;  %v1986_v30 = vpop.f32.mrf.mxu1 }
 0x223   : > { %v8683_v19 = vadd.f32 %v6355_v31, %v1986_v30 }
 0x224   : > { %v6725_v0 = vpop.f32.mrf.mxu1 }
 0x225   : > { %v7150_v0 = vld [vmem:[#allocation2 + $0xdc] ss:$12 sps:$4 sm:$0xff]  }
 0x227   : > { %6819 = vmatmul.mubr.bf16.gmra.mxu0 %v7131_v59  ;;  %v6443_v45 = vpop.f32.mrf.mxu0 }
 0x228   : > { %6822 = vmatprep.mubr.msk.bf16.mxu0 %vm7331_vm13, %v9044_v38 }
 0x229   : > { %5307 = vmatmul.mubr.bf16.gmra.mxu1 %v7132_v52  ;;  %v6444_v48 = vpop.f32.mrf.mxu0 }
 0x22a   : > { %5314 = vmatprep.mubr.bf16.mxu1 %v7138_v41  ;;  %v8687_v46 = vadd.f32 %v6444_v48, %v6443_v45  ;;  %v9045_v48 = vld [vmem:[#allocation15_spill] sm:$0xff] }
 0x22b   : > { %v6446_v14 = vpop.f32.mrf.mxu0 }
 0x22d   : > { %v6447_v40 = vpop.f32.mrf.mxu0 }
 0x22e   : > { %v8689_v8 = vadd.f32 %v6447_v40, %v6446_v14  ;;  %v7148_v14 = vld [vmem:[#allocation2 + $0xd8] ss:$12 sps:$4 sm:$0xff]  }
 0x22f   : > { %6823 = vmatmul.mubr.bf16.gmra.mxu0 %v7135_v54  ;;  %v1991_v21 = vpop.f32.mrf.mxu1 }
 0x230   : > { %6826 = vmatprep.mubr.msk.bf16.mxu0 %vm7331_vm13, %v9044_v38  ;;  %v8694_v57 = vadd.f32 %v8215_v10, %v1991_v21  ;;  %v7144_v10 = vld [vmem:[#allocation2 + $0xc0] ss:$12 sps:$4 sm:$0xff]  }
 0x231   : > { %5315 = vmatmul.mubr.bf16.gmra.mxu1 %v7136_v43  ;;  %v6728_v59 = vpop.f32.mrf.mxu1  ;;  %v7154_v21 = vld [vmem:[#allocation2 + $0xf4] ss:$12 sps:$4 sm:$0xff]  }
 0x232   : > { %5322 = vmatprep.mubr.bf16.mxu1 %v7142_v13 }
 0x233   : > { %v6449_v53 = vpop.f32.mrf.mxu0  ;;  %v1994_v52 = vpop.f32.mrf.mxu1 }
 0x234   : > { %v8698_v44 = vadd.f32 %v6361_v29, %v1994_v52  ;;  %v7158_v52 = vld [vmem:[#allocation2 + $0x10c] ss:$12 sps:$4 sm:$0xff]  }
 0x235   : > { %v6450_v41 = vpop.f32.mrf.mxu0  ;;  %v6729_v54 = vpop.f32.mrf.mxu1 }
 0x236   : > { %v8700_v1 = vadd.f32 %v6450_v41, %v6449_v53  ;;  %v7152_v53 = vld [vmem:[#allocation2 + $0xf0] ss:$12 sps:$4 sm:$0xff]   ;;  %v7155_v54 = vld [vmem:[#allocation2 + $0xf8] ss:$12 sps:$4 sm:$0xff]  }
 0x237   : > { %6827 = vmatmul.mubr.bf16.gmra.mxu0 %v7139_v60  ;;  %v6452_v31 = vpop.f32.mrf.mxu0  ;;  %v6367_v60 = vadd.f32 %v9045_v48, %v8266_v35 }
 0x238   : > { %6830 = vmatprep.mubr.msk.bf16.mxu0 %vm7331_vm13, %v9044_v38 }
 0x239   : > { %5323 = vmatmul.mubr.bf16.gmra.mxu1 %v7140_v58  ;;  %v6453_v30 = vpop.f32.mrf.mxu0 }
 0x23a   : > { %5330 = vmatprep.mubr.bf16.mxu1 %v7146_v25  ;;  %v8704_v4 = vadd.f32 %v6453_v30, %v6452_v31  ;;  %v7151_v25 = vld [vmem:[#allocation2 + $0xe0] ss:$12 sps:$4 sm:$0xff]  }
 0x23d   : > { %v1999_v45 = vpop.f32.mrf.mxu1 }
 0x23e   : > { %v8707_v43 = vadd.f32 %v8262_v26, %v1999_v45  ;;  %v9047_v45 = vld [vmem:[#allocation17_spill] sm:$0xff] }
 0x23f   : > { %6831 = vmatmul.mubr.bf16.gmra.mxu0 %v7143_v63  ;;  %v6732_v13 = vpop.f32.mrf.mxu1 }
 0x240   : > { %6834 = vmatprep.mubr.msk.bf16.mxu0 %vm7331_vm13, %v9044_v38 }
 0x241   : > { %5331 = vmatmul.mubr.bf16.gmra.mxu1 %v7144_v10  ;;  %v2002_v40 = vpop.f32.mrf.mxu1 }
 0x242   : > { %5338 = vmatprep.mubr.bf16.mxu1 %v7150_v0  ;;  %v8713_v58 = vadd.f32 %v6367_v60, %v2002_v40 }
 0x243   : > { %v6733_v59 = vpop.f32.mrf.mxu1 }
 0x247   : > { %6835 = vmatmul.mubr.bf16.gmra.mxu0 %v7147_v18  ;;  %v9046_v18 = vld [vmem:[#allocation16_spill] sm:$0xff] }
 0x248   : > { %6838 = vmatprep.mubr.msk.bf16.mxu0 %vm7331_vm13, %v9044_v38  ;;  %v6455_v29 = vpop.f32.mrf.mxu0  ;;  %v6373_v13 = vadd.f32 %v9047_v45, %v9046_v18  ;;  %v6424_v45 = vadd.f32 %v8631_v24, %v8623_v27  ;;  %v7164_v24 = vld [vmem:[#allocation2 + $0x138] ss:$12 sps:$4 sm:$0xff]  }
 0x249   : > { %5339 = vmatmul.mubr.bf16.gmra.mxu1 %v7148_v14  ;;  %v7156_v14 = vld [vmem:[#allocation2 + $0x108] ss:$12 sps:$4 sm:$0xff]  }
 0x24a   : > { %5346 = vmatprep.mubr.bf16.mxu1 %v7154_v21  ;;  %v6456_v26 = vpop.f32.mrf.mxu0 }
 0x24b   : > { %v8715_v63 = vadd.f32 %v6456_v26, %v6455_v29 }
 0x24c   : > { %v6458_v35 = vpop.f32.mrf.mxu0 }
 0x24e   : > { %v6459_v41 = vpop.f32.mrf.mxu0 }
 0x24f   : > { %6839 = vmatmul.mubr.bf16.gmra.mxu0 %v7151_v25  ;;  %v8719_v31 = vadd.f32 %v6459_v41, %v6458_v35  ;;  %v2007_v10 = vpop.f32.mrf.mxu1  ;;  %v7162_v25 = vld [vmem:[#allocation2 + $0x124] ss:$12 sps:$4 sm:$0xff]  }
 0x250   : > { %6842 = vmatprep.mubr.msk.bf16.mxu0 %vm7331_vm13, %v9044_v38  ;;  %v8722_v30 = vadd.f32 %v8338_v47, %v2007_v10  ;;  %v7159_v47 = vld [vmem:[#allocation2 + $0x110] ss:$12 sps:$4 sm:$0xff]  }
 0x251   : > { %5347 = vmatmul.mubr.bf16.gmra.mxu1 %v7152_v53  ;;  %v6736_v0 = vpop.f32.mrf.mxu1 }
 0x252   : > { %5354 = vmatprep.mubr.bf16.mxu1 %v7158_v52  ;;  %v7160_v52 = vld [vmem:[#allocation2 + $0x120] ss:$12 sps:$4 sm:$0xff]   ;;  %v7163_v0 = vld [vmem:[#allocation2 + $0x128] ss:$12 sps:$4 sm:$0xff]  }
 0x253   : > { %v2010_v60 = vpop.f32.mrf.mxu1 }
 0x254   : > { %v6461_v48 = vpop.f32.mrf.mxu0  ;;  %v8728_v40 = vadd.f32 %v6373_v13, %v2010_v60 }
 0x255   : > { %v6737_v59 = vpop.f32.mrf.mxu1 }
 0x256   : > { %v6462_v21 = vpop.f32.mrf.mxu0  ;;  %v7170_v59 = vld [vmem:[#allocation2 + $0x154] ss:$12 sps:$4 sm:$0xff]  }
 0x257   : > { %6843 = vmatmul.mubr.bf16.gmra.mxu0 %v7155_v54  ;;  %v8730_v29 = vadd.f32 %v6462_v21, %v6461_v48  ;;  %v7166_v54 = vld [vmem:[#allocation2 + $0x13c] ss:$12 sps:$4 sm:$0xff]  }
 0x258   : > { %6846 = vmatprep.mubr.msk.bf16.mxu0 %vm7331_vm13, %v9044_v38  ;;  %v6464_v26 = vpop.f32.mrf.mxu0 }
 0x259   : > { %5355 = vmatmul.mubr.bf16.gmra.mxu1 %v7156_v14  ;;  %v6418_v14 = vadd.f32 %v8602_v55, %v8600_v36 }
 0x25a   : > { %v6465_v35 = vpop.f32.mrf.mxu0  ;;  %5362 = vmatprep.mubr.bf16.mxu1 %v7162_v25  ;;  %v9048_v25 = vld [vmem:[#allocation18_spill] sm:$0xff] }
 0x25b   : > { %v8732_v53 = vadd.f32 %v6465_v35, %v6464_v26  ;;  %v7167_v26 = vld [vmem:[#allocation2 + $0x140] ss:$12 sps:$4 sm:$0xff]  }
 0x25e   : > { %v6756_v41 = vpop.f32.mrf.mxu1 }
 0x25f   : > { %6847 = vmatmul.mubr.bf16.gmra.mxu0 %v7159_v47  ;;  %v3703_v10 = vadd.f32 %v6756_v41, %v8619_v11 }
 0x260   : > { %6850 = vmatprep.mubr.msk.bf16.mxu0 %vm7331_vm13, %v9044_v38  ;;  %v3694_v18 = vpop.f32.mrf.mxu1 }
 0x261   : > { %v8740_v13 = vadd.f32 %v3703_v10, %v8346_v56  ;;  %v8743_v48 = vadd.f32 %v8598_v5, %v3694_v18  ;;  %5363 = vmatmul.mubr.bf16.gmra.mxu1 %v7160_v52 }
 0x262   : > { %v6757_v60 = vpop.f32.mrf.mxu1  ;;  %5370 = vmatprep.mubr.bf16.mxu1 %v7166_v54  ;;  %v6430_v54 = vadd.f32 %v8653_v49, %v8644_v22  ;;  %v9050_v49 = vld [vmem:[#allocation20_spill] sm:$0xff] }
 0x263   : > { %v3706_v21 = vadd.f32 %v6757_v60, %v6424_v45 }
 0x264   : > { %v3697_v11 = vpop.f32.mrf.mxu1 }
 0x265   : > { %v8750_v27 = vadd.f32 %v3706_v21, %v9048_v25  ;;  %v8752_v56 = vadd.f32 %v6418_v14, %v3697_v11  ;;  %v7168_v21 = vld [vmem:[#allocation2 + $0x150] ss:$12 sps:$4 sm:$0xff]   ;;  %v7171_v25 = vld [vmem:[#allocation2 + $0x158] ss:$12 sps:$4 sm:$0xff]  }
 0x266   : > { %v6760_v5 = vpop.f32.mrf.mxu1 }
 0x267   : > { %6851 = vmatmul.mubr.bf16.gmra.mxu0 %v7163_v0  ;;  %v3719_v47 = vadd.f32 %v6760_v5, %v8659_v7  ;;  %v9049_v0 = vld [vmem:[#allocation19_spill] sm:$0xff] }
 0x268   : > { %6854 = vmatprep.mubr.msk.bf16.mxu0 %vm7331_vm13, %v9044_v38  ;;  %v3710_v35 = vpop.f32.mrf.mxu1 }
 0x269   : > { %v8756_v55 = vadd.f32 %v3719_v47, %v8421_v6  ;;  %v3711_v52 = vadd.f32 %v8642_v9, %v3710_v35  ;;  %5371 = vmatmul.mubr.bf16.gmra.mxu1 %v7164_v24 }
 0x26a   : > { %v6467_v36 = vpop.f32.mrf.mxu0  ;;  %v6761_v41 = vpop.f32.mrf.mxu1  ;;  %5378 = vmatprep.mubr.bf16.mxu1 %v7170_v59 }
 0x26b   : > { %v8762_v18 = vadd.f32 %v3711_v52, %v9049_v0  ;;  %v3722_v7 = vadd.f32 %v6761_v41, %v8661_v28 }
 0x26c   : > { %v6468_v10 = vpop.f32.mrf.mxu0  ;;  %v3713_v60 = vpop.f32.mrf.mxu1 }
 0x26d   : > { %v6469_v45 = vadd.f32 %v6468_v10, %v6467_v36  ;;  %v8768_v9 = vadd.f32 %v3722_v7, %v8435_v2  ;;  %v3714_v14 = vadd.f32 %v6430_v54, %v3713_v60 }
 0x26e   : > { %v6470_v6 = vpop.f32.mrf.mxu0 }
 0x26f   : > { %6855 = vmatmul.mubr.bf16.gmra.mxu0 %v7167_v26  ;;  %v8771_v11 = vadd.f32 %v3714_v14, %v9050_v49 }
 0x270   : > { %6858 = vmatprep.mubr.msk.bf16.mxu0 %vm7331_vm13, %v9044_v38  ;;  %v6471_v22 = vpop.f32.mrf.mxu0 }
 0x271   : > { %v6472_v24 = vadd.f32 %v6471_v22, %v6470_v6  ;;  %5379 = vmatmul.mubr.bf16.gmra.mxu1 %v7168_v21  ;;  %v9051_v21 = vld [vmem:[#allocation21_spill] sm:$0xff] }
 0x272   : > { %v6764_v28 = vpop.f32.mrf.mxu1 }
 0x273   : > { %v3735_v5 = vadd.f32 %v6764_v28, %v8687_v46 }
 0x274   : > { %v3726_v59 = vpop.f32.mrf.mxu1 }
 0x275   : > { %v8775_v38 = vadd.f32 %v3735_v5, %v8495_v51  ;;  %v3727_v2 = vadd.f32 %v8672_v50, %v3726_v59  ;;  %v9052_v5 = vld [vmem:[#allocation22_spill] sm:$0xff] }
 0x276   : > { %v6765_v47 = vpop.f32.mrf.mxu1 }
 0x277   : > { %6859 = vmatmul.mubr.bf16.gmra.mxu0 %v7171_v25  ;;  %v8779_v26 = vadd.f32 %v3727_v2, %v8456_v20  ;;  %v3738_v35 = vadd.f32 %v6765_v47, %v8689_v8 }
 0x278   : > { %v3729_v36 = vpop.f32.mrf.mxu1 }
 0x279   : > { %v8783_v41 = vadd.f32 %v3738_v35, %v8506_v32  ;;  %v3730_v46 = vadd.f32 %v8674_v12, %v3729_v36 }
 0x27b   : > { %v8787_v10 = vadd.f32 %v3730_v46, %v8469_v61 }
 0x27c   : > { %v6473_v52 = vpop.f32.mrf.mxu0 }
 0x27e   : > { %v6474_v54 = vpop.f32.mrf.mxu0 }
 0x27f   : > { %v6475_v51 = vadd.f32 %v6474_v54, %v6473_v52 }
 0x280   : > { %v6476_v0 = vpop.f32.mrf.mxu0 }
 0x282   : > { %v6477_v50 = vpop.f32.mrf.mxu0  ;;  %v6768_v60 = vpop.f32.mrf.mxu1 }
 0x283   : > { %v6478_v7 = vadd.f32 %v6477_v50, %v6476_v0  ;;  %v3751_v20 = vadd.f32 %v6768_v60, %v8715_v63 }
 0x284   : > { %v3742_v6 = vpop.f32.mrf.mxu1 }
 0x285   : > { %v8791_v8 = vadd.f32 %v3751_v20, %v8562_v15  ;;  %v3743_v32 = vadd.f32 %v8700_v1, %v3742_v6 }
 0x286   : > { %v6769_v14 = vpop.f32.mrf.mxu1 }
 0x287   : > { %v8795_v12 = vadd.f32 %v3743_v32, %v9051_v21  ;;  %v3754_v61 = vadd.f32 %v6769_v14, %v8719_v31 }
 0x288   : > { %v3745_v22 = vpop.f32.mrf.mxu1 }
 0x289   : > { %v8799_v25 = vadd.f32 %v3754_v61, %v8576_v17  ;;  %v3746_v28 = vadd.f32 %v8704_v4, %v3745_v22 }
 0x28b   : > { %v8803_v59 = vadd.f32 %v3746_v28, %v9052_v5 }
 0x28c   : > { %v6479_v49 = vpop.f32.mrf.mxu0 }
 0x28e   : > { %v6480_v63 = vpop.f32.mrf.mxu0 }
 0x28f   : > { %v6481_v15 = vadd.f32 %v6480_v63, %v6479_v49 }
 0x290   : > { %v6482_v2 = vpop.f32.mrf.mxu0 }
 0x291   : > { %v6772_v35 = vpop.f32.mrf.mxu1 }
 0x292   : > { %v6483_v1 = vpop.f32.mrf.mxu0  ;;  %v3767_v52 = vadd.f32 %v6772_v35, %v6469_v45 }
 0x293   : > { %v6484_v47 = vadd.f32 %v6483_v1, %v6482_v2  ;;  %v3758_v46 = vpop.f32.mrf.mxu1 }
 0x294   : > { %v6485_v36 = vpop.f32.mrf.mxu0  ;;  %v8806_v31 = vadd.f32 %v3767_v52, %v8634_v16  ;;  %v3759_v17 = vadd.f32 %v8730_v29, %v3758_v46 }
 0x295   : > { %v6773_v4 = vpop.f32.mrf.mxu1 }
 0x296   : > { %v6486_v54 = vpop.f32.mrf.mxu0  ;;  %v8810_v50 = vadd.f32 %v3759_v17, %v8610_v42  ;;  %v3770_v20 = vadd.f32 %v6773_v4, %v6472_v24 }
 0x297   : > { %v6487_v0 = vadd.f32 %v6486_v54, %v6485_v36  ;;  %v3761_v6 = vpop.f32.mrf.mxu1 }
 0x298   : > { %v6488_v60 = vpop.f32.mrf.mxu0  ;;  %v8813_v32 = vadd.f32 %v3770_v20, %v8638_v3  ;;  %v3762_v45 = vadd.f32 %v8732_v53, %v3761_v6 }
 0x29a   : > { %v6489_v14 = vpop.f32.mrf.mxu0  ;;  %v8817_v16 = vadd.f32 %v3762_v45, %v8621_v23 }
 0x29b   : > { %v6490_v21 = vadd.f32 %v6489_v14, %v6488_v60 }
 0x2a0   : > { %v6776_v61 = vpop.f32.mrf.mxu1 }
 0x2a1   : > { %v3783_v29 = vadd.f32 %v6776_v61, %v6481_v15 }
 0x2a2   : > { %v3774_v22 = vpop.f32.mrf.mxu1 }
 0x2a3   : > { %v8820_v49 = vadd.f32 %v3783_v29, %v8664_v33  ;;  %v3775_v42 = vadd.f32 %v6475_v51, %v3774_v22 }
 0x2a4   : > { %v6777_v28 = vpop.f32.mrf.mxu1 }
 0x2a5   : > { %v8823_v24 = vadd.f32 %v3775_v42, %v8647_v62  ;;  %v3786_v3 = vadd.f32 %v6777_v28, %v6484_v47 }
 0x2a6   : > { %v3777_v63 = vpop.f32.mrf.mxu1 }
 0x2a7   : > { %v8826_v53 = vadd.f32 %v3786_v3, %v8670_v39  ;;  %v3778_v2 = vadd.f32 %v6478_v7, %v3777_v63 }
 0x2a9   : > { %v6491_v5 = vpop.f32.mrf.mxu0  ;;  %v8829_v1 = vadd.f32 %v3778_v2, %v8655_v34 }
 0x2ab   : > { %v6492_v23 = vpop.f32.mrf.mxu0 }
 0x2ac   : > { %v6493_v15 = vadd.f32 %v6492_v23, %v6491_v5 }
 0x2ad   : > { %v6494_v35 = vpop.f32.mrf.mxu0 }
 0x2af   : > { %v6495_v33 = vpop.f32.mrf.mxu0  ;;  %v6780_v51 = vpop.f32.mrf.mxu1 }
 0x2b0   : > { %v6496_v36 = vadd.f32 %v6495_v33, %v6494_v35  ;;  %v3799_v52 = vadd.f32 %v6780_v51, %v6493_v15 }
 0x2b1   : > { %v3790_v46 = vpop.f32.mrf.mxu1 }
 0x2b2   : > { %v8832_v62 = vadd.f32 %v3799_v52, %v8694_v57  ;;  %v3791_v47 = vadd.f32 %v6487_v0, %v3790_v46 }
 0x2b3   : > { %v6781_v54 = vpop.f32.mrf.mxu1 }
 0x2b4   : > { %v8835_v39 = vadd.f32 %v3791_v47, %v8679_v37  ;;  %v3802_v7 = vadd.f32 %v6781_v54, %v6496_v36 }
 0x2b5   : > { %v3793_v34 = vpop.f32.mrf.mxu1 }
 0x2b6   : > { %v8838_v4 = vadd.f32 %v3802_v7, %v8698_v44  ;;  %v3794_v60 = vadd.f32 %v6490_v21, %v3793_v34 }
 0x2b7   : > { %v6497_v17 = vpop.f32.mrf.mxu0 }
 0x2b8   : > { %v8841_v14 = vadd.f32 %v3794_v60, %v8683_v19 }
 0x2b9   : > { %v6498_v20 = vpop.f32.mrf.mxu0  ;;  %v6784_v0 = vpop.f32.mrf.mxu1 }
 0x2ba   : > { %v6499_v6 = vadd.f32 %v6498_v20, %v6497_v17 }
 0x2bb   : > { %v6500_v57 = vpop.f32.mrf.mxu0  ;;  %v3806_v37 = vpop.f32.mrf.mxu1 }
 0x2bc   : > { %v3807_v22 = vadd.f32 %v6499_v6, %v3806_v37 }
 0x2bd   : > { %v6501_v45 = vpop.f32.mrf.mxu0  ;;  %v6785_v28 = vpop.f32.mrf.mxu1 }
 0x2be   : > { %v6502_v61 = vadd.f32 %v6501_v45, %v6500_v57  ;;  %v8845_v44 = vadd.f32 %v3807_v22, %v8707_v43 }
 0x2bf   : > { %v6503_v29 = vpop.f32.mrf.mxu0  ;;  %v3809_v63 = vpop.f32.mrf.mxu1 }
 0x2c0   : > { %v3810_v2 = vadd.f32 %v6502_v61, %v3809_v63 }
 0x2c1   : > { %v6504_v42 = vpop.f32.mrf.mxu0  ;;  %v6549_v23 = vpop.f32.mrf.mxu1 }
 0x2c2   : > { %v6505_v3 = vadd.f32 %v6504_v42, %v6503_v29  ;;  %v8849_v33 = vadd.f32 %v3810_v2, %v8713_v58 }
 0x2c3   : > { %v6506_v21 = vpop.f32.mrf.mxu0  ;;  %v6550_v51 = vpop.f32.mrf.mxu1 }
 0x2c4   : > { %v3815_v5 = vadd.f32 %v6784_v0, %v6505_v3  ;;  %v6551_v52 = vadd.f32 %v6550_v51, %v6549_v23 }
 0x2c5   : > { %v6507_v19 = vpop.f32.mrf.mxu0  ;;  %v6552_v47 = vpop.f32.mrf.mxu1 }
 0x2c6   : > { %v3851_v15 = vadd.f32 %v3815_v5, %v8722_v30  ;;  %v6508_v35 = vadd.f32 %v6507_v19, %v6506_v21 }
 0x2c7   : > { %v5421_v36 = vpop.f32.mrf.mxu0  ;;  %v6553_v17 = vpop.f32.mrf.mxu1 }
 0x2c8   : > { %3883 = vst [vmem:[%s8851_s20 + $0xf0] sm:$0xff] %v3851_v15  ;;  %v3818_v43 = vadd.f32 %v6785_v28, %v6508_v35  ;;  %v5422_v7 = vadd.f32 %v6551_v52, %v5421_v36  ;;  %v6554_v34 = vadd.f32 %v6553_v17, %v6552_v47 }
 0x2c9   : > { %v6804_v46 = vpop.f32.mrf.mxu0  ;;  %v6555_v20 = vpop.f32.mrf.mxu1 }
 0x2ca   : > { %v3852_v54 = vadd.f32 %v3818_v43, %v8728_v40  ;;  %v5540_v58 = vadd.f32 %v5422_v7, %v8743_v48 }
 0x2cb   : > { %v5424_v30 = vpop.f32.mrf.mxu0  ;;  %v6556_v45 = vpop.f32.mrf.mxu1 }
 0x2cc   : > { %3884 = vst [vmem:[%s8851_s20 + $0xf8] sm:$0xff] %v3852_v54  ;;  %5570 = vst [vmem:[%s8851_s20] sm:$0xff] %v5540_v58  ;;  %v5425_v6 = vadd.f32 %v6554_v34, %v5424_v30  ;;  %v6557_v61 = vadd.f32 %v6556_v45, %v6555_v20  ;;  %v5670_v37 = vmul.f32 %v5540_v58, %v5540_v58 }
 0x2cd   : > { %v6805_v60 = vpop.f32.mrf.mxu0  ;;  %v6558_v40 = vpop.f32.mrf.mxu1 }
 0x2ce   : > { %v5541_v0 = vadd.f32 %v5425_v6, %v8752_v56 }
 0x2cf   : > { %v5429_v57 = vpop.f32.mrf.mxu0  ;;  %v6559_v48 = vpop.f32.mrf.mxu1 }
 0x2d0   : > { %5571 = vst [vmem:[%s8851_s20 + $0x8] sm:$0xff] %v5541_v0  ;;  %v5632_v22 = vadd.f32 %v5541_v0, %v5540_v58  ;;  %v5671_v42 = vmul.f32 %v5541_v0, %v5541_v0  ;;  %v5430_v28 = vadd.f32 %v6557_v61, %v5429_v57  ;;  %v6560_v5 = vadd.f32 %v6559_v48, %v6558_v40 }
 0x2d1   : > { %v6808_v29 = vpop.f32.mrf.mxu0  ;;  %v6561_v19 = vpop.f32.mrf.mxu1 }
 0x2d2   : > { %v5702_v21 = vadd.f32 %v5671_v42, %v5670_v37  ;;  %v5542_v63 = vadd.f32 %v5430_v28, %v8740_v13 }
 0x2d3   : > { %v5432_v3 = vpop.f32.mrf.mxu0  ;;  %v6562_v36 = vpop.f32.mrf.mxu1 }
 0x2d4   : > { %5572 = vst [vmem:[%s8851_s20 + $0x10] sm:$0xff] %v5542_v63  ;;  %v5633_v56 = vadd.f32 %v5632_v22, %v5542_v63  ;;  %v5672_v23 = vmul.f32 %v5542_v63, %v5542_v63  ;;  %v5433_v15 = vadd.f32 %v6560_v5, %v5432_v3  ;;  %v6563_v52 = vadd.f32 %v6562_v36, %v6561_v19 }
 0x2d5   : > { %v6809_v2 = vpop.f32.mrf.mxu0  ;;  %v6564_v47 = vpop.f32.mrf.mxu1 }
 0x2d6   : > { %v5703_v51 = vadd.f32 %v5702_v21, %v5672_v23  ;;  %v5543_v43 = vadd.f32 %v5433_v15, %v8750_v27 }
 0x2d7   : > { %v5437_v35 = vpop.f32.mrf.mxu0  ;;  %v6565_v17 = vpop.f32.mrf.mxu1 }
 0x2d8   : > { %5573 = vst [vmem:[%s8851_s20 + $0x18] sm:$0xff] %v5543_v43  ;;  %v5634_v54 = vadd.f32 %v5633_v56, %v5543_v43  ;;  %v5673_v7 = vmul.f32 %v5543_v43, %v5543_v43  ;;  %v5438_v13 = vadd.f32 %v6563_v52, %v5437_v35  ;;  %v6566_v60 = vadd.f32 %v6565_v17, %v6564_v47 }
 0x2d9   : > { %v6812_v46 = vpop.f32.mrf.mxu0  ;;  %v6567_v6 = vpop.f32.mrf.mxu1 }
 0x2da   : > { %v5704_v58 = vadd.f32 %v5703_v51, %v5673_v7  ;;  %v5544_v34 = vadd.f32 %v5438_v13, %v8762_v18 }
 0x2db   : > { %v5440_v30 = vpop.f32.mrf.mxu0  ;;  %v6568_v61 = vpop.f32.mrf.mxu1 }
 0x2dc   : > { %5574 = vst [vmem:[%s8851_s20 + $0x20] sm:$0xff] %v5544_v34  ;;  %v5635_v57 = vadd.f32 %v5634_v54, %v5544_v34  ;;  %v5674_v45 = vmul.f32 %v5544_v34, %v5544_v34  ;;  %v5441_v27 = vadd.f32 %v6566_v60, %v5440_v30  ;;  %v6569_v37 = vadd.f32 %v6568_v61, %v6567_v6 }
 0x2dd   : > { %v6813_v20 = vpop.f32.mrf.mxu0  ;;  %v6570_v42 = vpop.f32.mrf.mxu1 }
 0x2de   : > { %v5705_v29 = vadd.f32 %v5704_v58, %v5674_v45  ;;  %v5545_v40 = vadd.f32 %v5441_v27, %v8771_v11 }
 0x2df   : > { %v5445_v0 = vpop.f32.mrf.mxu0  ;;  %v6571_v21 = vpop.f32.mrf.mxu1 }
 0x2e0   : > { %5575 = vst [vmem:[%s8851_s20 + $0x28] sm:$0xff] %v5545_v40  ;;  %v5636_v28 = vadd.f32 %v5635_v57, %v5545_v40  ;;  %v5675_v3 = vmul.f32 %v5545_v40, %v5545_v40  ;;  %v5446_v18 = vadd.f32 %v6569_v37, %v5445_v0  ;;  %v6572_v2 = vadd.f32 %v6571_v21, %v6570_v42 }
 0x2e1   : > { %v6816_v22 = vpop.f32.mrf.mxu0  ;;  %v6573_v56 = vpop.f32.mrf.mxu1 }
 0x2e2   : > { %v5706_v63 = vadd.f32 %v5705_v29, %v5675_v3  ;;  %v5546_v5 = vadd.f32 %v5446_v18, %v8756_v55 }
 0x2e3   : > { %v5448_v48 = vpop.f32.mrf.mxu0  ;;  %v6574_v36 = vpop.f32.mrf.mxu1 }
 0x2e4   : > { %5576 = vst [vmem:[%s8851_s20 + $0x30] sm:$0xff] %v5546_v5  ;;  %v5637_v23 = vadd.f32 %v5636_v28, %v5546_v5  ;;  %v5676_v15 = vmul.f32 %v5546_v5, %v5546_v5  ;;  %v5449_v11 = vadd.f32 %v6572_v2, %v5448_v48  ;;  %v6575_v52 = vadd.f32 %v6574_v36, %v6573_v56 }
 0x2e5   : > { %v6817_v19 = vpop.f32.mrf.mxu0  ;;  %v6576_v47 = vpop.f32.mrf.mxu1 }
 0x2e6   : > { %v5707_v51 = vadd.f32 %v5706_v63, %v5676_v15  ;;  %v5547_v43 = vadd.f32 %v5449_v11, %v8768_v9 }
 0x2e7   : > { %v5453_v35 = vpop.f32.mrf.mxu0  ;;  %v6577_v30 = vpop.f32.mrf.mxu1 }
 0x2e8   : > { %5577 = vst [vmem:[%s8851_s20 + $0x38] sm:$0xff] %v5547_v43  ;;  %v5638_v54 = vadd.f32 %v5637_v23, %v5547_v43  ;;  %v5677_v7 = vmul.f32 %v5547_v43, %v5547_v43  ;;  %v5454_v55 = vadd.f32 %v6575_v52, %v5453_v35  ;;  %v6578_v34 = vadd.f32 %v6577_v30, %v6576_v47 }
 0x2e9   : > { %v6820_v46 = vpop.f32.mrf.mxu0  ;;  %v6579_v20 = vpop.f32.mrf.mxu1 }
 0x2ea   : > { %v5708_v17 = vadd.f32 %v5707_v51, %v5677_v7  ;;  %v5548_v58 = vadd.f32 %v5454_v55, %v8779_v26 }
 0x2eb   : > { %v5456_v13 = vpop.f32.mrf.mxu0  ;;  %v6580_v27 = vpop.f32.mrf.mxu1 }
 0x2ec   : > { %5578 = vst [vmem:[%s8851_s20 + $0x40] sm:$0xff] %v5548_v58  ;;  %v5639_v6 = vadd.f32 %v5638_v54, %v5548_v58  ;;  %v5678_v57 = vmul.f32 %v5548_v58, %v5548_v58  ;;  %v5457_v9 = vadd.f32 %v6578_v34, %v5456_v13  ;;  %v6581_v29 = vadd.f32 %v6580_v27, %v6579_v20 }
 0x2ed   : > { %v6821_v60 = vpop.f32.mrf.mxu0  ;;  %v6582_v37 = vpop.f32.mrf.mxu1 }
 0x2ee   : > { %v5709_v0 = vadd.f32 %v5708_v17, %v5678_v57  ;;  %v5549_v61 = vadd.f32 %v5457_v9, %v8787_v10 }
 0x2ef   : > { %v5461_v45 = vpop.f32.mrf.mxu0  ;;  %v6583_v3 = vpop.f32.mrf.mxu1 }
 0x2f0   : > { %5579 = vst [vmem:[%s8851_s20 + $0x48] sm:$0xff] %v5549_v61  ;;  %v5640_v22 = vadd.f32 %v5639_v6, %v5549_v61  ;;  %v5679_v42 = vmul.f32 %v5549_v61, %v5549_v61  ;;  %v5462_v26 = vadd.f32 %v6581_v29, %v5461_v45  ;;  %v6584_v21 = vadd.f32 %v6583_v3, %v6582_v37 }
 0x2f1   : > { %v6824_v40 = vpop.f32.mrf.mxu0  ;;  %v6585_v5 = vpop.f32.mrf.mxu1 }
 0x2f2   : > { %v5710_v18 = vadd.f32 %v5709_v0, %v5679_v42  ;;  %v5550_v48 = vadd.f32 %v5462_v26, %v8775_v38 }
 0x2f3   : > { %v5464_v28 = vpop.f32.mrf.mxu0  ;;  %v6586_v23 = vpop.f32.mrf.mxu1 }
 0x2f4   : > { %5580 = vst [vmem:[%s8851_s20 + $0x50] sm:$0xff] %v5550_v48  ;;  %v5641_v2 = vadd.f32 %v5640_v22, %v5550_v48  ;;  %v5680_v19 = vmul.f32 %v5550_v48, %v5550_v48  ;;  %v5465_v10 = vadd.f32 %v6584_v21, %v5464_v28  ;;  %v6587_v35 = vadd.f32 %v6586_v23, %v6585_v5 }
 0x2f5   : > { %v6825_v63 = vpop.f32.mrf.mxu0  ;;  %v6588_v51 = vpop.f32.mrf.mxu1 }
 0x2f6   : > { %v5711_v15 = vadd.f32 %v5710_v18, %v5680_v19  ;;  %v5551_v11 = vadd.f32 %v5465_v10, %v8783_v41 }
 0x2f7   : > { %v5469_v56 = vpop.f32.mrf.mxu0  ;;  %v6589_v47 = vpop.f32.mrf.mxu1 }
 0x2f8   : > { %5581 = vst [vmem:[%s8851_s20 + $0x58] sm:$0xff] %v5551_v11  ;;  %v5642_v43 = vadd.f32 %v5641_v2, %v5551_v11  ;;  %v5681_v52 = vmul.f32 %v5551_v11, %v5551_v11  ;;  %v5470_v38 = vadd.f32 %v6587_v35, %v5469_v56  ;;  %v6590_v55 = vadd.f32 %v6589_v47, %v6588_v51 }
 0x2f9   : > { %v6828_v36 = vpop.f32.mrf.mxu0  ;;  %v6591_v30 = vpop.f32.mrf.mxu1 }
 0x2fa   : > { %v5712_v54 = vadd.f32 %v5711_v15, %v5681_v52  ;;  %v5552_v7 = vadd.f32 %v5470_v38, %v8795_v12 }
 0x2fb   : > { %v5472_v46 = vpop.f32.mrf.mxu0  ;;  %v6592_v60 = vpop.f32.mrf.mxu1 }
 0x2fc   : > { %5582 = vst [vmem:[%s8851_s20 + $0x60] sm:$0xff] %v5552_v7  ;;  %v5643_v17 = vadd.f32 %v5642_v43, %v5552_v7  ;;  %v5682_v58 = vmul.f32 %v5552_v7, %v5552_v7  ;;  %v5473_v41 = vadd.f32 %v6590_v55, %v5472_v46  ;;  %v6593_v57 = vadd.f32 %v6592_v60, %v6591_v30 }
 0x2fd   : > { %v6829_v13 = vpop.f32.mrf.mxu0  ;;  %v6594_v45 = vpop.f32.mrf.mxu1 }
 0x2fe   : > { %v5713_v20 = vadd.f32 %v5712_v54, %v5682_v58  ;;  %v5553_v6 = vadd.f32 %v5473_v41, %v8803_v59 }
 0x2ff   : > { %v5477_v34 = vpop.f32.mrf.mxu0  ;;  %v6595_v29 = vpop.f32.mrf.mxu1 }
 0x300   : > { %5583 = vst [vmem:[%s8851_s20 + $0x68] sm:$0xff] %v5553_v6  ;;  %v5644_v27 = vadd.f32 %v5643_v17, %v5553_v6  ;;  %v5683_v0 = vmul.f32 %v5553_v6, %v5553_v6  ;;  %v5478_v12 = vadd.f32 %v6593_v57, %v5477_v34  ;;  %v6596_v22 = vadd.f32 %v6595_v29, %v6594_v45 }
 0x301   : > { %v6832_v9 = vpop.f32.mrf.mxu0  ;;  %v6597_v26 = vpop.f32.mrf.mxu1 }
 0x302   : > { %v5714_v40 = vadd.f32 %v5713_v20, %v5683_v0  ;;  %v5554_v37 = vadd.f32 %v5478_v12, %v8791_v8 }
 0x303   : > { %v5480_v61 = vpop.f32.mrf.mxu0  ;;  %v6598_v48 = vpop.f32.mrf.mxu1 }
 0x304   : > { %5584 = vst [vmem:[%s8851_s20 + $0x70] sm:$0xff] %v5554_v37  ;;  %v5645_v28 = vadd.f32 %v5644_v27, %v5554_v37  ;;  %v5684_v3 = vmul.f32 %v5554_v37, %v5554_v37  ;;  %v5481_v59 = vadd.f32 %v6596_v22, %v5480_v61  ;;  %v6599_v5 = vadd.f32 %v6598_v48, %v6597_v26 }
 0x305   : > { %v6833_v42 = vpop.f32.mrf.mxu0  ;;  %v6600_v19 = vpop.f32.mrf.mxu1 }
 0x306   : > { %v5715_v21 = vadd.f32 %v5714_v40, %v5684_v3  ;;  %v5555_v63 = vadd.f32 %v5481_v59, %v8799_v25 }
 0x307   : > { %v5485_v18 = vpop.f32.mrf.mxu0  ;;  %v6601_v15 = vpop.f32.mrf.mxu1 }
 0x308   : > { %5585 = vst [vmem:[%s8851_s20 + $0x78] sm:$0xff] %v5555_v63  ;;  %v5646_v10 = vadd.f32 %v5645_v28, %v5555_v63  ;;  %v5685_v56 = vmul.f32 %v5555_v63, %v5555_v63  ;;  %v5486_v8 = vadd.f32 %v6599_v5, %v5485_v18  ;;  %v6602_v36 = vadd.f32 %v6601_v15, %v6600_v19 }
 0x309   : > { %v6836_v2 = vpop.f32.mrf.mxu0  ;;  %v6603_v43 = vpop.f32.mrf.mxu1 }
 0x30a   : > { %v5716_v11 = vadd.f32 %v5715_v21, %v5685_v56  ;;  %v5556_v35 = vadd.f32 %v5486_v8, %v8810_v50 }
 0x30b   : > { %v5488_v23 = vpop.f32.mrf.mxu0  ;;  %v6604_v47 = vpop.f32.mrf.mxu1 }
 0x30c   : > { %5586 = vst [vmem:[%s8851_s20 + $0x80] sm:$0xff] %v5556_v35  ;;  %v5647_v52 = vadd.f32 %v5646_v10, %v5556_v35  ;;  %v5686_v38 = vmul.f32 %v5556_v35, %v5556_v35  ;;  %v5489_v25 = vadd.f32 %v6602_v36, %v5488_v23  ;;  %v6605_v55 = vadd.f32 %v6604_v47, %v6603_v43 }
 0x30d   : > { %v6837_v51 = vpop.f32.mrf.mxu0  ;;  %v6606_v30 = vpop.f32.mrf.mxu1 }
 0x30e   : > { %v5717_v54 = vadd.f32 %v5716_v11, %v5686_v38  ;;  %v5557_v7 = vadd.f32 %v5489_v25, %v8817_v16 }
 0x30f   : > { %v5493_v46 = vpop.f32.mrf.mxu0  ;;  %v6607_v34 = vpop.f32.mrf.mxu1 }
 0x310   : > { %5587 = vst [vmem:[%s8851_s20 + $0x88] sm:$0xff] %v5557_v7  ;;  %v5648_v17 = vadd.f32 %v5647_v52, %v5557_v7  ;;  %v5687_v58 = vmul.f32 %v5557_v7, %v5557_v7  ;;  %v5494_v50 = vadd.f32 %v6605_v55, %v5493_v46  ;;  %v6608_v6 = vadd.f32 %v6607_v34, %v6606_v30 }
 0x311   : > { %v6840_v13 = vpop.f32.mrf.mxu0  ;;  %v6609_v9 = vpop.f32.mrf.mxu1 }
 0x312   : > { %v5718_v60 = vadd.f32 %v5717_v54, %v5687_v58  ;;  %v5558_v20 = vadd.f32 %v5494_v50, %v8806_v31 }
 0x313   : > { %v5496_v41 = vpop.f32.mrf.mxu0  ;;  %v6610_v12 = vpop.f32.mrf.mxu1 }
 0x314   : > { %5588 = vst [vmem:[%s8851_s20 + $0x90] sm:$0xff] %v5558_v20  ;;  %v5649_v45 = vadd.f32 %v5648_v17, %v5558_v20  ;;  %v5688_v27 = vmul.f32 %v5558_v20, %v5558_v20  ;;  %v5497_v16 = vadd.f32 %v6608_v6, %v5496_v41  ;;  %v6611_v29 = vadd.f32 %v6610_v12, %v6609_v9 }
 0x315   : > { %v6841_v57 = vpop.f32.mrf.mxu0  ;;  %v6612_v22 = vpop.f32.mrf.mxu1 }
 0x316   : > { %v5559_v61 = vadd.f32 %v5497_v16, %v8813_v32  ;;  %v5719_v40 = vadd.f32 %v5718_v60, %v5688_v27 }
 0x317   : > { %v5501_v0 = vpop.f32.mrf.mxu0  ;;  %v6613_v3 = vpop.f32.mrf.mxu1 }
 0x318   : > { %5589 = vst [vmem:[%s8851_s20 + $0x98] sm:$0xff] %v5559_v61  ;;  %v5689_v42 = vmul.f32 %v5559_v61, %v5559_v61  ;;  %v5502_v26 = vadd.f32 %v6611_v29, %v5501_v0  ;;  %v8896_v31 = vadd.f32 %v5649_v45, %v5559_v61  ;;  %v6614_v18 = vadd.f32 %v6613_v3, %v6612_v22 }
 0x319   : > { %v6844_v37 = vpop.f32.mrf.mxu0  ;;  %v6615_v32 = vpop.f32.mrf.mxu1 }
 0x31a   : > { %v5560_v59 = vadd.f32 %v5502_v26, %v8823_v24  ;;  %v8899_v48 = vadd.f32 %v5719_v40, %v5689_v42 }
 0x31b   : > { %v5504_v28 = vpop.f32.mrf.mxu0  ;;  %v6616_v2 = vpop.f32.mrf.mxu1 }
 0x31c   : > { %5590 = vst [vmem:[%s8851_s20 + $0xa0] sm:$0xff] %v5560_v59  ;;  %v5505_v63 = vadd.f32 %v6614_v18, %v5504_v28  ;;  %v6617_v10 = vadd.f32 %v6616_v2, %v6615_v32 }
 0x31d   : > { %v6845_v21 = vpop.f32.mrf.mxu0  ;;  %v6618_v8 = vpop.f32.mrf.mxu1 }
 0x31e   : > { %v5561_v19 = vadd.f32 %v5505_v63, %v8829_v1 }
 0x31f   : > { %v5509_v5 = vpop.f32.mrf.mxu0  ;;  %v6619_v24 = vpop.f32.mrf.mxu1 }
 0x320   : > { %5591 = vst [vmem:[%s8851_s20 + $0xa8] sm:$0xff] %v5561_v19  ;;  %v5510_v23 = vadd.f32 %v6617_v10, %v5509_v5  ;;  %v6620_v35 = vadd.f32 %v6619_v24, %v6618_v8 }
 0x321   : > { %v6848_v56 = vpop.f32.mrf.mxu0  ;;  %v6621_v51 = vpop.f32.mrf.mxu1 }
 0x322   : > { %v5562_v11 = vadd.f32 %v5510_v23, %v8820_v49 }
 0x323   : > { %v5512_v15 = vpop.f32.mrf.mxu0  ;;  %v6622_v38 = vpop.f32.mrf.mxu1  ;;  %v5620_v57 = vld [vmem:[%s8851_s20 + $0xa0] sm:$0xff] }
 0x324   : > { %5592 = vst [vmem:[%s8851_s20 + $0xb0] sm:$0xff] %v5562_v11  ;;  %v5513_v43 = vadd.f32 %v6620_v35, %v5512_v15  ;;  %v6623_v25 = vadd.f32 %v6622_v38, %v6621_v51  ;;  %v5690_v61 = vmul.f32 %v5620_v57, %v5620_v57 }
 0x325   : > { %v6849_v36 = vpop.f32.mrf.mxu0  ;;  %v6624_v47 = vpop.f32.mrf.mxu1 }
 0x326   : > { %v5563_v1 = vadd.f32 %v5513_v43, %v8826_v53  ;;  %v5721_v18 = vadd.f32 %v8899_v48, %v5690_v61 }
 0x327   : > { %v5517_v52 = vpop.f32.mrf.mxu0  ;;  %v6625_v55 = vpop.f32.mrf.mxu1  ;;  %v5621_v16 = vld [vmem:[%s8851_s20 + $0xa8] sm:$0xff] }
 0x328   : > { %5593 = vst [vmem:[%s8851_s20 + $0xb8] sm:$0xff] %v5563_v1  ;;  %v5518_v54 = vadd.f32 %v6623_v25, %v5517_v52  ;;  %v6626_v13 = vadd.f32 %v6625_v55, %v6624_v47  ;;  %v5691_v22 = vmul.f32 %v5621_v16, %v5621_v16 }
 0x329   : > { %v6852_v46 = vpop.f32.mrf.mxu0  ;;  %v6627_v17 = vpop.f32.mrf.mxu1 }
 0x32a   : > { %v5564_v49 = vadd.f32 %v5518_v54, %v8835_v39 }
 0x32b   : > { %v5520_v7 = vpop.f32.mrf.mxu0  ;;  %v6628_v41 = vpop.f32.mrf.mxu1  ;;  %v5622_v37 = vld [vmem:[%s8851_s20 + $0xb0] sm:$0xff] }
 0x32c   : > { %5594 = vst [vmem:[%s8851_s20 + $0xc0] sm:$0xff] %v5564_v49  ;;  %v5521_v58 = vadd.f32 %v6626_v13, %v5520_v7  ;;  %v6629_v34 = vadd.f32 %v6628_v41, %v6627_v17  ;;  %v5692_v63 = vmul.f32 %v5622_v37, %v5622_v37 }
 0x32d   : > { %v6853_v30 = vpop.f32.mrf.mxu0  ;;  %v6630_v20 = vpop.f32.mrf.mxu1 }
 0x32e   : > { %v5565_v53 = vadd.f32 %v5521_v58, %v8841_v14 }
 0x32f   : > { %v5525_v50 = vpop.f32.mrf.mxu0  ;;  %v6631_v39 = vpop.f32.mrf.mxu1  ;;  %v5623_v59 = vld [vmem:[%s8851_s20 + $0xb8] sm:$0xff] }
 0x330   : > { %5595 = vst [vmem:[%s8851_s20 + $0xc8] sm:$0xff] %v5565_v53  ;;  %v5526_v6 = vadd.f32 %v6629_v34, %v5525_v50  ;;  %v6632_v27 = vadd.f32 %v6631_v39, %v6630_v20  ;;  %v5693_v8 = vmul.f32 %v5623_v59, %v5623_v59 }
 0x331   : > { %v6856_v60 = vpop.f32.mrf.mxu0  ;;  %v6633_v12 = vpop.f32.mrf.mxu1 }
 0x332   : > { %v5566_v45 = vadd.f32 %v5526_v6, %v8832_v62  ;;  %v5651_v62 = vadd.f32 %v8896_v31, %v5620_v57 }
 0x333   : > { %v5528_v9 = vpop.f32.mrf.mxu0  ;;  %v6634_v40 = vpop.f32.mrf.mxu1  ;;  %v5624_v19 = vld [vmem:[%s8851_s20 + $0xc0] sm:$0xff] }
 0x334   : > { %5596 = vst [vmem:[%s8851_s20 + $0xd0] sm:$0xff] %v5566_v45  ;;  %v5529_v14 = vadd.f32 %v6632_v27, %v5528_v9  ;;  %v6635_v26 = vadd.f32 %v6634_v40, %v6633_v12  ;;  %v5652_v32 = vadd.f32 %v5651_v62, %v5621_v16  ;;  %v5694_v11 = vmul.f32 %v5624_v19, %v5624_v19 }
 0x335   : > { %v6857_v0 = vpop.f32.mrf.mxu0  ;;  %v6636_v3 = vpop.f32.mrf.mxu1 }
 0x336   : > { %v5567_v42 = vadd.f32 %v5529_v14, %v8838_v4  ;;  %v5722_v4 = vadd.f32 %v5721_v18, %v5691_v22  ;;  %v5653_v56 = vadd.f32 %v5652_v32, %v5622_v37 }
 0x337   : > { %v5533_v29 = vpop.f32.mrf.mxu0  ;;  %v6637_v2 = vpop.f32.mrf.mxu1  ;;  %v5625_v23 = vld [vmem:[%s8851_s20 + $0xc8] sm:$0xff] }
 0x338   : > { %5597 = vst [vmem:[%s8851_s20 + $0xd8] sm:$0xff] %v5567_v42  ;;  %v5534_v21 = vadd.f32 %v6635_v26, %v5533_v29  ;;  %v6638_v31 = vadd.f32 %v6637_v2, %v6636_v3  ;;  %v5654_v24 = vadd.f32 %v5653_v56, %v5623_v59  ;;  %v5723_v35 = vadd.f32 %v5722_v4, %v5692_v63 }
 0x339   : > { %v6860_v28 = vpop.f32.mrf.mxu0  ;;  %v5695_v43 = vmul.f32 %v5625_v23, %v5625_v23 }
 0x33a   : > { %v5568_v10 = vadd.f32 %v5534_v21, %v8845_v44  ;;  %v5655_v51 = vadd.f32 %v5654_v24, %v5624_v19  ;;  %v5724_v52 = vadd.f32 %v5723_v35, %v5693_v8 }
 0x33b   : > { %v5536_v5 = vpop.f32.mrf.mxu0  ;;  %v5626_v44 = vld [vmem:[%s8851_s20 + $0xd0] sm:$0xff] }
 0x33c   : > { %5598 = vst [vmem:[%s8851_s20 + $0xe0] sm:$0xff] %v5568_v10  ;;  %v5537_v15 = vadd.f32 %v6638_v31, %v5536_v5  ;;  %v5656_v1 = vadd.f32 %v5655_v51, %v5625_v23  ;;  %v5696_v25 = vmul.f32 %v5626_v44, %v5626_v44  ;;  %v5725_v46 = vadd.f32 %v5724_v52, %v5694_v11 }
 0x33d   : > { %v6861_v48 = vpop.f32.mrf.mxu0 }
 0x33e   : > { %v5569_v36 = vadd.f32 %v5537_v15, %v8849_v33 }
 0x33f   : > { %v5627_v38 = vld [vmem:[%s8851_s20 + $0xd8] sm:$0xff] }
 0x340   : > { %5599 = vst [vmem:[%s8851_s20 + $0xe8] sm:$0xff] %v5569_v36 }
 0x341   : > { %7239 = shalt.err (!%p7236_p0)
}
 0x342   : > { %s7240_s11 = scalar_lea.hbm %s8931_s23, 4096  ;;  %s7244_s30 = scalar_lea.hbm %s9004_s2, 8192 }
 0x343   : > { %p7241_p5 = scmp.ne.s32.totalorder %s8931_s23, %s7240_s11  ;;  %p7245_p4 = scmp.lt.s32.totalorder %s8931_s23, %s9004_s2 }
 0x344   : > { %p7246_p6 = scmp.lt.s32.totalorder %s7244_s30, %s7240_s11 }
 0x345   : > { %p7242_p2 = pnand %p7241_p5, %p9053_p11 }
 0x346   : > { %p7247_p8 = por %p7246_p6, %p7245_p4 }
 0x347   : > { %p7243_p1 = pneg %p7242_p2 }
 0x349   : > { %p7248_p3 = pnand %p7247_p8, %p7243_p1 }
 0x34b   : > { %7251 = shalt.err (!%p7248_p3)
}
 0x34c   : > { %s7333_s28 = smov 128   ;;  %s7334_s17 = smov 8   ;;  %v5657_v33 = vadd.f32 %v5656_v1, %v5626_v44  ;;  %v5697_v47 = vmul.f32 %v5627_v38, %v5627_v38  ;;  %v5726_v54 = vadd.f32 %v5725_v46, %v5695_v43  ;;  %v5628_v7 = vld [vmem:[%s8851_s20 + $0xe0] sm:$0xff]  ;;  %v5629_v58 = vld [vmem:[%s8851_s20 + $0xe8] sm:$0xff]  ;;  %v5630_v50 = vld [vmem:[%s8851_s20 + $0xf0] sm:$0xff] }
 0x34d   : > { %6884 = dma.vmem_to_hbm [thread:$0]  (%p9053_p11), %s8933_s29, 4096, %s8931_s23, %s5741_s25, %s7333_s28, %s7333_s28, %s7334_s17   ;;  %v5698_v49 = vmul.f32 %v5628_v7, %v5628_v7  ;;  %v5699_v53 = vmul.f32 %v5629_v58, %v5629_v58  ;;  %v5700_v6 = vmul.f32 %v5630_v50, %v5630_v50 }
 0x34e   : > { %v5658_v55 = vadd.f32 %v5657_v33, %v5627_v38  ;;  %v5727_v13 = vadd.f32 %v5726_v54, %v5696_v25  ;;  %v5631_v60 = vld [vmem:[%s8851_s20 + $0xf8] sm:$0xff]  ;;  %s5898_s29 = sshll.u32 %s7478_s26, 1  ;;  %s6263_s20 = sshll.u32 %s7377_s16, 5 }
 0x34f   : > { %v5701_v39 = vmul.f32 %v5631_v60, %v5631_v60  ;;  %s214_s22 = scalar_lea.vmem [#allocation9], %s5898_s29  ;;  %s5773_s9 = scalar_lea.hbm %s9005_s3, %s6263_s20 }
 0x350   : > { %v5659_v30 = vadd.f32 %v5658_v55, %v5628_v7  ;;  %v5728_v17 = vadd.f32 %v5727_v13, %v5697_v47  ;;  %s5775_s23 = sshll.u32 %s214_s22, 4  ;;  %s5746_s7 = scalar_lea.sflag [#allocation10], %s7478_s26  ;;  %s5776_s23 = int_to_ptr.vmem [resolvable:$true] %s5775_s23 }
 0x351   : > { %s7252_s10 = scalar_lea.vmem %s5776_s23, 32  ;;  %s7335_s11 = smov [#allocation9]  }
 0x352   : > { %v5660_v41 = vadd.f32 %v5659_v30, %v5629_v58  ;;  %v5729_v34 = vadd.f32 %v5728_v17, %v5698_v49  ;;  %p7253_p7 = scmp.ne.s32.totalorder %s5776_s23, %s7252_s10  ;;  %s7256_s16 = sshll.u32 %s7335_s11, 4  ;;  %s7257_s16 = int_to_ptr.vmem [resolvable:$false] %s7256_s16 }
 0x353   : > { %s7258_s21 = scalar_lea.vmem %s7257_s16, 64  ;;  %p7259_p12 = scmp.lt.s32.totalorder %s5776_s23, %s7257_s16 }
 0x354   : > { %v5661_v20 = vadd.f32 %v5660_v41, %v5630_v50  ;;  %v5730_v57 = vadd.f32 %v5729_v34, %v5699_v53  ;;  %p7254_p9 = pnand %p7253_p7, %p9053_p11  ;;  %p7260_p13 = scmp.lt.s32.totalorder %s7258_s21, %s7252_s10 }
 0x356   : > { %v5662_v9 = vadd.f32 %v5661_v20, %v5631_v60  ;;  %v5731_v45 = vadd.f32 %v5730_v57, %v5700_v6  ;;  %p7255_p10 = pneg %p7254_p9  ;;  %p7261_p0 = por %p7260_p13, %p7259_p12 }
 0x358   : > { %v5663_v27 = vrot.slane %v5662_v9, 4  ;;  %v5732_v16 = vadd.f32 %v5731_v45, %v5701_v39  ;;  %p7262_p5 = pnand %p7261_p0, %p7255_p10 }
 0x35a   : > { %v5664_v0 = vadd.f32 %v5663_v27, %v5662_v9  ;;  %v5733_v12 = vrot.slane %v5732_v16, 4 }
 0x35c   : > { %v5665_v61 = vrot.slane %v5664_v0, 2  ;;  %v5734_v14 = vadd.f32 %v5733_v12, %v5732_v16 }
 0x35e   : > { %v5666_v29 = vadd.f32 %v5665_v61, %v5664_v0  ;;  %v5735_v40 = vrot.slane %v5734_v14, 2 }
 0x360   : > { %v5667_v37 = vrot.slane %v5666_v29, 1  ;;  %v5736_v22 = vadd.f32 %v5735_v40, %v5734_v14 }
 0x362   : > { %v5668_v42 = vadd.f32 %v5667_v37, %v5666_v29  ;;  %v5737_v26 = vrot.slane %v5736_v22, 1 }
 0x364   : > { %5669 = vst [vmem:[%s214_s22] sm:$0x1] %v5668_v42  ;;  %v5738_v62 = vadd.f32 %v5737_v26, %v5736_v22 }
 0x366   : > { %5739 = vst [vmem:[%s214_s22 + $0x1] sm:$0x1] %v5738_v62 }
 0x367   : > { %7265 = shalt.err (!%p7262_p5)
}
 0x368   : > { %s7266_s27 = scalar_lea.hbm %s5773_s9, 32  ;;  %s7270_s4 = scalar_lea.hbm %s9005_s3, 64 }
 0x369   : > { %p7267_p2 = scmp.ne.s32.totalorder %s5773_s9, %s7266_s27  ;;  %p7271_p6 = scmp.lt.s32.totalorder %s5773_s9, %s9005_s3 }
 0x36a   : > { %p7272_p8 = scmp.lt.s32.totalorder %s7270_s4, %s7266_s27 }
 0x36b   : > { %p7268_p1 = pnand %p7267_p2, %p9053_p11 }
 0x36c   : > { %p7273_p3 = por %p7272_p8, %p7271_p6 }
 0x36d   : > { %p7269_p4 = pneg %p7268_p1 }
 0x36f   : > { %p7274_p7 = pnand %p7273_p3, %p7269_p4 }
 0x371   : > { %7277 = shalt.err (!%p7274_p7)
}
 0x372   : > { %6885 = dma.vmem_to_hbm [thread:$0]  (%p9053_p11), %s5776_s23, 32, %s5773_s9, %s5746_s7  }
 0x373 PF: > { %s5787_s17 = sand.u32 1, %s7312_s12   ;;  %p9054_p9 = scmp.ne.s32.totalorder %s9013_s19, 0 }
 0x374   : > { %p9055_p10 = scmp.ge.s32.totalorder %s7324_s15, 2  ;;  %s5788_s29 = scalar_lea.sflag [#allocation5], %s5787_s17 }
 0x376   : > { %p6897_p12 = pnand %p9055_p10, %p9054_p9 }
 0x378   : > { %p6898_p13 = pneg %p6897_p12 }
 0x37a   : > { %7303 = dma.done.wait (%p6898_p13), %s5788_s29, 4096  }
 0x37b   : > { %7305 = vsyncadd (%p6898_p13), %s5788_s29, 4294963200  ;;  %s5797_s20 = scalar_lea.sflag [#allocation10], %s5787_s17 }
 0x37c   : > { %7307 = dma.done.wait (%p6898_p13), %s5797_s20, 32  }
 0x37d   : > { %7309 = vsyncadd (%p6898_p13), %s5797_s20, 4294967264  ;;  %p21_p11 = scmp.ge.s32.totalorder %s7410_s24, 4   ;;  %s9056_s12 = smov %s7316_s13 }
 0x37e   : > { %s9057_s13 = smov %s7320_s14  ;;  %s9058_s14 = smov %s7430_s5 }
 0x37f   : > { %s9059_s15 = smov %s7410_s24  ;;  %23 = sbr.rel (!%p21_p11) target bundleno = 8 (0x8), region = 99 }
 0x384   :  { %5802 = vsyncpa [#allocation4], 1 }
 0x385   :  { %5804 = vsyncpa [#allocation4 + $0x1], 1 }
 0x386   :  { %5805 = vsyncpa [#allocation7], 1 }
 0x387   :  { %5806 = vsyncpa [#allocation5], 1 }
 0x388   :  { %5808 = vsyncpa [#allocation5 + $0x1], 1 }
 0x389   :  { %5809 = vsyncpa [#allocation10], 1 }
 0x38a   :  { %5811 = vsyncpa [#allocation10 + $0x1], 1 }

</bundles_post_ra>
